<compile_context>
chip_gen: v6e
topology: v6e:2x2x1
jax: 0.10.0
libtpu: 0.0.40
codegen_flags: <defaults>
</compile_context>

<pallas_src>
import jax
import jax.numpy as jnp
from jax.experimental import pallas as pl
from jax.experimental.pallas import tpu as pltpu


_LANE = 128          # lane width / channel padding granularity
_PAD_H = 4           # H halo = max dilation
_PAD_W = 8           # W halo (>= max dilation, multiple of 8 so crops are aligned)
_DILATIONS = (2, 3, 4)

# Static guards for the roll + aligned-crop trick (review correctness concern):
# the shifted crop must never wrap and must stay sublane-aligned.
assert max(_DILATIONS) <= _PAD_H
assert max(_DILATIONS) <= _PAD_W and _PAD_W % 8 == 0


def _round_up(x, m):
    return ((x + m - 1) // m) * m


def _aspp_kernel(xt_ref, e_ref, wc_ref, wt_ref, bd_ref, b01_ref, wo_ref, bo_ref,
                 o_ref, xe_ref):
    # xt_ref : (1, THH, Wp2, Cp) bf16  halo'd input tile (THH = TH + 2*PAD_H)
    # e_ref  : (Cp, Dp)          bf16  0/1 channel-expansion matrix (c == d // M)
    # wc_ref : (Cp, 2*Dp)        bf16  fused weights of the two 1x1 branches
    # wt_ref : (3, 3, 3, Dp)     f32   per-lane depthwise taps (branch, kh, kw, Dp)
    # bd_ref : (3, Dp)           f32   depthwise branch biases
    # b01_ref: (1, 2*Dp)         f32   1x1 branch biases
    # wo_ref : (5*Dp, Dp)        bf16  output 1x1 conv (branch-slab rows)
    # bo_ref : (1, Dp)           f32   output bias
    # o_ref  : (1, TH, W, Dp)    f32
    # xe_ref : (THH*Wp2, Dp)     f32   VMEM scratch: channel-expanded halo'd tile
    _, TH, W, Dp = o_ref.shape
    _, THH, Wp2, Cp = xt_ref.shape
    f32 = jnp.float32
    bf16 = jnp.bfloat16

    # ---- expand grouped input channels Cin -> D once for the whole halo'd
    # tile (one MXU matmul against a 0/1 selection matrix, reused by all taps).
    xt_flat = xt_ref[0].reshape(THH * Wp2, Cp)               # layout-compatible
    xe_ref[...] = jnp.dot(xt_flat, e_ref[...], preferred_element_type=f32)

    def crop(flat, rows, r0):
        """(TH*W, Dp) window at local row offset r0 of a (rows*Wp2, Dp) value."""
        v = flat.reshape(rows, Wp2, Dp)[r0:r0 + TH, _PAD_W:_PAD_W + W, :]
        return v.reshape(TH * W, Dp)

    # ---- both 1x1 branches fused into one K=Cp matmul over 2*Dp lanes. ----
    xc = xt_ref[0, _PAD_H:_PAD_H + TH, _PAD_W:_PAD_W + W, :].reshape(TH * W, Cp)
    s01 = jnp.dot(xc, wc_ref[...], preferred_element_type=f32) + b01_ref[...]
    s01 = jnp.maximum(s01, 0.0)

    # ---- output 1x1 conv streamed over branch slabs (no full concat temp). ----
    out = jnp.dot(s01[:, :Dp].astype(bf16), wo_ref[0:Dp, :],
                  preferred_element_type=f32)
    out = out + jnp.dot(s01[:, Dp:2 * Dp].astype(bf16), wo_ref[Dp:2 * Dp, :],
                        preferred_element_type=f32)

    # ---- three dilated depthwise 3x3 branches: per-lane VPU multiply-adds on
    # the expanded tile.  W shifts: one sublane roll per (branch, sign), reused
    # by all three row offsets; dw == 0 taps need no roll at all. ----
    for di, d in enumerate(_DILATIONS):
        rows = TH + 2 * d
        base = (_PAD_H - d) * Wp2                            # Wp2 % 8 == 0 -> aligned
        v0 = xe_ref[base:base + rows * Wp2, :]               # static aligned slice
        bacc = jnp.zeros((TH * W, Dp), f32)
        for ti, dh in enumerate((-d, 0, d)):                 # kernel column kw == 1
            bacc = bacc + crop(v0, rows, dh + d) * wt_ref[di, ti, 1:2, :]
        for tj, dw in ((0, -d), (2, d)):                     # kernel columns 0 / 2
            shifted = pltpu.roll(v0, shift=(-dw) % (rows * Wp2), axis=0)
            for ti, dh in enumerate((-d, 0, d)):
                bacc = bacc + crop(shifted, rows, dh + d) * wt_ref[di, ti, tj:tj + 1, :]
        act = jnp.maximum(bacc + bd_ref[di:di + 1, :], 0.0).astype(bf16)
        out = out + jnp.dot(act, wo_ref[(2 + di) * Dp:(3 + di) * Dp, :],
                            preferred_element_type=f32)

    out = jnp.maximum(out + bo_ref[...], 0.0)
    o_ref[...] = out.reshape(1, TH, W, Dp).astype(o_ref.dtype)


def aspp_pallas(x, params, *, tile_h=None):
    """ASPP forward (matches the PyTorch module), x: (N, Cin, H, W) NCHW."""
    (w_pw, b_pw, w_a1, b_a1, w_a2, b_a2,
     w_a3, b_a3, w_a4, b_a4, w_out, b_out) = params

    N, Cin, H, W = x.shape
    D = w_pw.shape[0]
    if D % Cin != 0:
        raise ValueError("grouped branches require depth % in_channel == 0")
    M = D // Cin
    if W % 8 != 0:
        raise ValueError("W must be a multiple of 8")  # TODO(synk): pad ragged W

    if tile_h is None:
        # Aim TH*W at the 512-2048 row range (feeds the 256-wide v6e/v7x MXU)
        # while dividing H exactly.
        target = max(1, 2048 // W)
        tile_h = 1
        for t in range(1, H + 1):
            if H % t == 0 and t <= target:
                tile_h = t
    TH = tile_h
    if H % TH != 0:
        raise ValueError("H must be divisible by the H tile")
    HT = H // TH
    THH = TH + 2 * _PAD_H

    Cp = _round_up(Cin, _LANE)
    Dp = _round_up(D, _LANE)
    Wp2 = W + 2 * _PAD_W
    f32, bf16 = jnp.float32, jnp.bfloat16

    # ---- activations: NCHW -> NHWC (bf16), lane-dense channel pad, zero
    # spatial halo (the halo zeros ARE the conv zero-padding), then overlapping
    # H windows so each grid step only keeps a halo'd tile resident in VMEM.
    x_nhwc = jnp.transpose(x, (0, 2, 3, 1)).astype(bf16)
    x_p = jnp.pad(x_nhwc,
                  ((0, 0), (_PAD_H, _PAD_H), (_PAD_W, _PAD_W), (0, Cp - Cin)))
    rows = jnp.arange(HT)[:, None] * TH + jnp.arange(THH)[None, :]   # (HT, THH)
    x_tiles = x_p[:, rows].reshape(N * HT, THH, Wp2, Cp)

    # ---- weight packing (all zero-padded to 128-lane channel blocks). ----
    c_idx = jnp.arange(Cp)[:, None]
    d_idx = jnp.arange(Dp)[None, :]
    e_mat = ((d_idx < D) & (c_idx == d_idx // M)).astype(bf16)        # (Cp, Dp)

    wc = jnp.zeros((Cp, 2 * Dp), f32)
    wc = wc.at[:Cin, 0:D].set(w_pw[:, :, 0, 0].astype(f32).T)
    wc = wc.at[:Cin, Dp:Dp + D].set(w_a1[:, :, 0, 0].astype(f32).T)
    wc = wc.astype(bf16)

    b01 = jnp.zeros((1, 2 * Dp), f32)
    b01 = b01.at[0, 0:D].set(b_pw.astype(f32))
    b01 = b01.at[0, Dp:Dp + D].set(b_a1.astype(f32))

    wt = jnp.zeros((3, 3, 3, Dp), f32)
    for di, wb in enumerate((w_a2, w_a3, w_a4)):
        wt = wt.at[di, :, :, :D].set(jnp.transpose(wb[:, 0].astype(f32), (1, 2, 0)))
    bd = jnp.zeros((3, Dp), f32)
    for di, b in enumerate((b_a2, b_a3, b_a4)):
        bd = bd.at[di, :D].set(b.astype(f32))

    wo = jnp.zeros((5 * Dp, Dp), f32)
    w_out2d = w_out[:, :, 0, 0].astype(f32)                           # (D, 5*D)
    for j in range(5):
        wo = wo.at[j * Dp:j * Dp + D, :D].set(w_out2d[:, j * D:(j + 1) * D].T)
    wo = wo.astype(bf16)
    bo = jnp.zeros((1, Dp), f32).at[0, :D].set(b_out.astype(f32))

    # ---- VMEM budget: size the limit to the actual footprint (review). ----
    xtile_b = THH * Wp2 * Cp * 2
    out_b = TH * W * Dp * 4
    w_b = (Cp * Dp + Cp * 2 * Dp + 5 * Dp * Dp) * 2 + (27 + 3 + 2 + 1) * Dp * 4
    xe_b = THH * Wp2 * Dp * 4
    temps_b = 2 * THH * Wp2 * Dp * 4 + 4 * TH * W * Dp * 4
    vmem_est = 2 * (xtile_b + out_b + w_b) + xe_b + temps_b
    vmem_limit = min(max(32 * 1024 * 1024, 2 * vmem_est), 100 * 1024 * 1024)

    grid = (N, HT)
    out_nhwc = pl.pallas_call(
        _aspp_kernel,
        out_shape=jax.ShapeDtypeStruct((N, H, W, Dp), f32),
        grid_spec=pltpu.PrefetchScalarGridSpec(
            num_scalar_prefetch=0,
            grid=grid,
            in_specs=[
                pl.BlockSpec((1, THH, Wp2, Cp), lambda n, h: (n * HT + h, 0, 0, 0)),
                pl.BlockSpec((Cp, Dp), lambda n, h: (0, 0)),
                pl.BlockSpec((Cp, 2 * Dp), lambda n, h: (0, 0)),
                pl.BlockSpec((3, 3, 3, Dp), lambda n, h: (0, 0, 0, 0)),
                pl.BlockSpec((3, Dp), lambda n, h: (0, 0)),
                pl.BlockSpec((1, 2 * Dp), lambda n, h: (0, 0)),
                pl.BlockSpec((5 * Dp, Dp), lambda n, h: (0, 0)),
                pl.BlockSpec((1, Dp), lambda n, h: (0, 0)),
            ],
            out_specs=pl.BlockSpec((1, TH, W, Dp), lambda n, h: (n, h, 0, 0)),
            scratch_shapes=[pltpu.VMEM((THH * Wp2, Dp), jnp.float32)],
        ),
        compiler_params=pltpu.CompilerParams(
            dimension_semantics=("parallel", "parallel"),
            vmem_limit_bytes=vmem_limit,
        ),
    )(x_tiles, e_mat, wc, wt, bd, b01, wo, bo)

    # TODO(synk): when D << 128 the kernel still stores Dp lanes and this
    # crop+transpose is an extra HBM pass; keep NHWC at the consumer (or
    # lane-pack W*D) if that matters for the production shape.
    return jnp.transpose(out_nhwc[..., :D], (0, 3, 1, 2)).astype(x.dtype)


def aspp_reference(x, params):
    """Plain-JAX reference identical to the PyTorch ASPP forward."""
    (w_pw, b_pw, w_a1, b_a1, w_a2, b_a2,
     w_a3, b_a3, w_a4, b_a4, w_out, b_out) = params
    Cin = x.shape[1]

    def conv(inp, w, b, *, dilation=1, padding=0, groups=1):
        y = jax.lax.conv_general_dilated(
            inp, w, window_strides=(1, 1),
            padding=((padding, padding), (padding, padding)),
            rhs_dilation=(dilation, dilation),
            dimension_numbers=("NCHW", "OIHW", "NCHW"),
            feature_group_count=groups)
        return y + b.reshape(1, -1, 1, 1)

    relu = lambda t: jnp.maximum(t, 0.0)
    f0 = relu(conv(x, w_pw, b_pw))
    f1 = relu(conv(x, w_a1, b_a1))
    f2 = relu(conv(x, w_a2, b_a2, dilation=2, padding=2, groups=Cin))
    f3 = relu(conv(x, w_a3, b_a3, dilation=3, padding=3, groups=Cin))
    f4 = relu(conv(x, w_a4, b_a4, dilation=4, padding=4, groups=Cin))
    cat = jnp.concatenate([f0, f1, f2, f3, f4], axis=1)
    return relu(conv(cat, w_out, b_out))


if __name__ == "__main__":
    key = jax.random.PRNGKey(0)
    keys = jax.random.split(key, 13)

    N, Cin, H, W = 2, 4, 16, 16
    D = 8                                    # depth; groups=Cin needs D % Cin == 0

    def u(k, shape, fan_in):
        bound = 1.0 / (fan_in ** 0.5)
        return jax.random.uniform(k, shape, jnp.float32, -bound, bound)

    x = jax.random.normal(keys[0], (N, Cin, H, W), dtype=jnp.float32)

    w_pw, b_pw = u(keys[1], (D, Cin, 1, 1), Cin), u(keys[2], (D,), Cin)
    w_a1, b_a1 = u(keys[3], (D, Cin, 1, 1), Cin), u(keys[4], (D,), Cin)
    w_a2, b_a2 = u(keys[5], (D, 1, 3, 3), 9), u(keys[6], (D,), 9)
    w_a3, b_a3 = u(keys[7], (D, 1, 3, 3), 9), u(keys[8], (D,), 9)
    w_a4, b_a4 = u(keys[9], (D, 1, 3, 3), 9), u(keys[10], (D,), 9)
    w_out, b_out = u(keys[11], (D, 5 * D, 1, 1), 5 * D), u(keys[12], (D,), 5 * D)

    params = (w_pw, b_pw, w_a1, b_a1, w_a2, b_a2,
              w_a3, b_a3, w_a4, b_a4, w_out, b_out)

    ref = aspp_reference(x, params)

    # multi-H-tile path (exercises the halo windows across tile boundaries)
    out = jax.jit(lambda xx, pp: aspp_pallas(xx, pp, tile_h=8))(x, params)
    jax.block_until_ready(out)
    assert out.shape == (N, D, H, W)
    err = float(jnp.max(jnp.abs(out - ref)))
    # bf16 MXU operands -> looser tolerance than a pure-f32 kernel.
    assert jnp.allclose(out, ref, atol=5e-2, rtol=5e-2), f"max abs err {err}"

    # default tile-size path (single H tile at this toy size)
    out2 = jax.jit(aspp_pallas)(x, params)
    jax.block_until_ready(out2)
    err2 = float(jnp.max(jnp.abs(out2 - ref)))
    assert jnp.allclose(out2, ref, atol=5e-2, rtol=5e-2), f"max abs err {err2}"

    print("KERNEL_OK")
</pallas_src>

<mosaic_0001>
module attributes {stable_mosaic.version = 11 : i64} {
  func.func @_aspp_kernel(%arg0: i32, %arg1: i32, %arg2: memref<1x16x32x128xbf16, #tpu.memory_space<vmem>>, %arg3: memref<128x128xbf16, #tpu.memory_space<vmem>>, %arg4: memref<128x256xbf16, #tpu.memory_space<vmem>>, %arg5: memref<3x3x3x128xf32, #tpu.memory_space<vmem>>, %arg6: memref<3x128xf32, #tpu.memory_space<vmem>>, %arg7: memref<1x256xf32, #tpu.memory_space<vmem>>, %arg8: memref<640x128xbf16, #tpu.memory_space<vmem>>, %arg9: memref<1x128xf32, #tpu.memory_space<vmem>>, %arg10: memref<1x8x16x128xf32, #tpu.memory_space<vmem>>, %arg11: memref<512x128xf32, #tpu.memory_space<vmem>>) attributes {dimension_semantics = [#tpu.dimension_semantics<parallel>, #tpu.dimension_semantics<parallel>], iteration_bounds = array<i64: 2, 2>, scalar_prefetch = 0 : i64, scratch_operands = 1 : i64, tpu.core_type = #tpu.core_type<tc>, window_params = [{transform_indices = @transform_0, window_bounds = array<i64: 1, 16, 32, 128>}, {pipeline_mode = #tpu.pipeline_mode<synchronous>, transform_indices = @transform_1, window_bounds = array<i64: 128, 128>}, {pipeline_mode = #tpu.pipeline_mode<synchronous>, transform_indices = @transform_2, window_bounds = array<i64: 128, 256>}, {pipeline_mode = #tpu.pipeline_mode<synchronous>, transform_indices = @transform_3, window_bounds = array<i64: 3, 3, 3, 128>}, {pipeline_mode = #tpu.pipeline_mode<synchronous>, transform_indices = @transform_4, window_bounds = array<i64: 3, 128>}, {pipeline_mode = #tpu.pipeline_mode<synchronous>, transform_indices = @transform_5, window_bounds = array<i64: 1, 256>}, {pipeline_mode = #tpu.pipeline_mode<synchronous>, transform_indices = @transform_6, window_bounds = array<i64: 640, 128>}, {pipeline_mode = #tpu.pipeline_mode<synchronous>, transform_indices = @transform_7, window_bounds = array<i64: 1, 128>}, {transform_indices = @transform_8, window_bounds = array<i64: 1, 8, 16, 128>}]} {
    %c0 = arith.constant 0 : index
    %c0_0 = arith.constant 0 : index
    %c0_1 = arith.constant 0 : index
    %c0_2 = arith.constant 0 : index
    %0 = vector.load %arg2[%c0, %c0_0, %c0_1, %c0_2] : memref<1x16x32x128xbf16, #tpu.memory_space<vmem>>, vector<1x16x32x128xbf16>
    %1 = vector.shape_cast %0 : vector<1x16x32x128xbf16> to vector<16x32x128xbf16>
    %2 = vector.shape_cast %1 : vector<16x32x128xbf16> to vector<512x128xbf16>
    %c0_3 = arith.constant 0 : index
    %c0_4 = arith.constant 0 : index
    %3 = vector.load %arg3[%c0_3, %c0_4] : memref<128x128xbf16, #tpu.memory_space<vmem>>, vector<128x128xbf16>
    %cst = arith.constant dense<0.000000e+00> : vector<512x128xf32>
    %4 = tpu.matmul %2, %3, %cst {dimension_numbers = #tpu.dot_dimension_numbers<[1], [0], [0], [1], [0, 0, 1, 1], [], []>} : vector<512x128xbf16>, vector<128x128xbf16>, vector<512x128xf32> -> vector<512x128xf32>
    %c0_5 = arith.constant 0 : index
    %c0_6 = arith.constant 0 : index
    %5 = vector.load %arg11[%c0_5, %c0_6] : memref<512x128xf32, #tpu.memory_space<vmem>>, vector<512x128xf32>
    tpu.vector_store %arg11[%c0_5, %c0_6], %4 {strides = array<i32>} : memref<512x128xf32, #tpu.memory_space<vmem>>, vector<512x128xf32>,
    %c0_7 = arith.constant 0 : index
    %c4 = arith.constant 4 : index
    %c8 = arith.constant 8 : index
    %c0_8 = arith.constant 0 : index
    %6 = vector.load %arg2[%c0_7, %c4, %c8, %c0_8] : memref<1x16x32x128xbf16, #tpu.memory_space<vmem>>, vector<1x8x16x128xbf16>
    %7 = vector.shape_cast %6 : vector<1x8x16x128xbf16> to vector<8x16x128xbf16>
    %8 = vector.shape_cast %7 : vector<8x16x128xbf16> to vector<128x128xbf16>
    %c0_9 = arith.constant 0 : index
    %c0_10 = arith.constant 0 : index
    %9 = vector.load %arg4[%c0_9, %c0_10] : memref<128x256xbf16, #tpu.memory_space<vmem>>, vector<128x256xbf16>
    %cst_11 = arith.constant dense<0.000000e+00> : vector<128x256xf32>
    %10 = tpu.matmul %8, %9, %cst_11 {dimension_numbers = #tpu.dot_dimension_numbers<[1], [0], [0], [1], [0, 0, 1, 1], [], []>} : vector<128x128xbf16>, vector<128x256xbf16>, vector<128x256xf32> -> vector<128x256xf32>
    %c0_12 = arith.constant 0 : index
    %c0_13 = arith.constant 0 : index
    %11 = vector.load %arg7[%c0_12, %c0_13] : memref<1x256xf32, #tpu.memory_space<vmem>>, vector<1x256xf32>
    %12 = vector.broadcast %11 : vector<1x256xf32> to vector<128x256xf32>
    %13 = arith.addf %10, %12 : vector<128x256xf32>
    %cst_14 = arith.constant 0.000000e+00 : f32
    %14 = vector.broadcast %cst_14 : f32 to vector<128x256xf32>
    %15 = arith.maximumf %13, %14 : vector<128x256xf32>
    %16 = vector.extract_strided_slice %15 {offsets = [0, 0], sizes = [128, 128], strides = [1, 1]} : vector<128x256xf32> to vector<128x128xf32>
    %17 = arith.truncf %16 : vector<128x128xf32> to vector<128x128xbf16>
    %c0_15 = arith.constant 0 : index
    %c0_16 = arith.constant 0 : index
    %18 = vector.load %arg8[%c0_15, %c0_16] : memref<640x128xbf16, #tpu.memory_space<vmem>>, vector<128x128xbf16>
    %cst_17 = arith.constant dense<0.000000e+00> : vector<128x128xf32>
    %19 = tpu.matmul %17, %18, %cst_17 {dimension_numbers = #tpu.dot_dimension_numbers<[1], [0], [0], [1], [0, 0, 1, 1], [], []>} : vector<128x128xbf16>, vector<128x128xbf16>, vector<128x128xf32> -> vector<128x128xf32>
    %20 = vector.extract_strided_slice %15 {offsets = [0, 128], sizes = [128, 128], strides = [1, 1]} : vector<128x256xf32> to vector<128x128xf32>
    %21 = arith.truncf %20 : vector<128x128xf32> to vector<128x128xbf16>
    %c128 = arith.constant 128 : index
    %c0_18 = arith.constant 0 : index
    %22 = vector.load %arg8[%c128, %c0_18] : memref<640x128xbf16, #tpu.memory_space<vmem>>, vector<128x128xbf16>
    %cst_19 = arith.constant dense<0.000000e+00> : vector<128x128xf32>
    %23 = tpu.matmul %21, %22, %cst_19 {dimension_numbers = #tpu.dot_dimension_numbers<[1], [0], [0], [1], [0, 0, 1, 1], [], []>} : vector<128x128xbf16>, vector<128x128xbf16>, vector<128x128xf32> -> vector<128x128xf32>
    %24 = arith.addf %19, %23 : vector<128x128xf32>
    %c64 = arith.constant 64 : index
    %c0_20 = arith.constant 0 : index
    %25 = vector.load %arg11[%c64, %c0_20] : memref<512x128xf32, #tpu.memory_space<vmem>>, vector<384x128xf32>
    %cst_21 = arith.constant 0.000000e+00 : f32
    %26 = vector.broadcast %cst_21 : f32 to vector<128x128xf32>
    %27 = vector.shape_cast %25 : vector<384x128xf32> to vector<12x32x128xf32>
    %28 = vector.extract_strided_slice %27 {offsets = [0, 8, 0], sizes = [8, 16, 128], strides = [1, 1, 1]} : vector<12x32x128xf32> to vector<8x16x128xf32>
    %29 = vector.shape_cast %28 : vector<8x16x128xf32> to vector<128x128xf32>
    %c0_22 = arith.constant 0 : index
    %c0_23 = arith.constant 0 : index
    %c1 = arith.constant 1 : index
    %c0_24 = arith.constant 0 : index
    %30 = vector.load %arg5[%c0_22, %c0_23, %c1, %c0_24] : memref<3x3x3x128xf32, #tpu.memory_space<vmem>>, vector<1x1x1x128xf32>
    %31 = vector.shape_cast %30 : vector<1x1x1x128xf32> to vector<1x128xf32>
    %32 = vector.broadcast %31 : vector<1x128xf32> to vector<128x128xf32>
    %33 = arith.mulf %29, %32 : vector<128x128xf32>
    %34 = arith.addf %26, %33 : vector<128x128xf32>
    %35 = vector.shape_cast %25 : vector<384x128xf32> to vector<12x32x128xf32>
    %36 = vector.extract_strided_slice %35 {offsets = [2, 8, 0], sizes = [8, 16, 128], strides = [1, 1, 1]} : vector<12x32x128xf32> to vector<8x16x128xf32>
    %37 = vector.shape_cast %36 : vector<8x16x128xf32> to vector<128x128xf32>
    %c0_25 = arith.constant 0 : index
    %c1_26 = arith.constant 1 : index
    %c1_27 = arith.constant 1 : index
    %c0_28 = arith.constant 0 : index
    %38 = vector.load %arg5[%c0_25, %c1_26, %c1_27, %c0_28] : memref<3x3x3x128xf32, #tpu.memory_space<vmem>>, vector<1x1x1x128xf32>
    %39 = vector.shape_cast %38 : vector<1x1x1x128xf32> to vector<1x128xf32>
    %40 = vector.broadcast %39 : vector<1x128xf32> to vector<128x128xf32>
    %41 = arith.mulf %37, %40 : vector<128x128xf32>
    %42 = arith.addf %34, %41 : vector<128x128xf32>
    %43 = vector.shape_cast %25 : vector<384x128xf32> to vector<12x32x128xf32>
    %44 = vector.extract_strided_slice %43 {offsets = [4, 8, 0], sizes = [8, 16, 128], strides = [1, 1, 1]} : vector<12x32x128xf32> to vector<8x16x128xf32>
    %45 = vector.shape_cast %44 : vector<8x16x128xf32> to vector<128x128xf32>
    %c0_29 = arith.constant 0 : index
    %c2 = arith.constant 2 : index
    %c1_30 = arith.constant 1 : index
    %c0_31 = arith.constant 0 : index
    %46 = vector.load %arg5[%c0_29, %c2, %c1_30, %c0_31] : memref<3x3x3x128xf32, #tpu.memory_space<vmem>>, vector<1x1x1x128xf32>
    %47 = vector.shape_cast %46 : vector<1x1x1x128xf32> to vector<1x128xf32>
    %48 = vector.broadcast %47 : vector<1x128xf32> to vector<128x128xf32>
    %49 = arith.mulf %45, %48 : vector<128x128xf32>
    %50 = arith.addf %42, %49 : vector<128x128xf32>
    %c2_i32 = arith.constant 2 : i32
    %51 = tpu.dynamic_rotate %25 by %c2_i32 dim 0 : vector<384x128xf32>, i32 -> vector<384x128xf32>
    %52 = vector.shape_cast %51 : vector<384x128xf32> to vector<12x32x128xf32>
    %53 = vector.extract_strided_slice %52 {offsets = [0, 8, 0], sizes = [8, 16, 128], strides = [1, 1, 1]} : vector<12x32x128xf32> to vector<8x16x128xf32>
    %54 = vector.shape_cast %53 : vector<8x16x128xf32> to vector<128x128xf32>
    %c0_32 = arith.constant 0 : index
    %c0_33 = arith.constant 0 : index
    %c0_34 = arith.constant 0 : index
    %c0_35 = arith.constant 0 : index
    %55 = vector.load %arg5[%c0_32, %c0_33, %c0_34, %c0_35] : memref<3x3x3x128xf32, #tpu.memory_space<vmem>>, vector<1x1x1x128xf32>
    %56 = vector.shape_cast %55 : vector<1x1x1x128xf32> to vector<1x128xf32>
    %57 = vector.broadcast %56 : vector<1x128xf32> to vector<128x128xf32>
    %58 = arith.mulf %54, %57 : vector<128x128xf32>
    %59 = arith.addf %50, %58 : vector<128x128xf32>
    %60 = vector.shape_cast %51 : vector<384x128xf32> to vector<12x32x128xf32>
    %61 = vector.extract_strided_slice %60 {offsets = [2, 8, 0], sizes = [8, 16, 128], strides = [1, 1, 1]} : vector<12x32x128xf32> to vector<8x16x128xf32>
    %62 = vector.shape_cast %61 : vector<8x16x128xf32> to vector<128x128xf32>
    %c0_36 = arith.constant 0 : index
    %c1_37 = arith.constant 1 : index
    %c0_38 = arith.constant 0 : index
    %c0_39 = arith.constant 0 : index
    %63 = vector.load %arg5[%c0_36, %c1_37, %c0_38, %c0_39] : memref<3x3x3x128xf32, #tpu.memory_space<vmem>>, vector<1x1x1x128xf32>
    %64 = vector.shape_cast %63 : vector<1x1x1x128xf32> to vector<1x128xf32>
    %65 = vector.broadcast %64 : vector<1x128xf32> to vector<128x128xf32>
    %66 = arith.mulf %62, %65 : vector<128x128xf32>
    %67 = arith.addf %59, %66 : vector<128x128xf32>
    %68 = vector.shape_cast %51 : vector<384x128xf32> to vector<12x32x128xf32>
    %69 = vector.extract_strided_slice %68 {offsets = [4, 8, 0], sizes = [8, 16, 128], strides = [1, 1, 1]} : vector<12x32x128xf32> to vector<8x16x128xf32>
    %70 = vector.shape_cast %69 : vector<8x16x128xf32> to vector<128x128xf32>
    %c0_40 = arith.constant 0 : index
    %c2_41 = arith.constant 2 : index
    %c0_42 = arith.constant 0 : index
    %c0_43 = arith.constant 0 : index
    %71 = vector.load %arg5[%c0_40, %c2_41, %c0_42, %c0_43] : memref<3x3x3x128xf32, #tpu.memory_space<vmem>>, vector<1x1x1x128xf32>
    %72 = vector.shape_cast %71 : vector<1x1x1x128xf32> to vector<1x128xf32>
    %73 = vector.broadcast %72 : vector<1x128xf32> to vector<128x128xf32>
    %74 = arith.mulf %70, %73 : vector<128x128xf32>
    %75 = arith.addf %67, %74 : vector<128x128xf32>
    %c382_i32 = arith.constant 382 : i32
    %76 = tpu.dynamic_rotate %25 by %c382_i32 dim 0 : vector<384x128xf32>, i32 -> vector<384x128xf32>
    %77 = vector.shape_cast %76 : vector<384x128xf32> to vector<12x32x128xf32>
    %78 = vector.extract_strided_slice %77 {offsets = [0, 8, 0], sizes = [8, 16, 128], strides = [1, 1, 1]} : vector<12x32x128xf32> to vector<8x16x128xf32>
    %79 = vector.shape_cast %78 : vector<8x16x128xf32> to vector<128x128xf32>
    %c0_44 = arith.constant 0 : index
    %c0_45 = arith.constant 0 : index
    %c2_46 = arith.constant 2 : index
    %c0_47 = arith.constant 0 : index
    %80 = vector.load %arg5[%c0_44, %c0_45, %c2_46, %c0_47] : memref<3x3x3x128xf32, #tpu.memory_space<vmem>>, vector<1x1x1x128xf32>
    %81 = vector.shape_cast %80 : vector<1x1x1x128xf32> to vector<1x128xf32>
    %82 = vector.broadcast %81 : vector<1x128xf32> to vector<128x128xf32>
    %83 = arith.mulf %79, %82 : vector<128x128xf32>
    %84 = arith.addf %75, %83 : vector<128x128xf32>
    %85 = vector.shape_cast %76 : vector<384x128xf32> to vector<12x32x128xf32>
    %86 = vector.extract_strided_slice %85 {offsets = [2, 8, 0], sizes = [8, 16, 128], strides = [1, 1, 1]} : vector<12x32x128xf32> to vector<8x16x128xf32>
    %87 = vector.shape_cast %86 : vector<8x16x128xf32> to vector<128x128xf32>
    %c0_48 = arith.constant 0 : index
    %c1_49 = arith.constant 1 : index
    %c2_50 = arith.constant 2 : index
    %c0_51 = arith.constant 0 : index
    %88 = vector.load %arg5[%c0_48, %c1_49, %c2_50, %c0_51] : memref<3x3x3x128xf32, #tpu.memory_space<vmem>>, vector<1x1x1x128xf32>
    %89 = vector.shape_cast %88 : vector<1x1x1x128xf32> to vector<1x128xf32>
    %90 = vector.broadcast %89 : vector<1x128xf32> to vector<128x128xf32>
    %91 = arith.mulf %87, %90 : vector<128x128xf32>
    %92 = arith.addf %84, %91 : vector<128x128xf32>
    %93 = vector.shape_cast %76 : vector<384x128xf32> to vector<12x32x128xf32>
    %94 = vector.extract_strided_slice %93 {offsets = [4, 8, 0], sizes = [8, 16, 128], strides = [1, 1, 1]} : vector<12x32x128xf32> to vector<8x16x128xf32>
    %95 = vector.shape_cast %94 : vector<8x16x128xf32> to vector<128x128xf32>
    %c0_52 = arith.constant 0 : index
    %c2_53 = arith.constant 2 : index
    %c2_54 = arith.constant 2 : index
    %c0_55 = arith.constant 0 : index
    %96 = vector.load %arg5[%c0_52, %c2_53, %c2_54, %c0_55] : memref<3x3x3x128xf32, #tpu.memory_space<vmem>>, vector<1x1x1x128xf32>
    %97 = vector.shape_cast %96 : vector<1x1x1x128xf32> to vector<1x128xf32>
    %98 = vector.broadcast %97 : vector<1x128xf32> to vector<128x128xf32>
    %99 = arith.mulf %95, %98 : vector<128x128xf32>
    %100 = arith.addf %92, %99 : vector<128x128xf32>
    %c0_56 = arith.constant 0 : index
    %c0_57 = arith.constant 0 : index
    %101 = vector.load %arg6[%c0_56, %c0_57] : memref<3x128xf32, #tpu.memory_space<vmem>>, vector<1x128xf32>
    %102 = vector.broadcast %101 : vector<1x128xf32> to vector<128x128xf32>
    %103 = arith.addf %100, %102 : vector<128x128xf32>
    %cst_58 = arith.constant 0.000000e+00 : f32
    %104 = vector.broadcast %cst_58 : f32 to vector<128x128xf32>
    %105 = arith.maximumf %103, %104 : vector<128x128xf32>
    %106 = arith.truncf %105 : vector<128x128xf32> to vector<128x128xbf16>
    %c256 = arith.constant 256 : index
    %c0_59 = arith.constant 0 : index
    %107 = vector.load %arg8[%c256, %c0_59] : memref<640x128xbf16, #tpu.memory_space<vmem>>, vector<128x128xbf16>
    %cst_60 = arith.constant dense<0.000000e+00> : vector<128x128xf32>
    %108 = tpu.matmul %106, %107, %cst_60 {dimension_numbers = #tpu.dot_dimension_numbers<[1], [0], [0], [1], [0, 0, 1, 1], [], []>} : vector<128x128xbf16>, vector<128x128xbf16>, vector<128x128xf32> -> vector<128x128xf32>
    %109 = arith.addf %24, %108 : vector<128x128xf32>
    %c32 = arith.constant 32 : index
    %c0_61 = arith.constant 0 : index
    %110 = vector.load %arg11[%c32, %c0_61] : memref<512x128xf32, #tpu.memory_space<vmem>>, vector<448x128xf32>
    %cst_62 = arith.constant 0.000000e+00 : f32
    %111 = vector.broadcast %cst_62 : f32 to vector<128x128xf32>
    %112 = vector.shape_cast %110 : vector<448x128xf32> to vector<14x32x128xf32>
    %113 = vector.extract_strided_slice %112 {offsets = [0, 8, 0], sizes = [8, 16, 128], strides = [1, 1, 1]} : vector<14x32x128xf32> to vector<8x16x128xf32>
    %114 = vector.shape_cast %113 : vector<8x16x128xf32> to vector<128x128xf32>
    %c1_63 = arith.constant 1 : index
    %c0_64 = arith.constant 0 : index
    %c1_65 = arith.constant 1 : index
    %c0_66 = arith.constant 0 : index
    %115 = vector.load %arg5[%c1_63, %c0_64, %c1_65, %c0_66] : memref<3x3x3x128xf32, #tpu.memory_space<vmem>>, vector<1x1x1x128xf32>
    %116 = vector.shape_cast %115 : vector<1x1x1x128xf32> to vector<1x128xf32>
    %117 = vector.broadcast %116 : vector<1x128xf32> to vector<128x128xf32>
    %118 = arith.mulf %114, %117 : vector<128x128xf32>
    %119 = arith.addf %111, %118 : vector<128x128xf32>
    %120 = vector.shape_cast %110 : vector<448x128xf32> to vector<14x32x128xf32>
    %121 = vector.extract_strided_slice %120 {offsets = [3, 8, 0], sizes = [8, 16, 128], strides = [1, 1, 1]} : vector<14x32x128xf32> to vector<8x16x128xf32>
    %122 = vector.shape_cast %121 : vector<8x16x128xf32> to vector<128x128xf32>
    %c1_67 = arith.constant 1 : index
    %c1_68 = arith.constant 1 : index
    %c1_69 = arith.constant 1 : index
    %c0_70 = arith.constant 0 : index
    %123 = vector.load %arg5[%c1_67, %c1_68, %c1_69, %c0_70] : memref<3x3x3x128xf32, #tpu.memory_space<vmem>>, vector<1x1x1x128xf32>
    %124 = vector.shape_cast %123 : vector<1x1x1x128xf32> to vector<1x128xf32>
    %125 = vector.broadcast %124 : vector<1x128xf32> to vector<128x128xf32>
    %126 = arith.mulf %122, %125 : vector<128x128xf32>
    %127 = arith.addf %119, %126 : vector<128x128xf32>
    %128 = vector.shape_cast %110 : vector<448x128xf32> to vector<14x32x128xf32>
    %129 = vector.extract_strided_slice %128 {offsets = [6, 8, 0], sizes = [8, 16, 128], strides = [1, 1, 1]} : vector<14x32x128xf32> to vector<8x16x128xf32>
    %130 = vector.shape_cast %129 : vector<8x16x128xf32> to vector<128x128xf32>
    %c1_71 = arith.constant 1 : index
    %c2_72 = arith.constant 2 : index
    %c1_73 = arith.constant 1 : index
    %c0_74 = arith.constant 0 : index
    %131 = vector.load %arg5[%c1_71, %c2_72, %c1_73, %c0_74] : memref<3x3x3x128xf32, #tpu.memory_space<vmem>>, vector<1x1x1x128xf32>
    %132 = vector.shape_cast %131 : vector<1x1x1x128xf32> to vector<1x128xf32>
    %133 = vector.broadcast %132 : vector<1x128xf32> to vector<128x128xf32>
    %134 = arith.mulf %130, %133 : vector<128x128xf32>
    %135 = arith.addf %127, %134 : vector<128x128xf32>
    %c3_i32 = arith.constant 3 : i32
    %136 = tpu.dynamic_rotate %110 by %c3_i32 dim 0 : vector<448x128xf32>, i32 -> vector<448x128xf32>
    %137 = vector.shape_cast %136 : vector<448x128xf32> to vector<14x32x128xf32>
    %138 = vector.extract_strided_slice %137 {offsets = [0, 8, 0], sizes = [8, 16, 128], strides = [1, 1, 1]} : vector<14x32x128xf32> to vector<8x16x128xf32>
    %139 = vector.shape_cast %138 : vector<8x16x128xf32> to vector<128x128xf32>
    %c1_75 = arith.constant 1 : index
    %c0_76 = arith.constant 0 : index
    %c0_77 = arith.constant 0 : index
    %c0_78 = arith.constant 0 : index
    %140 = vector.load %arg5[%c1_75, %c0_76, %c0_77, %c0_78] : memref<3x3x3x128xf32, #tpu.memory_space<vmem>>, vector<1x1x1x128xf32>
    %141 = vector.shape_cast %140 : vector<1x1x1x128xf32> to vector<1x128xf32>
    %142 = vector.broadcast %141 : vector<1x128xf32> to vector<128x128xf32>
    %143 = arith.mulf %139, %142 : vector<128x128xf32>
    %144 = arith.addf %135, %143 : vector<128x128xf32>
    %145 = vector.shape_cast %136 : vector<448x128xf32> to vector<14x32x128xf32>
    %146 = vector.extract_strided_slice %145 {offsets = [3, 8, 0], sizes = [8, 16, 128], strides = [1, 1, 1]} : vector<14x32x128xf32> to vector<8x16x128xf32>
    %147 = vector.shape_cast %146 : vector<8x16x128xf32> to vector<128x128xf32>
    %c1_79 = arith.constant 1 : index
    %c1_80 = arith.constant 1 : index
    %c0_81 = arith.constant 0 : index
    %c0_82 = arith.constant 0 : index
    %148 = vector.load %arg5[%c1_79, %c1_80, %c0_81, %c0_82] : memref<3x3x3x128xf32, #tpu.memory_space<vmem>>, vector<1x1x1x128xf32>
    %149 = vector.shape_cast %148 : vector<1x1x1x128xf32> to vector<1x128xf32>
    %150 = vector.broadcast %149 : vector<1x128xf32> to vector<128x128xf32>
    %151 = arith.mulf %147, %150 : vector<128x128xf32>
    %152 = arith.addf %144, %151 : vector<128x128xf32>
    %153 = vector.shape_cast %136 : vector<448x128xf32> to vector<14x32x128xf32>
    %154 = vector.extract_strided_slice %153 {offsets = [6, 8, 0], sizes = [8, 16, 128], strides = [1, 1, 1]} : vector<14x32x128xf32> to vector<8x16x128xf32>
    %155 = vector.shape_cast %154 : vector<8x16x128xf32> to vector<128x128xf32>
    %c1_83 = arith.constant 1 : index
    %c2_84 = arith.constant 2 : index
    %c0_85 = arith.constant 0 : index
    %c0_86 = arith.constant 0 : index
    %156 = vector.load %arg5[%c1_83, %c2_84, %c0_85, %c0_86] : memref<3x3x3x128xf32, #tpu.memory_space<vmem>>, vector<1x1x1x128xf32>
    %157 = vector.shape_cast %156 : vector<1x1x1x128xf32> to vector<1x128xf32>
    %158 = vector.broadcast %157 : vector<1x128xf32> to vector<128x128xf32>
    %159 = arith.mulf %155, %158 : vector<128x128xf32>
    %160 = arith.addf %152, %159 : vector<128x128xf32>
    %c445_i32 = arith.constant 445 : i32
    %161 = tpu.dynamic_rotate %110 by %c445_i32 dim 0 : vector<448x128xf32>, i32 -> vector<448x128xf32>
    %162 = vector.shape_cast %161 : vector<448x128xf32> to vector<14x32x128xf32>
    %163 = vector.extract_strided_slice %162 {offsets = [0, 8, 0], sizes = [8, 16, 128], strides = [1, 1, 1]} : vector<14x32x128xf32> to vector<8x16x128xf32>
    %164 = vector.shape_cast %163 : vector<8x16x128xf32> to vector<128x128xf32>
    %c1_87 = arith.constant 1 : index
    %c0_88 = arith.constant 0 : index
    %c2_89 = arith.constant 2 : index
    %c0_90 = arith.constant 0 : index
    %165 = vector.load %arg5[%c1_87, %c0_88, %c2_89, %c0_90] : memref<3x3x3x128xf32, #tpu.memory_space<vmem>>, vector<1x1x1x128xf32>
    %166 = vector.shape_cast %165 : vector<1x1x1x128xf32> to vector<1x128xf32>
    %167 = vector.broadcast %166 : vector<1x128xf32> to vector<128x128xf32>
    %168 = arith.mulf %164, %167 : vector<128x128xf32>
    %169 = arith.addf %160, %168 : vector<128x128xf32>
    %170 = vector.shape_cast %161 : vector<448x128xf32> to vector<14x32x128xf32>
    %171 = vector.extract_strided_slice %170 {offsets = [3, 8, 0], sizes = [8, 16, 128], strides = [1, 1, 1]} : vector<14x32x128xf32> to vector<8x16x128xf32>
    %172 = vector.shape_cast %171 : vector<8x16x128xf32> to vector<128x128xf32>
    %c1_91 = arith.constant 1 : index
    %c1_92 = arith.constant 1 : index
    %c2_93 = arith.constant 2 : index
    %c0_94 = arith.constant 0 : index
    %173 = vector.load %arg5[%c1_91, %c1_92, %c2_93, %c0_94] : memref<3x3x3x128xf32, #tpu.memory_space<vmem>>, vector<1x1x1x128xf32>
    %174 = vector.shape_cast %173 : vector<1x1x1x128xf32> to vector<1x128xf32>
    %175 = vector.broadcast %174 : vector<1x128xf32> to vector<128x128xf32>
    %176 = arith.mulf %172, %175 : vector<128x128xf32>
    %177 = arith.addf %169, %176 : vector<128x128xf32>
    %178 = vector.shape_cast %161 : vector<448x128xf32> to vector<14x32x128xf32>
    %179 = vector.extract_strided_slice %178 {offsets = [6, 8, 0], sizes = [8, 16, 128], strides = [1, 1, 1]} : vector<14x32x128xf32> to vector<8x16x128xf32>
    %180 = vector.shape_cast %179 : vector<8x16x128xf32> to vector<128x128xf32>
    %c1_95 = arith.constant 1 : index
    %c2_96 = arith.constant 2 : index
    %c2_97 = arith.constant 2 : index
    %c0_98 = arith.constant 0 : index
    %181 = vector.load %arg5[%c1_95, %c2_96, %c2_97, %c0_98] : memref<3x3x3x128xf32, #tpu.memory_space<vmem>>, vector<1x1x1x128xf32>
    %182 = vector.shape_cast %181 : vector<1x1x1x128xf32> to vector<1x128xf32>
    %183 = vector.broadcast %182 : vector<1x128xf32> to vector<128x128xf32>
    %184 = arith.mulf %180, %183 : vector<128x128xf32>
    %185 = arith.addf %177, %184 : vector<128x128xf32>
    %c1_99 = arith.constant 1 : index
    %c0_100 = arith.constant 0 : index
    %186 = vector.load %arg6[%c1_99, %c0_100] : memref<3x128xf32, #tpu.memory_space<vmem>>, vector<1x128xf32>
    %187 = vector.broadcast %186 : vector<1x128xf32> to vector<128x128xf32>
    %188 = arith.addf %185, %187 : vector<128x128xf32>
    %cst_101 = arith.constant 0.000000e+00 : f32
    %189 = vector.broadcast %cst_101 : f32 to vector<128x128xf32>
    %190 = arith.maximumf %188, %189 : vector<128x128xf32>
    %191 = arith.truncf %190 : vector<128x128xf32> to vector<128x128xbf16>
    %c384 = arith.constant 384 : index
    %c0_102 = arith.constant 0 : index
    %192 = vector.load %arg8[%c384, %c0_102] : memref<640x128xbf16, #tpu.memory_space<vmem>>, vector<128x128xbf16>
    %cst_103 = arith.constant dense<0.000000e+00> : vector<128x128xf32>
    %193 = tpu.matmul %191, %192, %cst_103 {dimension_numbers = #tpu.dot_dimension_numbers<[1], [0], [0], [1], [0, 0, 1, 1], [], []>} : vector<128x128xbf16>, vector<128x128xbf16>, vector<128x128xf32> -> vector<128x128xf32>
    %194 = arith.addf %109, %193 : vector<128x128xf32>
    %c0_104 = arith.constant 0 : index
    %c0_105 = arith.constant 0 : index
    %195 = vector.load %arg11[%c0_104, %c0_105] : memref<512x128xf32, #tpu.memory_space<vmem>>, vector<512x128xf32>
    %cst_106 = arith.constant 0.000000e+00 : f32
    %196 = vector.broadcast %cst_106 : f32 to vector<128x128xf32>
    %197 = vector.shape_cast %195 : vector<512x128xf32> to vector<16x32x128xf32>
    %198 = vector.extract_strided_slice %197 {offsets = [0, 8, 0], sizes = [8, 16, 128], strides = [1, 1, 1]} : vector<16x32x128xf32> to vector<8x16x128xf32>
    %199 = vector.shape_cast %198 : vector<8x16x128xf32> to vector<128x128xf32>
    %c2_107 = arith.constant 2 : index
    %c0_108 = arith.constant 0 : index
    %c1_109 = arith.constant 1 : index
    %c0_110 = arith.constant 0 : index
    %200 = vector.load %arg5[%c2_107, %c0_108, %c1_109, %c0_110] : memref<3x3x3x128xf32, #tpu.memory_space<vmem>>, vector<1x1x1x128xf32>
    %201 = vector.shape_cast %200 : vector<1x1x1x128xf32> to vector<1x128xf32>
    %202 = vector.broadcast %201 : vector<1x128xf32> to vector<128x128xf32>
    %203 = arith.mulf %199, %202 : vector<128x128xf32>
    %204 = arith.addf %196, %203 : vector<128x128xf32>
    %205 = vector.shape_cast %195 : vector<512x128xf32> to vector<16x32x128xf32>
    %206 = vector.extract_strided_slice %205 {offsets = [4, 8, 0], sizes = [8, 16, 128], strides = [1, 1, 1]} : vector<16x32x128xf32> to vector<8x16x128xf32>
    %207 = vector.shape_cast %206 : vector<8x16x128xf32> to vector<128x128xf32>
    %c2_111 = arith.constant 2 : index
    %c1_112 = arith.constant 1 : index
    %c1_113 = arith.constant 1 : index
    %c0_114 = arith.constant 0 : index
    %208 = vector.load %arg5[%c2_111, %c1_112, %c1_113, %c0_114] : memref<3x3x3x128xf32, #tpu.memory_space<vmem>>, vector<1x1x1x128xf32>
    %209 = vector.shape_cast %208 : vector<1x1x1x128xf32> to vector<1x128xf32>
    %210 = vector.broadcast %209 : vector<1x128xf32> to vector<128x128xf32>
    %211 = arith.mulf %207, %210 : vector<128x128xf32>
    %212 = arith.addf %204, %211 : vector<128x128xf32>
    %213 = vector.shape_cast %195 : vector<512x128xf32> to vector<16x32x128xf32>
    %214 = vector.extract_strided_slice %213 {offsets = [8, 8, 0], sizes = [8, 16, 128], strides = [1, 1, 1]} : vector<16x32x128xf32> to vector<8x16x128xf32>
    %215 = vector.shape_cast %214 : vector<8x16x128xf32> to vector<128x128xf32>
    %c2_115 = arith.constant 2 : index
    %c2_116 = arith.constant 2 : index
    %c1_117 = arith.constant 1 : index
    %c0_118 = arith.constant 0 : index
    %216 = vector.load %arg5[%c2_115, %c2_116, %c1_117, %c0_118] : memref<3x3x3x128xf32, #tpu.memory_space<vmem>>, vector<1x1x1x128xf32>
    %217 = vector.shape_cast %216 : vector<1x1x1x128xf32> to vector<1x128xf32>
    %218 = vector.broadcast %217 : vector<1x128xf32> to vector<128x128xf32>
    %219 = arith.mulf %215, %218 : vector<128x128xf32>
    %220 = arith.addf %212, %219 : vector<128x128xf32>
    %c4_i32 = arith.constant 4 : i32
    %221 = tpu.dynamic_rotate %195 by %c4_i32 dim 0 : vector<512x128xf32>, i32 -> vector<512x128xf32>
    %222 = vector.shape_cast %221 : vector<512x128xf32> to vector<16x32x128xf32>
    %223 = vector.extract_strided_slice %222 {offsets = [0, 8, 0], sizes = [8, 16, 128], strides = [1, 1, 1]} : vector<16x32x128xf32> to vector<8x16x128xf32>
    %224 = vector.shape_cast %223 : vector<8x16x128xf32> to vector<128x128xf32>
    %c2_119 = arith.constant 2 : index
    %c0_120 = arith.constant 0 : index
    %c0_121 = arith.constant 0 : index
    %c0_122 = arith.constant 0 : index
    %225 = vector.load %arg5[%c2_119, %c0_120, %c0_121, %c0_122] : memref<3x3x3x128xf32, #tpu.memory_space<vmem>>, vector<1x1x1x128xf32>
    %226 = vector.shape_cast %225 : vector<1x1x1x128xf32> to vector<1x128xf32>
    %227 = vector.broadcast %226 : vector<1x128xf32> to vector<128x128xf32>
    %228 = arith.mulf %224, %227 : vector<128x128xf32>
    %229 = arith.addf %220, %228 : vector<128x128xf32>
    %230 = vector.shape_cast %221 : vector<512x128xf32> to vector<16x32x128xf32>
    %231 = vector.extract_strided_slice %230 {offsets = [4, 8, 0], sizes = [8, 16, 128], strides = [1, 1, 1]} : vector<16x32x128xf32> to vector<8x16x128xf32>
    %232 = vector.shape_cast %231 : vector<8x16x128xf32> to vector<128x128xf32>
    %c2_123 = arith.constant 2 : index
    %c1_124 = arith.constant 1 : index
    %c0_125 = arith.constant 0 : index
    %c0_126 = arith.constant 0 : index
    %233 = vector.load %arg5[%c2_123, %c1_124, %c0_125, %c0_126] : memref<3x3x3x128xf32, #tpu.memory_space<vmem>>, vector<1x1x1x128xf32>
    %234 = vector.shape_cast %233 : vector<1x1x1x128xf32> to vector<1x128xf32>
    %235 = vector.broadcast %234 : vector<1x128xf32> to vector<128x128xf32>
    %236 = arith.mulf %232, %235 : vector<128x128xf32>
    %237 = arith.addf %229, %236 : vector<128x128xf32>
    %238 = vector.shape_cast %221 : vector<512x128xf32> to vector<16x32x128xf32>
    %239 = vector.extract_strided_slice %238 {offsets = [8, 8, 0], sizes = [8, 16, 128], strides = [1, 1, 1]} : vector<16x32x128xf32> to vector<8x16x128xf32>
    %240 = vector.shape_cast %239 : vector<8x16x128xf32> to vector<128x128xf32>
    %c2_127 = arith.constant 2 : index
    %c2_128 = arith.constant 2 : index
    %c0_129 = arith.constant 0 : index
    %c0_130 = arith.constant 0 : index
    %241 = vector.load %arg5[%c2_127, %c2_128, %c0_129, %c0_130] : memref<3x3x3x128xf32, #tpu.memory_space<vmem>>, vector<1x1x1x128xf32>
    %242 = vector.shape_cast %241 : vector<1x1x1x128xf32> to vector<1x128xf32>
    %243 = vector.broadcast %242 : vector<1x128xf32> to vector<128x128xf32>
    %244 = arith.mulf %240, %243 : vector<128x128xf32>
    %245 = arith.addf %237, %244 : vector<128x128xf32>
    %c508_i32 = arith.constant 508 : i32
    %246 = tpu.dynamic_rotate %195 by %c508_i32 dim 0 : vector<512x128xf32>, i32 -> vector<512x128xf32>
    %247 = vector.shape_cast %246 : vector<512x128xf32> to vector<16x32x128xf32>
    %248 = vector.extract_strided_slice %247 {offsets = [0, 8, 0], sizes = [8, 16, 128], strides = [1, 1, 1]} : vector<16x32x128xf32> to vector<8x16x128xf32>
    %249 = vector.shape_cast %248 : vector<8x16x128xf32> to vector<128x128xf32>
    %c2_131 = arith.constant 2 : index
    %c0_132 = arith.constant 0 : index
    %c2_133 = arith.constant 2 : index
    %c0_134 = arith.constant 0 : index
    %250 = vector.load %arg5[%c2_131, %c0_132, %c2_133, %c0_134] : memref<3x3x3x128xf32, #tpu.memory_space<vmem>>, vector<1x1x1x128xf32>
    %251 = vector.shape_cast %250 : vector<1x1x1x128xf32> to vector<1x128xf32>
    %252 = vector.broadcast %251 : vector<1x128xf32> to vector<128x128xf32>
    %253 = arith.mulf %249, %252 : vector<128x128xf32>
    %254 = arith.addf %245, %253 : vector<128x128xf32>
    %255 = vector.shape_cast %246 : vector<512x128xf32> to vector<16x32x128xf32>
    %256 = vector.extract_strided_slice %255 {offsets = [4, 8, 0], sizes = [8, 16, 128], strides = [1, 1, 1]} : vector<16x32x128xf32> to vector<8x16x128xf32>
    %257 = vector.shape_cast %256 : vector<8x16x128xf32> to vector<128x128xf32>
    %c2_135 = arith.constant 2 : index
    %c1_136 = arith.constant 1 : index
    %c2_137 = arith.constant 2 : index
    %c0_138 = arith.constant 0 : index
    %258 = vector.load %arg5[%c2_135, %c1_136, %c2_137, %c0_138] : memref<3x3x3x128xf32, #tpu.memory_space<vmem>>, vector<1x1x1x128xf32>
    %259 = vector.shape_cast %258 : vector<1x1x1x128xf32> to vector<1x128xf32>
    %260 = vector.broadcast %259 : vector<1x128xf32> to vector<128x128xf32>
    %261 = arith.mulf %257, %260 : vector<128x128xf32>
    %262 = arith.addf %254, %261 : vector<128x128xf32>
    %263 = vector.shape_cast %246 : vector<512x128xf32> to vector<16x32x128xf32>
    %264 = vector.extract_strided_slice %263 {offsets = [8, 8, 0], sizes = [8, 16, 128], strides = [1, 1, 1]} : vector<16x32x128xf32> to vector<8x16x128xf32>
    %265 = vector.shape_cast %264 : vector<8x16x128xf32> to vector<128x128xf32>
    %c2_139 = arith.constant 2 : index
    %c2_140 = arith.constant 2 : index
    %c2_141 = arith.constant 2 : index
    %c0_142 = arith.constant 0 : index
    %266 = vector.load %arg5[%c2_139, %c2_140, %c2_141, %c0_142] : memref<3x3x3x128xf32, #tpu.memory_space<vmem>>, vector<1x1x1x128xf32>
    %267 = vector.shape_cast %266 : vector<1x1x1x128xf32> to vector<1x128xf32>
    %268 = vector.broadcast %267 : vector<1x128xf32> to vector<128x128xf32>
    %269 = arith.mulf %265, %268 : vector<128x128xf32>
    %270 = arith.addf %262, %269 : vector<128x128xf32>
    %c2_143 = arith.constant 2 : index
    %c0_144 = arith.constant 0 : index
    %271 = vector.load %arg6[%c2_143, %c0_144] : memref<3x128xf32, #tpu.memory_space<vmem>>, vector<1x128xf32>
    %272 = vector.broadcast %271 : vector<1x128xf32> to vector<128x128xf32>
    %273 = arith.addf %270, %272 : vector<128x128xf32>
    %cst_145 = arith.constant 0.000000e+00 : f32
    %274 = vector.broadcast %cst_145 : f32 to vector<128x128xf32>
    %275 = arith.maximumf %273, %274 : vector<128x128xf32>
    %276 = arith.truncf %275 : vector<128x128xf32> to vector<128x128xbf16>
    %c512 = arith.constant 512 : index
    %c0_146 = arith.constant 0 : index
    %277 = vector.load %arg8[%c512, %c0_146] : memref<640x128xbf16, #tpu.memory_space<vmem>>, vector<128x128xbf16>
    %cst_147 = arith.constant dense<0.000000e+00> : vector<128x128xf32>
    %278 = tpu.matmul %276, %277, %cst_147 {dimension_numbers = #tpu.dot_dimension_numbers<[1], [0], [0], [1], [0, 0, 1, 1], [], []>} : vector<128x128xbf16>, vector<128x128xbf16>, vector<128x128xf32> -> vector<128x128xf32>
    %279 = arith.addf %194, %278 : vector<128x128xf32>
    %c0_148 = arith.constant 0 : index
    %c0_149 = arith.constant 0 : index
    %280 = vector.load %arg9[%c0_148, %c0_149] : memref<1x128xf32, #tpu.memory_space<vmem>>, vector<1x128xf32>
    %281 = vector.broadcast %280 : vector<1x128xf32> to vector<128x128xf32>
    %282 = arith.addf %279, %281 : vector<128x128xf32>
    %cst_150 = arith.constant 0.000000e+00 : f32
    %283 = vector.broadcast %cst_150 : f32 to vector<128x128xf32>
    %284 = arith.maximumf %282, %283 : vector<128x128xf32>
    %285 = vector.shape_cast %284 : vector<128x128xf32> to vector<1x8x16x128xf32>
    %c0_151 = arith.constant 0 : index
    %c0_152 = arith.constant 0 : index
    %c0_153 = arith.constant 0 : index
    %c0_154 = arith.constant 0 : index
    %286 = vector.load %arg10[%c0_151, %c0_152, %c0_153, %c0_154] : memref<1x8x16x128xf32, #tpu.memory_space<vmem>>, vector<1x8x16x128xf32>
    tpu.vector_store %arg10[%c0_151, %c0_152, %c0_153, %c0_154], %285 {strides = array<i32>} : memref<1x8x16x128xf32, #tpu.memory_space<vmem>>, vector<1x8x16x128xf32>,
    return
  }
  func.func @transform_0(%arg0: i32, %arg1: i32) -> (i32, i32, i32, i32) {
    %c2_i32 = arith.constant 2 : i32
    %0 = arith.muli %arg0, %c2_i32 : i32
    %1 = arith.addi %0, %arg1 : i32
    %c0_i32 = arith.constant 0 : i32
    %c0_i32_0 = arith.constant 0 : i32
    %c0_i32_1 = arith.constant 0 : i32
    %c0_i32_2 = arith.constant 0 : i32
    return %1, %c0_i32, %c0_i32_0, %c0_i32_1 : i32, i32, i32, i32
  }
  func.func @transform_1(%arg0: i32, %arg1: i32) -> (i32, i32) {
    %c0_i32 = arith.constant 0 : i32
    %c0_i32_0 = arith.constant 0 : i32
    %c0_i32_1 = arith.constant 0 : i32
    return %c0_i32, %c0_i32_0 : i32, i32
  }
  func.func @transform_2(%arg0: i32, %arg1: i32) -> (i32, i32) {
    %c0_i32 = arith.constant 0 : i32
    %c0_i32_0 = arith.constant 0 : i32
    %c0_i32_1 = arith.constant 0 : i32
    return %c0_i32, %c0_i32_0 : i32, i32
  }
  func.func @transform_3(%arg0: i32, %arg1: i32) -> (i32, i32, i32, i32) {
    %c0_i32 = arith.constant 0 : i32
    %c0_i32_0 = arith.constant 0 : i32
    %c0_i32_1 = arith.constant 0 : i32
    %c0_i32_2 = arith.constant 0 : i32
    %c0_i32_3 = arith.constant 0 : i32
    return %c0_i32, %c0_i32_0, %c0_i32_1, %c0_i32_2 : i32, i32, i32, i32
  }
  func.func @transform_4(%arg0: i32, %arg1: i32) -> (i32, i32) {
    %c0_i32 = arith.constant 0 : i32
    %c0_i32_0 = arith.constant 0 : i32
    %c0_i32_1 = arith.constant 0 : i32
    return %c0_i32, %c0_i32_0 : i32, i32
  }
  func.func @transform_5(%arg0: i32, %arg1: i32) -> (i32, i32) {
    %c0_i32 = arith.constant 0 : i32
    %c0_i32_0 = arith.constant 0 : i32
    %c0_i32_1 = arith.constant 0 : i32
    return %c0_i32, %c0_i32_0 : i32, i32
  }
  func.func @transform_6(%arg0: i32, %arg1: i32) -> (i32, i32) {
    %c0_i32 = arith.constant 0 : i32
    %c0_i32_0 = arith.constant 0 : i32
    %c0_i32_1 = arith.constant 0 : i32
    return %c0_i32, %c0_i32_0 : i32, i32
  }
  func.func @transform_7(%arg0: i32, %arg1: i32) -> (i32, i32) {
    %c0_i32 = arith.constant 0 : i32
    %c0_i32_0 = arith.constant 0 : i32
    %c0_i32_1 = arith.constant 0 : i32
    return %c0_i32, %c0_i32_0 : i32, i32
  }
  func.func @transform_8(%arg0: i32, %arg1: i32) -> (i32, i32, i32, i32) {
    %c0_i32 = arith.constant 0 : i32
    %c0_i32_0 = arith.constant 0 : i32
    %c0_i32_1 = arith.constant 0 : i32
    return %arg0, %arg1, %c0_i32, %c0_i32_0 : i32, i32, i32, i32
  }
}

</mosaic_0001>

<bundles_post_ra>
// kernel: _lambda_.1
= control target key start
LH: loop header
LB: loop body
LE: loop exit
PB: predicated region body
PF: predicated region fallthrough
CT: control target
= control target key end

     0   :  { %s4883_s27 = smov 0   ;;  %s4885_s28 = smov 0   ;;  %s7956_s0 = inlined_call_operand.vmem [shape: bf16[4,16,32,128], index: 0, kind: input, shape index: {}]   ;;  %s7957_s1 = inlined_call_operand.vmem [shape: bf16[128,128], index: 1, kind: input, shape index: {}]   ;;  %s7958_s2 = inlined_call_operand.vmem [shape: bf16[128,256], index: 2, kind: input, shape index: {}]   ;;  %s7959_s3 = inlined_call_operand.vmem [shape: f32[3,3,3,128], index: 3, kind: input, shape index: {}]   ;;  %s7960_s4 = inlined_call_operand.vmem [shape: f32[3,128], index: 4, kind: input, shape index: {}]   ;;  %s7961_s5 = inlined_call_operand.vmem [shape: f32[1,256], index: 5, kind: input, shape index: {}]   ;;  %s7962_s6 = inlined_call_operand.vmem [shape: bf16[640,128], index: 6, kind: input, shape index: {}]   ;;  %s7963_s7 = inlined_call_operand.vmem [shape: f32[1,128], index: 7, kind: input, shape index: {}]   ;;  %s7964_s8 = inlined_call_operand.vmem [shape: f32[2,16,16,128], index: 8, kind: output, shape index: {}]  }
   0x1   :  { %s4887_s29 = smov 0   ;;  %s4889_s30 = smov 0  }
   0x2   :  { %s4891_s9 = smov 0  }
   0x3 LB: > { %s27_s10 = sadd.s32 1, %s4827_s29  ;;  %s30_s11 = sadd.s32 1, %s4831_s30  ;;  %s4835_s9 = sphi %s4891_s9, %s18_s9   ;;  %s4831_s30 = sphi %s4889_s30, %s8702_s30   ;;  %s4827_s29 = sphi %s4887_s29, %s8701_s29   ;;  %s4823_s28 = sphi %s4885_s28, %s8700_s28   ;;  %s4819_s27 = sphi %s4883_s27, %s8699_s27  }
   0x4   : > { %p28_p0 = scmp.ge.s32.totalorder %s27_s10, 2  ;;  %p4046_p1 = scmp.ge.s32.totalorder %s4835_s9, 1 }
   0x5   : > { %p284_p2 = scmp.lt.s32.totalorder %s4835_s9, 5 }
   0x6   : > { %s8704_s10 = smov (%p28_p0, %s27_s10), 0  ;;  %s8706_s11 = smov (!%p28_p0, %s30_s11), %s4831_s30 }
   0x7   : > { %p285_p3 = pnand %p4046_p1, %p284_p2  ;;  %p32_p4 = scmp.ge.s32.totalorder %s8706_s11, 2 }
   0x9   : > { %s8708_s11 = smov (%p32_p4, %s8706_s11), 0  ;;  %288 = sbr.rel (%p285_p3) target bundleno = 831 (0x33f), region = 52 }
   0xe   : > { %v4649_v0 = vld [vmem:[%s7957_s1 + $0x38] sm:$0xff]   ;;  %s4047_s14 = sshll.u32 %s4823_s28, 1  ;;  %v4837_v3 = vmov 0   ;;  %v4653_v4 = vld [vmem:[%s7957_s1 + $0x30] sm:$0xff]   ;;  %v4654_v5 = vld [vmem:[%s7958_s2 + $0x64] ss:$8 sps:$4 sm:$0xff]  }
   0xf   : > { %v4650_v1 = vld [vmem:[%s7958_s2 + $0x74] ss:$8 sps:$4 sm:$0xff]   ;;  %s326_s17 = sadd.s32 %s4819_s27, %s4047_s14  ;;  %4352 = vmatprep.subr.bf16.mxu0 %v4649_v0  ;;  %v4652_v2 = vld [vmem:[%s7958_s2 + $0x70] ss:$8 sps:$4 sm:$0xff]   ;;  %1224 = vmatprep.mubr.bf16.mxu1 %v4837_v3  ;;  %v4656_v6 = vld [vmem:[%s7958_s2 + $0x60] ss:$8 sps:$4 sm:$0xff]  }
  0x10   : > { %1192 = vmatprep.subr.bf16.mxu1 %v4650_v1  ;;  %4353 = vmatpush3.bf16.msra.mxu0 %v4649_v0  ;;  %p327_p5 = scmp.lt.s32.totalorder %s326_s17, 3  ;;  %v4657_v7 = vld [vmem:[%s7957_s1 + $0x28] sm:$0xff]   ;;  %v4658_v8 = vld [vmem:[%s7958_s2 + $0x54] ss:$8 sps:$4 sm:$0xff]   ;;  %v4660_v9 = vld [vmem:[%s7958_s2 + $0x50] ss:$8 sps:$4 sm:$0xff]  }
  0x11   : > { %1193 = vmatpush1.bf16.msra.mxu1 %v4652_v2  ;;  %4354 = vmatprep.subr.bf16.mxu0 %v4653_v4  ;;  %v4661_v10 = vld [vmem:[%s7957_s1 + $0x20] sm:$0xff]   ;;  %v4665_v13 = vld [vmem:[%s7957_s1 + $0x18] sm:$0xff]   ;;  %v4669_v16 = vld [vmem:[%s7957_s1 + $0x10] sm:$0xff]   ;;  %p335_p6 = scmp.lt.s32.totalorder %s4823_s28, 1 }
  0x12   : > { %1194 = vmatprep.subr.bf16.mxu1 %v4654_v5  ;;  %s8710_s17 = smov (!%p327_p5, %s326_s17), 3  ;;  %v4662_v11 = vld [vmem:[%s7958_s2 + $0x44] ss:$8 sps:$4 sm:$0xff]   ;;  %v4664_v12 = vld [vmem:[%s7958_s2 + $0x40] ss:$8 sps:$4 sm:$0xff]   ;;  %v4721_v38 = vld [vmem:[%s7962_s6 + $0x78] sm:$0xff]  }
  0x13   : > { %v4666_v14 = vld [vmem:[%s7958_s2 + $0x34] ss:$8 sps:$4 sm:$0xff]   ;;  %s4231_s13 = sshll.u32 %s8710_s17, 8  ;;  %v4668_v15 = vld [vmem:[%s7958_s2 + $0x30] ss:$8 sps:$4 sm:$0xff]   ;;  %v4673_v20 = vld [vmem:[%s7957_s1 + $0x8] sm:$0xff]  }
  0x14   : > { %4355 = vmatpush3.bf16.msra.mxu0 %v4653_v4  ;;  %s4971_s21 = scalar_lea.vmem %s7956_s0, %s4231_s13  ;;  %v4670_v17 = vld [vmem:[%s7958_s2 + $0x24] ss:$8 sps:$4 sm:$0xff]   ;;  %v4672_v18 = vld [vmem:[%s7958_s2 + $0x20] ss:$8 sps:$4 sm:$0xff]   ;;  %v4674_v21 = vld [vmem:[%s7958_s2 + $0x14] ss:$8 sps:$4 sm:$0xff]  }
  0x15   : > { %1195 = vmatpush1.bf16.msra.mxu1 %v4656_v6  ;;  %4356 = vmatprep.subr.bf16.mxu0 %v4657_v7  ;;  %v4681_v19 = vld [vmem:[%s4971_s21] sm:$0xff]   ;;  %v4676_v22 = vld [vmem:[%s7958_s2 + $0x10] ss:$8 sps:$4 sm:$0xff]   ;;  %v4682_v26 = vld [vmem:[%s4971_s21 + $0x8] sm:$0xff]   ;;  %s4050_s13 = sshll.u32 %s4819_s27, 3  ;;  %s8712_s28 = smov (!%p335_p6, %s4823_s28), 1 }
  0x16   : > { %1196 = vmatprep.subr.bf16.mxu1 %v4658_v8  ;;  %4368 = vmatprep.mubr.bf16.mxu0 %v4681_v19  ;;  %v4677_v23 = vld [vmem:[%s7957_s1] sm:$0xff]   ;;  %v4684_v28 = vld [vmem:[%s4971_s21 + $0x10] sm:$0xff]   ;;  %v4685_v29 = vld [vmem:[%s4971_s21 + $0x18] sm:$0xff]   ;;  %p337_p7 = scmp.lt.s32.totalorder %s4050_s13, 15  ;;  %s4052_s15 = sshll.u32 %s8712_s28, 5 }
  0x17   : > { %v4678_v24 = vld [vmem:[%s7958_s2 + $0x4] ss:$8 sps:$4 sm:$0xff]   ;;  %v4680_v25 = vld [vmem:[%s7958_s2] ss:$8 sps:$4 sm:$0xff]   ;;  %v4686_v30 = vld [vmem:[%s4971_s21 + $0x54] sm:$0xff]  }
  0x18   : > { %4357 = vmatpush3.bf16.msra.mxu0 %v4657_v7  ;;  %v4683_v27 = vld [vmem:[%s4971_s21 + $0x44] sm:$0xff]   ;;  %v4690_v34 = vld [vmem:[%s4971_s21 + $0x30] sm:$0xff]   ;;  %v4691_v35 = vld [vmem:[%s4971_s21 + $0x38] sm:$0xff]   ;;  %s8714_s13 = smov (!%p337_p7, %s4050_s13), 15 }
  0x19   : > { %1197 = vmatpush1.bf16.msra.mxu1 %v4660_v9  ;;  %4358 = vmatprep.subr.bf16.mxu0 %v4661_v10  ;;  %v4687_v31 = vld [vmem:[%s4971_s21 + $0x20] sm:$0xff]   ;;  %v4688_v32 = vld [vmem:[%s4971_s21 + $0x28] sm:$0xff]   ;;  %v4692_v36 = vld [vmem:[%s4971_s21 + $0x74] sm:$0xff]   ;;  %s4051_s14 = sshll.u32 %s8714_s13, 1 }
  0x1a   : > { %1198 = vmatprep.subr.bf16.mxu1 %v4662_v11  ;;  %v4689_v33 = vld [vmem:[%s4971_s21 + $0x64] sm:$0xff]   ;;  %v4722_v40 = vld [vmem:[%s7962_s6 + $0xb8] sm:$0xff]   ;;  %v4696_v42 = vld [vmem:[%s4971_s21 + $0x50] sm:$0xff]   ;;  %s341_s27 = sadd.s32 %s4052_s15, %s4051_s14 }
  0x1b   : > { %v4693_v37 = vld [vmem:[%s4971_s21 + $0x40] sm:$0xff]   ;;  %v4694_v39 = vld [vmem:[%s4971_s21 + $0x48] sm:$0xff]   ;;  %v4723_v43 = vld [vmem:[%s7962_s6 + $0x70] sm:$0xff]   ;;  %s4053_s28 = sshll.u32 %s341_s27, 3 }
  0x1c   : > { %4359 = vmatpush3.bf16.msra.mxu0 %v4661_v10  ;;  %v4695_v41 = vld [vmem:[%s4971_s21 + $0x84] sm:$0xff]   ;;  %v4697_v45 = vld [vmem:[%s4971_s21 + $0x58] sm:$0xff]   ;;  %v4702_v50 = vld [vmem:[%s4971_s21 + $0x70] sm:$0xff]   ;;  %s7859_s22 = scalar_lea.vmem %s7964_s8, %s4053_s28 }
  0x1d   : > { %1199 = vmatpush1.bf16.msra.mxu1 %v4664_v12  ;;  %4360 = vmatprep.subr.bf16.mxu0 %v4665_v13  ;;  %v4724_v44 = vld [vmem:[%s7962_s6 + $0x68] sm:$0xff]   ;;  %v4698_v46 = vld [vmem:[%s4971_s21 + $0x94] sm:$0xff]   ;;  %v4699_v47 = vld [vmem:[%s4971_s21 + $0x60] sm:$0xff]  }
  0x1e   : > { %1200 = vmatprep.subr.bf16.mxu1 %v4666_v14  ;;  %v4700_v48 = vld [vmem:[%s4971_s21 + $0x68] sm:$0xff]   ;;  %v4703_v51 = vld [vmem:[%s4971_s21 + $0x78] sm:$0xff]   ;;  %v4705_v53 = vld [vmem:[%s4971_s21 + $0x80] sm:$0xff]  }
  0x1f   : > { %v4701_v49 = vld [vmem:[%s4971_s21 + $0xa4] sm:$0xff]   ;;  %v4704_v52 = vld [vmem:[%s4971_s21 + $0xb4] sm:$0xff]  }
  0x20   : > { %4361 = vmatpush3.bf16.msra.mxu0 %v4665_v13  ;;  %v4706_v54 = vld [vmem:[%s4971_s21 + $0x88] sm:$0xff]   ;;  %v4707_v55 = vld [vmem:[%s4971_s21 + $0x90] sm:$0xff]   ;;  %v4725_v56 = vld [vmem:[%s7962_s6 + $0x60] sm:$0xff]  }
  0x21   : > { %1201 = vmatpush1.bf16.msra.mxu1 %v4668_v15  ;;  %4362 = vmatprep.subr.bf16.mxu0 %v4669_v16  ;;  %v4708_v57 = vld [vmem:[%s4971_s21 + $0x98] sm:$0xff]   ;;  %v4709_v59 = vld [vmem:[%s4971_s21 + $0xa0] sm:$0xff]   ;;  %v4728_v60 = vld [vmem:[%s7962_s6 + $0x50] sm:$0xff]  }
  0x22   : > { %1202 = vmatprep.subr.bf16.mxu1 %v4670_v17  ;;  %v4727_v58 = vld [vmem:[%s7962_s6 + $0x58] sm:$0xff]   ;;  %v4726_v61 = vld [vmem:[%s7962_s6 + $0xb0] sm:$0xff]   ;;  %v4710_v62 = vld [vmem:[%s4971_s21 + $0xa8] sm:$0xff]  }
  0x23   : > { %v4711_v63 = vld [vmem:[%s4971_s21 + $0xb0] sm:$0xff]   ;;  %v4729_v0 = vld [vmem:[%s7962_s6 + $0x48] sm:$0xff]   ;;  %v4712_v1 = vld [vmem:[%s4971_s21 + $0xb8] sm:$0xff]  }
  0x24   : > { %4363 = vmatpush3.bf16.msra.mxu0 %v4669_v16  ;;  %v4730_v2 = vld [vmem:[%s7962_s6 + $0x40] sm:$0xff]   ;;  %v4714_v4 = vld [vmem:[%s4971_s21 + $0xc8] sm:$0xff]   ;;  %v4715_v5 = vld [vmem:[%s4971_s21 + $0xd0] sm:$0xff]  }
  0x25   : > { %1203 = vmatpush1.bf16.msra.mxu1 %v4672_v18  ;;  %4364 = vmatprep.subr.bf16.mxu0 %v4673_v20  ;;  %v4731_v6 = vld [vmem:[%s7962_s6 + $0xa8] sm:$0xff]   ;;  %v4716_v7 = vld [vmem:[%s4971_s21 + $0xd8] sm:$0xff]   ;;  %v4717_v8 = vld [vmem:[%s4971_s21 + $0xe0] sm:$0xff]   ;;  %v1054_v18 = vlaneseq }
  0x26   : > { %1204 = vmatprep.subr.bf16.mxu1 %v4674_v21  ;;  %v4718_v9 = vld [vmem:[%s4971_s21 + $0xe8] sm:$0xff]   ;;  %v4719_v10 = vld [vmem:[%s4971_s21 + $0xf0] sm:$0xff]   ;;  %v4732_v11 = vld [vmem:[%s7962_s6 + $0xa0] sm:$0xff]  }
  0x27   : > { %v4720_v12 = vld [vmem:[%s4971_s21 + $0xf8] sm:$0xff]   ;;  %v4740_v15 = vld [vmem:[%s7962_s6 + $0x90] sm:$0xff]   ;;  %v4743_v16 = vld [vmem:[%s7962_s6 + $0x88] sm:$0xff]   ;;  %v5098_v19 = vshrl.u32 %v1054_v18, 7 }
  0x28   : > { %4365 = vmatpush3.bf16.msra.mxu0 %v4673_v20  ;;  %v5083_v13 = vld [vmem:[%s7962_s6 + $0x38] sm:$0xff]   ;;  %v4745_v17 = vld [vmem:[%s7962_s6 + $0x80] sm:$0xff]  }
  0x29   : > { %1205 = vmatpush1.bf16.msra.mxu1 %v4676_v22  ;;  %4366 = vmatprep.subr.bf16.mxu0 %v4677_v23  ;;  %v4735_v14 = vld [vmem:[%s7962_s6 + $0x98] sm:$0xff]   ;;  %v1056_v20 = vsub.s32 0, %v5098_v19  ;;  %v1052_v21 = vld [vmem:[%s7961_s5] sm:$0x3]  ;;  %v1060_v22 = vsub.s32 1, %v5098_v19  ;;  %vm3386_vm0 = vcmp.lt.s32.totalorder %v5098_v19, 4 }
  0x2a   : > { %1206 = vmatprep.subr.bf16.mxu1 %v4678_v24  ;;  %vm2798_vm1 = vcmp.lt.s32.totalorder %v5098_v19, 5  ;;  %vm2616_vm2 = vcmp.lt.s32.totalorder %v5098_v19, 3  ;;  %vm2046_vm3 = vcmp.lt.s32.totalorder %v5098_v19, 6  ;;  %vm1874_vm4 = vcmp.lt.s32.totalorder %v5098_v19, 2 }
  0x2c   : > { %4367 = vmatpush3.bf16.msra.mxu0 %v4677_v23  ;;  %v5105_v23 = vrot.slane %v1052_v21, %v1056_v20 }
  0x2d   : > { %1207 = vmatpush1.bf16.msra.mxu1 %v4680_v25  ;;  %4496 = vmatprep.subr.bf16.mxu0 %v4722_v40 }
  0x2e   : > { %4432 = vmatprep.subr.bf16.mxu1 %v4721_v38 }
  0x2f   : > { %4369 = vmatmul.mubr.bf16.vlgmr.msra.gmra.mxu0 %v4682_v26  ;;  %v5107_v26 = vrot.slane %v1052_v21, %v1060_v22 }
  0x30   : > { %1225 = vmatmul.mubr.bf16.vlgmr.msra.gmra.mxu1 %v4683_v27  ;;  %4372 = vmatprep.mubr.bf16.mxu0 %v4684_v28 }
  0x31   : > { %1234 = vmatprep.mubr.bf16.mxu1 %v4837_v3  ;;  %4433 = vmatpush3.bf16.msra.mxu1 %v4721_v38 }
  0x32   : > { %4497 = vmatpush3.bf16.msra.mxu0 %v4722_v40  ;;  %4434 = vmatprep.subr.bf16.mxu1 %v4723_v43 }
  0x33   : > { %4498 = vmatprep.subr.bf16.mxu0 %v4726_v61 }
  0x35   : > { %4435 = vmatpush3.bf16.msra.mxu1 %v4723_v43 }
  0x36   : > { %4436 = vmatprep.subr.bf16.mxu1 %v4724_v44  ;;  %4499 = vmatpush3.bf16.msra.mxu0 %v4726_v61 }
  0x37   : > { %4373 = vmatmul.mubr.bf16.gmra.mxu0 %v4685_v29  ;;  %4500 = vmatprep.subr.bf16.mxu0 %v4731_v6 }
  0x38   : > { %1235 = vmatmul.mubr.bf16.gmra.mxu1 %v4686_v30  ;;  %4376 = vmatprep.mubr.bf16.mxu0 %v4687_v31 }
  0x39   : > { %1244 = vmatprep.mubr.bf16.mxu1 %v4837_v3  ;;  %4437 = vmatpush3.bf16.msra.mxu1 %v4724_v44  ;;  %v5128_v44 = vld [vmem:[%s7959_s3 + $0xd] ss:$0 sm:$0xff] }
  0x3a   : > { %4438 = vmatprep.subr.bf16.mxu1 %v4725_v56  ;;  %4501 = vmatpush3.bf16.msra.mxu0 %v4731_v6 }
  0x3b   : > { %4502 = vmatprep.subr.bf16.mxu0 %v4732_v11 }
  0x3d   : > { %4439 = vmatpush3.bf16.msra.mxu1 %v4725_v56 }
  0x3e   : > { %4440 = vmatprep.subr.bf16.mxu1 %v4727_v58  ;;  %4503 = vmatpush3.bf16.msra.mxu0 %v4732_v11 }
  0x3f   : > { %4377 = vmatmul.mubr.bf16.gmra.mxu0 %v4688_v32  ;;  %4504 = vmatprep.subr.bf16.mxu0 %v4735_v14 }
  0x40   : > { %1245 = vmatmul.mubr.bf16.gmra.mxu1 %v4689_v33  ;;  %4380 = vmatprep.mubr.bf16.mxu0 %v4690_v34 }
  0x41   : > { %1254 = vmatprep.mubr.bf16.mxu1 %v4837_v3  ;;  %4441 = vmatpush3.bf16.msra.mxu1 %v4727_v58 }
  0x42   : > { %4442 = vmatprep.subr.bf16.mxu1 %v4728_v60  ;;  %4505 = vmatpush3.bf16.msra.mxu0 %v4735_v14  ;;  %v5173_v14 = vld [vmem:[%s7959_s3 + $0xe] ss:$0 sm:$0xff] }
  0x43   : > { %4506 = vmatprep.subr.bf16.mxu0 %v4740_v15 }
  0x45   : > { %4443 = vmatpush3.bf16.msra.mxu1 %v4728_v60 }
  0x46   : > { %4444 = vmatprep.subr.bf16.mxu1 %v4729_v0  ;;  %4507 = vmatpush3.bf16.msra.mxu0 %v4740_v15 }
  0x47   : > { %4381 = vmatmul.mubr.bf16.gmra.mxu0 %v4691_v35  ;;  %4508 = vmatprep.subr.bf16.mxu0 %v4743_v16  ;;  %v5115_v35 = vld [vmem:[%s7959_s3 + $0x19] ss:$0 sm:$0xff] }
  0x48   : > { %1255 = vmatmul.mubr.bf16.gmra.mxu1 %v4692_v36  ;;  %4384 = vmatprep.mubr.bf16.mxu0 %v4693_v37  ;;  %v5120_v36 = vld [vmem:[%s7959_s3 + $0x1a] ss:$0 sm:$0xff] }
  0x49   : > { %1264 = vmatprep.mubr.bf16.mxu1 %v4837_v3  ;;  %4445 = vmatpush3.bf16.msra.mxu1 %v4729_v0 }
  0x4a   : > { %4446 = vmatprep.subr.bf16.mxu1 %v4730_v2  ;;  %4509 = vmatpush3.bf16.msra.mxu0 %v4743_v16 }
  0x4b   : > { %4510 = vmatprep.subr.bf16.mxu0 %v4745_v17 }
  0x4d   : > { %4447 = vmatpush3.bf16.msra.mxu1 %v4730_v2 }
  0x4e   : > { %4464 = vmatprep.subr.bf16.mxu1 %v5083_v13  ;;  %4511 = vmatpush3.bf16.msra.mxu0 %v4745_v17 }
  0x4f   : > { %4385 = vmatmul.mubr.bf16.gmra.mxu0 %v4694_v39 }
  0x50   : > { %1265 = vmatmul.mubr.bf16.gmra.mxu1 %v4695_v41  ;;  %4388 = vmatprep.mubr.bf16.mxu0 %v4696_v42 }
  0x51   : > { %1274 = vmatprep.mubr.bf16.mxu1 %v4837_v3 }
  0x57   : > { %4389 = vmatmul.mubr.bf16.gmra.mxu0 %v4697_v45 }
  0x58   : > { %1275 = vmatmul.mubr.bf16.gmra.mxu1 %v4698_v46  ;;  %4392 = vmatprep.mubr.bf16.mxu0 %v4699_v47  ;;  %v5133_v46 = vld [vmem:[%s7959_s3 + $0x18] ss:$0 sm:$0xff] }
  0x59   : > { %1284 = vmatprep.mubr.bf16.mxu1 %v4837_v3 }
  0x5f   : > { %4393 = vmatmul.mubr.bf16.gmra.mxu0 %v4700_v48 }
  0x60   : > { %1285 = vmatmul.mubr.bf16.gmra.mxu1 %v4701_v49  ;;  %4396 = vmatprep.mubr.bf16.mxu0 %v4702_v50 }
  0x61   : > { %1294 = vmatprep.mubr.bf16.mxu1 %v4837_v3  ;;  %v4713_v3 = vld [vmem:[%s4971_s21 + $0xc0] sm:$0xff]  }
  0x67   : > { %4397 = vmatmul.mubr.bf16.gmra.mxu0 %v4703_v51 }
  0x68   : > { %1295 = vmatmul.mubr.bf16.gmra.mxu1 %v4704_v52  ;;  %4400 = vmatprep.mubr.bf16.mxu0 %v4705_v53 }
  0x6f   : > { %4401 = vmatmul.mubr.bf16.gmra.mxu0 %v4706_v54 }
  0x70   : > { %4404 = vmatprep.mubr.bf16.mxu0 %v4707_v55 }
  0x77   : > { %4405 = vmatmul.mubr.bf16.gmra.mxu0 %v4708_v57 }
  0x78   : > { %4408 = vmatprep.mubr.bf16.mxu0 %v4709_v59 }
  0x7f   : > { %4409 = vmatmul.mubr.bf16.gmra.mxu0 %v4710_v62 }
  0x80   : > { %4412 = vmatprep.mubr.bf16.mxu0 %v4711_v63 }
  0x87   : > { %4413 = vmatmul.mubr.bf16.gmra.mxu0 %v4712_v1 }
  0x88   : > { %4416 = vmatprep.mubr.bf16.mxu0 %v4713_v3 }
  0x8f   : > { %4417 = vmatmul.mubr.bf16.gmra.mxu0 %v4714_v4 }
  0x90   : > { %4420 = vmatprep.mubr.bf16.mxu0 %v4715_v5 }
  0x97   : > { %4421 = vmatmul.mubr.bf16.gmra.mxu0 %v4716_v7 }
  0x98   : > { %4424 = vmatprep.mubr.bf16.mxu0 %v4717_v8 }
  0x9f   : > { %4425 = vmatmul.mubr.bf16.gmra.mxu0 %v4718_v9 }
  0xa0   : > { %4428 = vmatprep.mubr.bf16.mxu0 %v4719_v10 }
  0xa7   : > { %4429 = vmatmul.mubr.bf16.gmra.mxu0 %v4720_v12 }
  0xef   : > { %v4370_v24 = vpop.f32.mrf.mxu0 }
  0xf0   : > { %v1226_v25 = vpop.f32.mrf.mxu1  ;;  %v3340_v31 = vrot.slane %v4370_v24, 4  ;;  %v5139_v49 = vmul.f32 %v4370_v24, %v5115_v35 }
  0xf1   : > { %v700_v27 = vpop.f32.mrf.mxu0  ;;  %v1227_v28 = vadd.f32 %v1226_v25, %v5105_v23 }
  0xf2   : > { %v1228_v29 = vpop.f32.mrf.mxu1  ;;  %v3338_v40 = vrot.slane %v700_v27, 4  ;;  %8143 = vst [vmem:[#allocation3_spill] sm:$0xff] %v5139_v49 }
  0xf3   : > { %v4371_v30 = vpop.f32.mrf.mxu0  ;;  %v1229_v32 = vadd.f32 %v1228_v29, %v5107_v26  ;;  %v1305_v39 = vmax.f32 %v1227_v28, 0.0  ;;  %v5187_v28 = vld [vmem:[%s7959_s3 + $0xc] ss:$0 sm:$0xff] }
  0xf4   : > { %v3530_v33 = vrot.slane %v4371_v30, 4  ;;  %v1230_v34 = vpop.f32.mrf.mxu1 }
  0xf5   : > { %v1231_v37 = vadd.f32 %v1230_v34, %v5105_v23  ;;  %v703_v38 = vpop.f32.mrf.mxu0  ;;  %v1306_v50 = vmax.f32 %v1229_v32, 0.0 }
  0xf6   : > { %v3561_v41 = vsel %vm3386_vm0, %v3340_v31, %v3530_v33  ;;  %v3339_v42 = vrot.slane %v703_v38, 4  ;;  %v1232_v43 = vpop.f32.mrf.mxu1  ;;  %v5149_v55 = vmul.f32 %v5115_v35, %v703_v38 }
  0xf7   : > { %v1307_v45 = vmax.f32 %v1231_v37, 0.0  ;;  %v1233_v47 = vadd.f32 %v1232_v43, %v5107_v26  ;;  %v4374_v48 = vpop.f32.mrf.mxu0  ;;  %v5146_v54 = vmul.f32 %v5120_v36, %v3561_v41 }
  0xf8   : > { %v3417_v51 = vsel %vm3386_vm0, %v3339_v42, %v3340_v31  ;;  %v3418_v52 = vsel %vm3386_vm0, %v3338_v40, %v3339_v42  ;;  %v1236_v53 = vpop.f32.mrf.mxu1  ;;  %8145 = vst [vmem:[#allocation5_spill] sm:$0xff] %v5149_v55  ;;  %v5152_v56 = vmul.f32 %v4374_v48, %v5128_v44  ;;  %v2576_v57 = vrot.slane %v4374_v48, 5  ;;  %v5211_v42 = vld [vmem:[%s7959_s3 + $0x1] ss:$0 sm:$0xff] }
  0xf9   : > { %8144 = vst [vmem:[#allocation4_spill] sm:$0xff] %v5146_v54  ;;  %v716_v58 = vpop.f32.mrf.mxu0  ;;  %v5154_v59 = vpack.c.bf16 %v1307_v45, %v1305_v39  ;;  %v5157_v60 = vmul.f32 %v5133_v46, %v3418_v52  ;;  %v5160_v61 = vmul.f32 %v5133_v46, %v3417_v51  ;;  %v1308_v62 = vmax.f32 %v1233_v47, 0.0  ;;  %8156 = vst [vmem:[#allocation16_spill] sm:$0xff] %v5211_v42 }
  0xfa   : > { %8146 = vst [vmem:[#allocation6_spill] sm:$0xff] %v5152_v56  ;;  %v1238_v63 = vpop.f32.mrf.mxu1  ;;  %v5163_v0 = vmul.f32 %v5120_v36, %v3417_v51  ;;  %v2757_v1 = vrot.slane %v4374_v48, 3  ;;  %v1237_v2 = vadd.f32 %v1236_v53, %v5105_v23  ;;  %v3343_v6 = vrot.slane %v4374_v48, 4 }
  0xfb   : > { %8147 = vst [vmem:[#allocation7_spill] sm:$0xff] %v5157_v60  ;;  %8148 = vst [vmem:[#allocation8_spill] sm:$0xff] %v5160_v61  ;;  %v1239_v3 = vadd.f32 %v1238_v63, %v5107_v26  ;;  %v4375_v4 = vpop.f32.mrf.mxu0  ;;  %v1361_v5 = vpack.c.bf16 %v1308_v62, %v1306_v50  ;;  %v5168_v10 = vmul.f32 %v4374_v48, %v5115_v35  ;;  %v2574_v12 = vrot.slane %v716_v58, 5  ;;  %v5405_v61 = vld [vmem:[%s7959_s3] ss:$0 sm:$0xff] }
  0xfc   : > { %8149 = vst [vmem:[#allocation9_spill] sm:$0xff] %v5163_v0  ;;  %v2758_v7 = vrot.slane %v4375_v4, 3  ;;  %v3531_v8 = vrot.slane %v4375_v4, 4  ;;  %v1240_v9 = vpop.f32.mrf.mxu1  ;;  %v1309_v11 = vmax.f32 %v1237_v2, 0.0  ;;  %v3341_v17 = vrot.slane %v716_v58, 4 }
  0xfd   : > { %8150 = vst [vmem:[#allocation10_spill] sm:$0xff] %v5168_v10  ;;  %v1241_v15 = vadd.f32 %v1240_v9, %v5105_v23  ;;  %v719_v16 = vpop.f32.mrf.mxu0  ;;  %4448 = vmatprep.mubr.bf16.mxu1 %v1361_v5  ;;  %v1310_v24 = vmax.f32 %v1239_v3, 0.0 }
  0xfe   : > { %v2825_v18 = vsel %vm2798_vm1, %v2757_v1, %v2758_v7  ;;  %v3560_v20 = vsel %vm3386_vm0, %v3343_v6, %v3531_v8  ;;  %v2575_v21 = vrot.slane %v719_v16, 5  ;;  %v1242_v22 = vpop.f32.mrf.mxu1  ;;  %v5182_v27 = vmul.f32 %v5128_v44, %v719_v16 }
  0xff   : > { %v1311_v25 = vmax.f32 %v1241_v15, 0.0  ;;  %v2756_v29 = vrot.slane %v719_v16, 3  ;;  %v5189_v30 = vpop.f32.mrf.mxu0  ;;  %v5192_v31 = vmul.f32 %v5173_v14, %v2825_v18  ;;  %v3342_v34 = vrot.slane %v719_v16, 4 }
 0x100   : > { %8151 = vst [vmem:[#allocation11_spill] sm:$0xff] %v5182_v27  ;;  %8152 = vst [vmem:[#allocation12_spill] sm:$0xff] %v5189_v30  ;;  %v2643_v32 = vsel %vm2616_vm2, %v2575_v21, %v2576_v57  ;;  %v2644_v33 = vsel %vm2616_vm2, %v2574_v12, %v2575_v21  ;;  %v1246_v37 = vpop.f32.mrf.mxu1  ;;  %v5199_v38 = vmul.f32 %v5120_v36, %v3560_v20  ;;  %v7967_v18 = vrot.slane %v5189_v30, 2 }
 0x101   : > { %8153 = vst [vmem:[#allocation13_spill] sm:$0xff] %v5192_v31  ;;  %v5201_v39 = vpack.c.bf16 %v1311_v25, %v1309_v11  ;;  %v2826_v40 = vsel %vm2798_vm1, %v2756_v29, %v2757_v1  ;;  %v5206_v41 = vmul.f32 %v5115_v35, %v719_v16  ;;  %v5213_v43 = vpop.f32.mrf.mxu0  ;;  %v5216_v45 = vmul.f32 %v5187_v28, %v2644_v33  ;;  %v5270_v29 = vld [vmem:[%s7959_s3 + $0x2] ss:$0 sm:$0xff] }
 0x102   : > { %8154 = vst [vmem:[#allocation14_spill] sm:$0xff] %v5199_v38  ;;  %8157 = vst [vmem:[#allocation17_spill] sm:$0xff] %v5213_v43  ;;  %v3415_v47 = vsel %vm3386_vm0, %v3342_v34, %v3343_v6  ;;  %v3416_v48 = vsel %vm3386_vm0, %v3341_v17, %v3342_v34  ;;  %v1243_v50 = vadd.f32 %v1242_v22, %v5107_v26  ;;  %v1248_v51 = vpop.f32.mrf.mxu1  ;;  %v2579_v6 = vrot.slane %v5189_v30, 5  ;;  %v4734_v17 = vld [vmem:[%s7962_s6 + $0x30] sm:$0xff]  }
 0x103   : > { %8155 = vst [vmem:[#allocation15_spill] sm:$0xff] %v5206_v41  ;;  %8158 = vst [vmem:[#allocation18_spill] sm:$0xff] %v5216_v45  ;;  %v5224_v52 = vmul.f32 %v5187_v28, %v2643_v32  ;;  %v5227_v53 = vmul.f32 %v5173_v14, %v2826_v40  ;;  %v5230_v57 = vmul.f32 %v5133_v46, %v3416_v48  ;;  %v4379_v62 = vpop.f32.mrf.mxu0  ;;  %v2577_v12 = vrot.slane %v5213_v43, 5 }
 0x104   : > { %v5233_v58 = vmul.f32 %v5133_v46, %v3415_v47  ;;  %v5236_v63 = vmul.f32 %v5120_v36, %v3415_v47  ;;  %v1312_v1 = vmax.f32 %v1243_v50, 0.0  ;;  %v5240_v2 = vmul.f32 %v5189_v30, %v5211_v42  ;;  %v1250_v4 = vpop.f32.mrf.mxu1 }
 0x105   : > { %8159 = vst [vmem:[#allocation19_spill] sm:$0xff] %v5224_v52  ;;  %8160 = vst [vmem:[#allocation20_spill] sm:$0xff] %v5227_v53  ;;  %v5245_v5 = vmul.f32 %v5189_v30, %v5128_v44  ;;  %v5250_v46 = vmul.f32 %v5189_v30, %v5115_v35  ;;  %v1247_v7 = vadd.f32 %v1246_v37, %v5105_v23  ;;  %v5253_v8 = vpop.f32.mrf.mxu0  ;;  %v2012_v20 = vrot.slane %v4379_v62, 2 }
 0x106   : > { %8161 = vst [vmem:[#allocation21_spill] sm:$0xff] %v5230_v57  ;;  %8162 = vst [vmem:[#allocation22_spill] sm:$0xff] %v5233_v58  ;;  %v1362_v9 = vpack.c.bf16 %v1312_v1, %v1310_v24  ;;  %v5258_v15 = vadd.f32 %v1248_v51, %v5107_v26  ;;  %v1252_v16 = vpop.f32.mrf.mxu1  ;;  %v7966_v21 = vrot.slane %v5189_v30, 3  ;;  %v2761_v22 = vrot.slane %v4379_v62, 3 }
 0x107   : > { %8163 = vst [vmem:[#allocation23_spill] sm:$0xff] %v5236_v63  ;;  %8164 = vst [vmem:[#allocation24_spill] sm:$0xff] %v5245_v5  ;;  %v5265_v25 = vpop.f32.mrf.mxu0  ;;  %v1313_v24 = vmax.f32 %v1247_v7, 0.0  ;;  %v7965_v32 = vrot.slane %v5189_v30, 4  ;;  %v3532_v33 = vrot.slane %v4379_v62, 4  ;;  %v1251_v34 = vadd.f32 %v1250_v4, %v5105_v23 }
 0x108   : > { %8165 = vst [vmem:[#allocation25_spill] sm:$0xff] %v5250_v46  ;;  %8166 = vst [vmem:[#allocation26_spill] sm:$0xff] %v5253_v8  ;;  %4449 = vmatmul.mubr.bf16.vlgmr.msra.gmra.mxu1 %v1362_v9  ;;  %v1256_v37 = vpop.f32.mrf.mxu1  ;;  %v1314_v47 = vmax.f32 %v5258_v15, 0.0  ;;  %v2069_v48 = vsel %vm2046_vm3, %v7967_v18, %v2012_v20  ;;  %v2823_v50 = vsel %vm2798_vm1, %v7966_v21, %v2761_v22  ;;  %v4736_v15 = vld [vmem:[%s7962_s6 + $0x28] sm:$0xff]  }
 0x109   : > { %8167 = vst [vmem:[#allocation27_spill] sm:$0xff] %v5265_v25  ;;  %v5284_v51 = vpop.f32.mrf.mxu0  ;;  %4465 = vmatpush3.bf16.msra.mxu1 %v5083_v13  ;;  %v3559_v62 = vsel %vm3386_vm0, %v7965_v32, %v3532_v33  ;;  %v1315_v1 = vmax.f32 %v1251_v34, 0.0  ;;  %v5293_v4 = vmul.f32 %v5211_v42, %v5253_v8  ;;  %v5300_v13 = vmul.f32 %v5270_v29, %v2069_v48 }
 0x10a   : > { %8168 = vst [vmem:[#allocation28_spill] sm:$0xff] %v5284_v51  ;;  %v1258_v9 = vpop.f32.mrf.mxu1  ;;  %4466 = vmatprep.subr.bf16.mxu1 %v4734_v17  ;;  %v5303_v20 = vmul.f32 %v5173_v14, %v2823_v50  ;;  %v5306_v22 = vmul.f32 %v5120_v36, %v3559_v62  ;;  %v2578_v33 = vrot.slane %v5253_v8, 5  ;;  %v5314_v21 = vmul.f32 %v5128_v44, %v5253_v8 }
 0x10b   : > { %v4383_v34 = vpop.f32.mrf.mxu0  ;;  %v5309_v40 = vpack.c.bf16 %v1315_v1, %v1313_v24  ;;  %v5323_v11 = vmul.f32 %v5115_v35, %v5253_v8  ;;  %v1253_v24 = vadd.f32 %v1252_v16, %v5107_v26  ;;  %v4737_v16 = vld [vmem:[%s7962_s6 + $0x20] sm:$0xff]   ;;  %v5354_v3 = vmul.f32 %v5265_v25, %v5115_v35 }
 0x10c   : > { %8169 = vst [vmem:[#allocation29_spill] sm:$0xff] %v5303_v20  ;;  %8170 = vst [vmem:[#allocation30_spill] sm:$0xff] %v5306_v22  ;;  %v1260_v18 = vpop.f32.mrf.mxu1  ;;  %v2641_v50 = vsel %vm2616_vm2, %v2578_v33, %v2579_v6  ;;  %v2642_v62 = vsel %vm2616_vm2, %v2577_v12, %v2578_v33  ;;  %v5338_v12 = vmul.f32 %v5265_v25, %v5211_v42  ;;  %v1839_v22 = vrot.slane %v5284_v51, 6 }
 0x10d   : > { %8171 = vst [vmem:[#allocation31_spill] sm:$0xff] %v5314_v21  ;;  %8172 = vst [vmem:[#allocation32_spill] sm:$0xff] %v5323_v11  ;;  %v5326_v1 = vpop.f32.mrf.mxu0  ;;  %4467 = vmatpush3.bf16.msra.mxu1 %v4734_v17  ;;  %v5330_v48 = vmul.f32 %v5187_v28, %v2642_v62  ;;  %v5333_v32 = vmul.f32 %v5187_v28, %v2641_v50  ;;  %v1316_v7 = vmax.f32 %v1253_v24, 0.0  ;;  %v1841_v17 = vrot.slane %v5265_v25, 6 }
 0x10e   : > { %8173 = vst [vmem:[#allocation33_spill] sm:$0xff] %v5326_v1  ;;  %v1262_v33 = vpop.f32.mrf.mxu1  ;;  %4468 = vmatprep.subr.bf16.mxu1 %v4736_v15  ;;  %v5346_v62 = vmul.f32 %v5265_v25, %v5128_v44  ;;  %v1257_v28 = vadd.f32 %v1256_v37, %v5105_v23  ;;  %8178 = vst [vmem:[#allocation38_spill] sm:$0xff] %v5354_v3  ;;  %v5358_v24 = vadd.f32 %v1258_v9, %v5107_v26 }
 0x10f   : > { %8174 = vst [vmem:[#allocation34_spill] sm:$0xff] %v5330_v48  ;;  %8175 = vst [vmem:[#allocation35_spill] sm:$0xff] %v5333_v32  ;;  %v5349_v50 = vpop.f32.mrf.mxu0  ;;  %v1363_v38 = vpack.c.bf16 %v1316_v7, %v1314_v47  ;;  %v7968_v11 = vrot.slane %v5265_v25, 2  ;;  %v2015_v37 = vrot.slane %v4383_v34, 2  ;;  %v7969_v35 = vrot.slane %v5265_v25, 3  ;;  %v4738_v47 = vld [vmem:[%s7962_s6 + $0x18] sm:$0xff]  }
 0x110   : > { %8176 = vst [vmem:[#allocation36_spill] sm:$0xff] %v5346_v62  ;;  %8177 = vst [vmem:[#allocation37_spill] sm:$0xff] %v5349_v50  ;;  %v1266_v46 = vpop.f32.mrf.mxu1  ;;  %v1317_v6 = vmax.f32 %v1257_v28, 0.0  ;;  %v2764_v3 = vrot.slane %v4383_v34, 3  ;;  %v7970_v9 = vrot.slane %v5265_v25, 4  ;;  %v1261_v28 = vadd.f32 %v1260_v18, %v5105_v23 }
 0x111   : > { %v5362_v58 = vpop.f32.mrf.mxu0  ;;  %4469 = vmatpush3.bf16.msra.mxu1 %v4736_v15  ;;  %v2067_v7 = vsel %vm2046_vm3, %v7968_v11, %v2015_v37  ;;  %v3533_v15 = vrot.slane %v4383_v34, 4  ;;  %4452 = vmatprep.mubr.bf16.mxu1 %v1363_v38  ;;  %v1318_v63 = vmax.f32 %v5358_v24, 0.0  ;;  %v5382_v54 = vmul.f32 %v5211_v42, %v5326_v1  ;;  %v5463_v62 = vld [vmem:[%s7959_s3 + $0x1e] ss:$0 sm:$0xff] }
 0x112   : > { %8179 = vst [vmem:[#allocation39_spill] sm:$0xff] %v5362_v58  ;;  %v1268_v10 = vpop.f32.mrf.mxu1  ;;  %4470 = vmatprep.subr.bf16.mxu1 %v4737_v16  ;;  %v2821_v41 = vsel %vm2798_vm1, %v7969_v35, %v2764_v3  ;;  %v1840_v37 = vrot.slane %v5326_v1, 6  ;;  %v5386_v34 = vmul.f32 %v5270_v29, %v2067_v7  ;;  %v1319_v18 = vmax.f32 %v1261_v28, 0.0 }
 0x113   : > { %v4387_v57 = vpop.f32.mrf.mxu0  ;;  %v3558_v38 = vsel %vm3386_vm0, %v7970_v9, %v3533_v15  ;;  %v5396_v3 = vmul.f32 %v5173_v14, %v2821_v41  ;;  %v5409_v15 = vmul.f32 %v5128_v44, %v5326_v1  ;;  %v4739_v41 = vld [vmem:[%s7962_s6 + $0x10] sm:$0xff]   ;;  %v1263_v49 = vadd.f32 %v1262_v33, %v5107_v26 }
 0x114   : > { %v1270_v11 = vpop.f32.mrf.mxu1  ;;  %8180 = vst [vmem:[#allocation40_spill] sm:$0xff] %v5386_v34  ;;  %v1895_v35 = vsel %vm1874_vm4, %v1840_v37, %v1841_v17  ;;  %v1896_v7 = vsel %vm1874_vm4, %v1839_v22, %v1840_v37  ;;  %v5417_v17 = vpack.c.bf16 %v1319_v18, %v1317_v6  ;;  %v5432_v6 = vadd.f32 %v1266_v46, %v5105_v23 }
 0x115   : > { %v5393_v0 = vpop.f32.mrf.mxu0  ;;  %4471 = vmatpush3.bf16.msra.mxu1 %v4737_v16  ;;  %8182 = vst [vmem:[#allocation42_spill] sm:$0xff] %v5396_v3  ;;  %8183 = vst [vmem:[#allocation43_spill] sm:$0xff] %v5409_v15  ;;  %v5415_v16 = vmul.f32 %v5120_v36, %v3558_v38  ;;  %v5420_v22 = vmul.f32 %v5405_v61, %v1896_v7  ;;  %v5426_v44 = vmul.f32 %v5405_v61, %v1895_v35  ;;  %v5440_v35 = vld [vmem:[%s7959_s3 + $0x6] ss:$0 sm:$0xff]  ;;  %v5449_v7 = vld [vmem:[%s7959_s3 + $0x12] ss:$0 sm:$0xff] }
 0x116   : > { %8181 = vst [vmem:[#allocation41_spill] sm:$0xff] %v5393_v0  ;;  %v1272_v28 = vpop.f32.mrf.mxu1  ;;  %4472 = vmatprep.subr.bf16.mxu1 %v4738_v47  ;;  %v1269_v37 = vadd.f32 %v1268_v10, %v5107_v26  ;;  %v1320_v60 = vmax.f32 %v1263_v49, 0.0  ;;  %v7973_v46 = vrot.slane %v5349_v50, 2  ;;  %v2767_v55 = vrot.slane %v4387_v57, 3  ;;  %v4741_v49 = vld [vmem:[%s7962_s6 + $0x8] sm:$0xff]  }
 0x117   : > { %8184 = vst [vmem:[#allocation44_spill] sm:$0xff] %v5415_v16  ;;  %v5423_v9 = vpop.f32.mrf.mxu0  ;;  %v2018_v16 = vrot.slane %v4387_v57, 2  ;;  %v3534_v51 = vrot.slane %v4387_v57, 4  ;;  %v1271_v18 = vadd.f32 %v1270_v11, %v5105_v23  ;;  %v1273_v57 = vadd.f32 %v1272_v28, %v5107_v26 }
 0x118   : > { %8185 = vst [vmem:[#allocation45_spill] sm:$0xff] %v5423_v9  ;;  %v1276_v38 = vpop.f32.mrf.mxu1  ;;  %v1364_v33 = vpack.c.bf16 %v1320_v60, %v1318_v63  ;;  %v1321_v20 = vmax.f32 %v5432_v6, 0.0  ;;  %v1322_v32 = vmax.f32 %v1269_v37, 0.0  ;;  %v8187_v60 = vrot.slane %v5349_v50, 3 }
 0x119   : > { %v5442_v24 = vpop.f32.mrf.mxu0  ;;  %4473 = vmatpush3.bf16.msra.mxu1 %v4738_v47  ;;  %v2065_v15 = vsel %vm2046_vm3, %v7973_v46, %v2018_v16  ;;  %v8188_v16 = vrot.slane %v5349_v50, 4  ;;  %v7974_v53 = vrot.slane %v5423_v9, 3 }
 0x11a   : > { %8186 = vst [vmem:[#allocation46_spill] sm:$0xff] %v5442_v24  ;;  %v1278_v10 = vpop.f32.mrf.mxu1  ;;  %4474 = vmatprep.subr.bf16.mxu1 %v4739_v41  ;;  %v2819_v63 = vsel %vm2798_vm1, %v8187_v60, %v2767_v55  ;;  %v5479_v11 = vmul.f32 %v5270_v29, %v2065_v15  ;;  %v5482_v28 = vmul.f32 %v5440_v35, %v2065_v15  ;;  %v1324_v15 = vmax.f32 %v1273_v57, 0.0 }
 0x11b   : > { %v4391_v47 = vpop.f32.mrf.mxu0  ;;  %v3557_v46 = vsel %vm3386_vm0, %v8188_v16, %v3534_v51  ;;  %v5485_v37 = vmul.f32 %v5173_v14, %v2819_v63  ;;  %v5488_v6 = vmul.f32 %v5449_v7, %v2819_v63  ;;  %4453 = vmatmul.mubr.bf16.gmra.mxu1 %v1364_v33  ;;  %v4742_v51 = vld [vmem:[%s7962_s6] sm:$0xff]   ;;  %v1277_v16 = vadd.f32 %v1276_v38, %v5105_v23 }
 0x11c   : > { %v1280_v3 = vpop.f32.mrf.mxu1  ;;  %8190 = vst [vmem:[#allocation48_spill] sm:$0xff] %v5479_v11  ;;  %v5497_v60 = vmul.f32 %v5463_v62, %v3557_v46  ;;  %v1323_v63 = vmax.f32 %v1271_v18, 0.0  ;;  %v1279_v21 = vadd.f32 %v1278_v10, %v5107_v26  ;;  %v1365_v31 = vpack.c.bf16 %v1324_v15, %v1322_v32  ;;  %v5514_v32 = vld [vmem:[%s7962_s6 + $0xf8] sm:$0xff]  }
 0x11d   : > { %v5476_v48 = vpop.f32.mrf.mxu0  ;;  %4475 = vmatpush3.bf16.msra.mxu1 %v4739_v41  ;;  %8191 = vst [vmem:[#allocation49_spill] sm:$0xff] %v5485_v37  ;;  %8192 = vst [vmem:[#allocation50_spill] sm:$0xff] %v5488_v6  ;;  %v5494_v41 = vmul.f32 %v5120_v36, %v3557_v46  ;;  %v7975_v46 = vrot.slane %v5423_v9, 2  ;;  %v1325_v38 = vmax.f32 %v1277_v16, 0.0  ;;  %v2770_v18 = vrot.slane %v4391_v47, 3 }
 0x11e   : > { %8189 = vst [vmem:[#allocation47_spill] sm:$0xff] %v5476_v48  ;;  %v1282_v55 = vpop.f32.mrf.mxu1  ;;  %8194 = vst [vmem:[#allocation52_spill] sm:$0xff] %v5497_v60  ;;  %4476 = vmatprep.subr.bf16.mxu1 %v4741_v49  ;;  %v2021_v60 = vrot.slane %v4391_v47, 2  ;;  %v3535_v15 = vrot.slane %v4391_v47, 4  ;;  %4456 = vmatprep.mubr.bf16.mxu1 %v1365_v31  ;;  %v5522_v37 = vpack.c.bf16 %v1323_v63, %v1321_v20  ;;  %v1326_v33 = vmax.f32 %v1279_v21, 0.0 }
 0x11f   : > { %8193 = vst [vmem:[#allocation51_spill] sm:$0xff] %v5494_v41  ;;  %v5500_v5 = vpop.f32.mrf.mxu0  ;;  %v1283_v16 = vadd.f32 %v1282_v55, %v5107_v26  ;;  %v2817_v45 = vsel %vm2798_vm1, %v7974_v53, %v2770_v18  ;;  %v8199_v31 = vrot.slane %v5423_v9, 4 }
 0x120   : > { %8195 = vst [vmem:[#allocation53_spill] sm:$0xff] %v5500_v5  ;;  %v1286_v6 = vpop.f32.mrf.mxu1  ;;  %v2063_v10 = vsel %vm2046_vm3, %v7975_v46, %v2021_v60  ;;  %v5542_v55 = vmul.f32 %v5173_v14, %v2817_v45  ;;  %v8207_v11 = vrot.slane %v5500_v5, 3 }
 0x121   : > { %v5507_v57 = vpop.f32.mrf.mxu0  ;;  %4477 = vmatpush3.bf16.msra.mxu1 %v4741_v49  ;;  %v1281_v49 = vadd.f32 %v1280_v3, %v5105_v23  ;;  %v1287_v56 = vadd.f32 %v1286_v6, %v5105_v23  ;;  %v5530_v60 = vmul.f32 %v5270_v29, %v2063_v10  ;;  %v5533_v3 = vmul.f32 %v5440_v35, %v2063_v10 }
 0x122   : > { %8196 = vst [vmem:[#allocation54_spill] sm:$0xff] %v5507_v57  ;;  %v1288_v52 = vpop.f32.mrf.mxu1  ;;  %4478 = vmatprep.subr.bf16.mxu1 %v4742_v51  ;;  %v3556_v20 = vsel %vm3386_vm0, %v8199_v31, %v3535_v15  ;;  %8201 = vst [vmem:[#allocation58_spill] sm:$0xff] %v5542_v55  ;;  %v5545_v6 = vmul.f32 %v5449_v7, %v2817_v45  ;;  %v1328_v18 = vmax.f32 %v1283_v16, 0.0  ;;  %v7978_v55 = vrot.slane %v5500_v5, 2 }
 0x123   : > { %v4395_v41 = vpop.f32.mrf.mxu0  ;;  %8197 = vst [vmem:[#allocation55_spill] sm:$0xff] %v5530_v60  ;;  %8198 = vst [vmem:[#allocation56_spill] sm:$0xff] %v5533_v3  ;;  %v1327_v21 = vmax.f32 %v1281_v49, 0.0  ;;  %v5548_v63 = vmul.f32 %v5120_v36, %v3556_v20  ;;  %v5552_v53 = vmul.f32 %v5463_v62, %v3556_v20  ;;  %v1329_v49 = vmax.f32 %v1287_v56, 0.0  ;;  %v5565_v20 = vld [vmem:[%s7959_s3 + $0xa] ss:$0 sm:$0xff] }
 0x124   : > { %v1290_v27 = vpop.f32.mrf.mxu1  ;;  %8202 = vst [vmem:[#allocation59_spill] sm:$0xff] %v5545_v6  ;;  %v1366_v46 = vpack.c.bf16 %v1328_v18, %v1326_v33  ;;  %v1289_v45 = vadd.f32 %v1288_v52, %v5107_v26  ;;  %v7979_v33 = vrot.slane %v5500_v5, 4  ;;  %v5598_v60 = vld [vmem:[%s7962_s6 + $0x138] sm:$0xff]  }
 0x125   : > { %v5539_v47 = vpop.f32.mrf.mxu0  ;;  %4479 = vmatpush3.bf16.msra.mxu1 %v4742_v51  ;;  %8203 = vst [vmem:[#allocation60_spill] sm:$0xff] %v5548_v63  ;;  %8204 = vst [vmem:[#allocation61_spill] sm:$0xff] %v5552_v53  ;;  %v5554_v15 = vpack.c.bf16 %v1327_v21, %v1325_v38  ;;  %v2024_v63 = vrot.slane %v4395_v41, 2  ;;  %v2773_v38 = vrot.slane %v4395_v41, 3  ;;  %v3536_v21 = vrot.slane %v4395_v41, 4  ;;  %4560 = vmatprep.subr.bf16.mxu0 %v5598_v60 }
 0x126   : > { %8200 = vst [vmem:[#allocation57_spill] sm:$0xff] %v5539_v47  ;;  %v1292_v10 = vpop.f32.mrf.mxu1  ;;  %4528 = vmatprep.subr.bf16.mxu1 %v5514_v32  ;;  %v1291_v18 = vadd.f32 %v1290_v27, %v5105_v23  ;;  %4457 = vmatmul.mubr.bf16.gmra.mxu1 %v1366_v46  ;;  %v1330_v56 = vmax.f32 %v1289_v45, 0.0  ;;  %8209 = vst [vmem:[#allocation65_spill] sm:$0xff] %v5598_v60 }
 0x127   : > { %v5557_v31 = vpop.f32.mrf.mxu0  ;;  %v2061_v52 = vsel %vm2046_vm3, %v7978_v55, %v2024_v63  ;;  %v1293_v6 = vadd.f32 %v1292_v10, %v5107_v26  ;;  %v2815_v42 = vsel %vm2798_vm1, %v8207_v11, %v2773_v38  ;;  %v3555_v46 = vsel %vm3386_vm0, %v7979_v33, %v3536_v21 }
 0x128   : > { %v1296_v16 = vpop.f32.mrf.mxu1  ;;  %v5579_v41 = vmul.f32 %v5270_v29, %v2061_v52  ;;  %v5586_v55 = vmul.f32 %v5440_v35, %v2061_v52  ;;  %v5589_v27 = vmul.f32 %v5565_v20, %v2061_v52  ;;  %v1331_v10 = vmax.f32 %v1291_v18, 0.0 }
 0x129   : > { %v5568_v51 = vpop.f32.mrf.mxu0  ;;  %v5601_v11 = vmul.f32 %v5173_v14, %v2815_v42  ;;  %v5604_v38 = vmul.f32 %v5449_v7, %v2815_v42  ;;  %v1332_v52 = vmax.f32 %v1293_v6, 0.0  ;;  %v5610_v21 = vmul.f32 %v5120_v36, %v3555_v46 }
 0x12a   : > { %8205 = vst [vmem:[#allocation62_spill] sm:$0xff] %v5568_v51  ;;  %v1298_v53 = vpop.f32.mrf.mxu1  ;;  %8206 = vst [vmem:[#allocation63_spill] sm:$0xff] %v5579_v41  ;;  %v1297_v41 = vadd.f32 %v1296_v16, %v5105_v23  ;;  %v5613_v18 = vmul.f32 %v5463_v62, %v3555_v46  ;;  %v5615_v33 = vpack.c.bf16 %v1331_v10, %v1329_v49  ;;  %v7982_v49 = vrot.slane %v5557_v31, 3 }
 0x12b   : > { %v4399_v63 = vpop.f32.mrf.mxu0  ;;  %8208 = vst [vmem:[#allocation64_spill] sm:$0xff] %v5586_v55  ;;  %8210 = vst [vmem:[#allocation66_spill] sm:$0xff] %v5601_v11  ;;  %v1367_v42 = vpack.c.bf16 %v1332_v52, %v1330_v56  ;;  %v1299_v11 = vadd.f32 %v1298_v53, %v5107_v26 }
 0x12c   : > { %v1300_v45 = vpop.f32.mrf.mxu1  ;;  %8211 = vst [vmem:[#allocation67_spill] sm:$0xff] %v5604_v38  ;;  %8212 = vst [vmem:[#allocation68_spill] sm:$0xff] %v5610_v21  ;;  %v7983_v21 = vrot.slane %v5557_v31, 2  ;;  %v2027_v46 = vrot.slane %v4399_v63, 2  ;;  %v2776_v10 = vrot.slane %v4399_v63, 3  ;;  %v3537_v3 = vrot.slane %v4399_v63, 4 }
 0x12d   : > { %v5607_v55 = vpop.f32.mrf.mxu0  ;;  %8213 = vst [vmem:[#allocation69_spill] sm:$0xff] %v5613_v18  ;;  %v1333_v18 = vmax.f32 %v1297_v41, 0.0  ;;  %v1301_v1 = vadd.f32 %v1300_v45, %v5105_v23  ;;  %4460 = vmatprep.mubr.bf16.mxu1 %v1367_v42  ;;  %v1334_v16 = vmax.f32 %v1299_v11, 0.0  ;;  %v5641_v23 = vld [vmem:[%s7959_s3 + $0x16] ss:$0 sm:$0xff] }
 0x12e   : > { %v1302_v34 = vpop.f32.mrf.mxu1  ;;  %v2059_v53 = vsel %vm2046_vm3, %v7983_v21, %v2027_v46  ;;  %v2813_v6 = vsel %vm2798_vm1, %v7982_v49, %v2776_v10 }
 0x12f   : > { %v5622_v38 = vpop.f32.mrf.mxu0  ;;  %v1303_v56 = vadd.f32 %v1302_v34, %v5107_v26  ;;  %v7984_v26 = vrot.slane %v5557_v31, 4  ;;  %v5645_v34 = vmul.f32 %v5270_v29, %v2059_v53  ;;  %v5648_v41 = vmul.f32 %v5440_v35, %v2059_v53 }
 0x130   : > { %8214 = vst [vmem:[#allocation70_spill] sm:$0xff] %v5622_v38  ;;  %v5653_v42 = vmul.f32 %v5565_v20, %v2059_v53  ;;  %v5656_v46 = vmul.f32 %v5173_v14, %v2813_v6  ;;  %v1335_v49 = vmax.f32 %v1301_v1, 0.0  ;;  %v5663_v21 = vmul.f32 %v5449_v7, %v2813_v6 }
 0x131   : > { %v5628_v52 = vpop.f32.mrf.mxu0  ;;  %8216 = vst [vmem:[#allocation72_spill] sm:$0xff] %v5645_v34  ;;  %8217 = vst [vmem:[#allocation73_spill] sm:$0xff] %v5648_v41  ;;  %v3554_v10 = vsel %vm3386_vm0, %v7984_v26, %v3537_v3  ;;  %v5666_v63 = vmul.f32 %v5641_v23, %v2813_v6  ;;  %v1336_v53 = vmax.f32 %v1303_v56, 0.0  ;;  %v7987_v3 = vrot.slane %v5622_v38, 2  ;;  %v5691_v41 = vld [vmem:[%s7959_s3 + $0x22] ss:$0 sm:$0xff] }
 0x132   : > { %8215 = vst [vmem:[#allocation71_spill] sm:$0xff] %v5628_v52  ;;  %8218 = vst [vmem:[#allocation74_spill] sm:$0xff] %v5656_v46  ;;  %v5669_v45 = vmul.f32 %v5120_v36, %v3554_v10  ;;  %v5674_v46 = vmul.f32 %v5463_v62, %v3554_v10  ;;  %v5681_v36 = vpack.c.bf16 %v1335_v49, %v1333_v18  ;;  %v4746_v52 = vld [vmem:[%s7962_s6 + $0xf0] sm:$0xff]  }
 0x133   : > { %v4403_v11 = vpop.f32.mrf.mxu0  ;;  %8219 = vst [vmem:[#allocation75_spill] sm:$0xff] %v5663_v21  ;;  %8220 = vst [vmem:[#allocation76_spill] sm:$0xff] %v5666_v63  ;;  %v1368_v26 = vpack.c.bf16 %v1336_v53, %v1334_v16  ;;  %v7988_v21 = vrot.slane %v5622_v38, 3 }
 0x134   : > { %8221 = vst [vmem:[#allocation77_spill] sm:$0xff] %v5669_v45  ;;  %8223 = vst [vmem:[#allocation79_spill] sm:$0xff] %v5674_v46  ;;  %v2030_v1 = vrot.slane %v4403_v11, 2  ;;  %v2779_v60 = vrot.slane %v4403_v11, 3  ;;  %v3538_v6 = vrot.slane %v4403_v11, 4  ;;  %v8230_v46 = vrot.slane %v5622_v38, 4 }
 0x135   : > { %v5671_v34 = vpop.f32.mrf.mxu0  ;;  %4461 = vmatmul.mubr.bf16.gmra.mxu1 %v1368_v26  ;;  %v5722_v26 = vld [vmem:[%s7959_s3 + $0x5] ss:$0 sm:$0xff]  ;;  %v5740_v45 = vld [vmem:[%s7959_s3 + $0x9] ss:$0 sm:$0xff] }
 0x136   : > { %8222 = vst [vmem:[#allocation78_spill] sm:$0xff] %v5671_v34  ;;  %v2057_v56 = vsel %vm2046_vm3, %v7987_v3, %v2030_v1  ;;  %v2811_v18 = vsel %vm2798_vm1, %v7988_v21, %v2779_v60  ;;  %v3553_v60 = vsel %vm3386_vm0, %v8230_v46, %v3538_v6  ;;  %4480 = vmatprep.mubr.bf16.mxu1 %v5154_v59 }
 0x137   : > { %v5679_v63 = vpop.f32.mrf.mxu0  ;;  %v5695_v11 = vmul.f32 %v5270_v29, %v2057_v56  ;;  %v5706_v3 = vmul.f32 %v5440_v35, %v2057_v56  ;;  %v5709_v16 = vmul.f32 %v5565_v20, %v2057_v56  ;;  %v5712_v10 = vmul.f32 %v5173_v14, %v2811_v18 }
 0x138   : > { %8224 = vst [vmem:[#allocation80_spill] sm:$0xff] %v5679_v63  ;;  %v5725_v21 = vmul.f32 %v5449_v7, %v2811_v18  ;;  %v5728_v56 = vmul.f32 %v5641_v23, %v2811_v18  ;;  %v5731_v14 = vmul.f32 %v5463_v62, %v3553_v60  ;;  %v5734_v1 = vmul.f32 %v5691_v41, %v3553_v60 }
 0x139   : > { %8225 = vst [vmem:[#allocation81_spill] sm:$0xff] %v5695_v11  ;;  %v5701_v49 = vpop.f32.mrf.mxu0  ;;  %8227 = vst [vmem:[#allocation83_spill] sm:$0xff] %v5706_v3  ;;  %v1766_v11 = vmul.f32 %v5722_v26, %v5393_v0  ;;  %v1767_v60 = vmul.f32 %v5349_v50, %v5722_v26 }
 0x13a   : > { %8226 = vst [vmem:[#allocation82_spill] sm:$0xff] %v5701_v49  ;;  %8228 = vst [vmem:[#allocation84_spill] sm:$0xff] %v5709_v16  ;;  %v1843_v16 = vrot.slane %v5393_v0, 6 }
 0x13b   : > { %8229 = vst [vmem:[#allocation85_spill] sm:$0xff] %v5712_v10  ;;  %8231 = vst [vmem:[#allocation86_spill] sm:$0xff] %v5725_v21  ;;  %v4407_v46 = vpop.f32.mrf.mxu0  ;;  %v8237_v21 = vrot.slane %v5679_v63, 3 }
 0x13c   : > { %8232 = vst [vmem:[#allocation87_spill] sm:$0xff] %v5728_v56  ;;  %8233 = vst [vmem:[#allocation88_spill] sm:$0xff] %v5731_v14  ;;  %v2033_v6 = vrot.slane %v4407_v46, 2  ;;  %v2782_v53 = vrot.slane %v4407_v46, 3  ;;  %v3539_v10 = vrot.slane %v4407_v46, 4  ;;  %v1804_v14 = vmul.f32 %v5740_v45, %v5539_v47 }
 0x13d   : > { %8234 = vst [vmem:[#allocation89_spill] sm:$0xff] %v5734_v1  ;;  %v5749_v59 = vpop.f32.mrf.mxu0  ;;  %v8236_v46 = vrot.slane %v5679_v63, 2  ;;  %v8238_v56 = vrot.slane %v5679_v63, 4  ;;  %4481 = vmatmul.mubr.bf16.vlgmr.msra.gmra.mxu1 %v5201_v39 }
 0x13e   : > { %8235 = vst [vmem:[#allocation90_spill] sm:$0xff] %v5749_v59  ;;  %v2809_v18 = vsel %vm2798_vm1, %v8237_v21, %v2782_v53  ;;  %4484 = vmatprep.mubr.bf16.mxu1 %v5309_v40  ;;  %4529 = vmatpush3.bf16.msra.mxu1 %v5514_v32 }
 0x13f   : > { %v2055_v1 = vsel %vm2046_vm3, %v8236_v46, %v2033_v6  ;;  %v3552_v3 = vsel %vm3386_vm0, %v8238_v56, %v3539_v10  ;;  %v1805_v6 = vmul.f32 %v5500_v5, %v5740_v45  ;;  %v5773_v46 = vpop.f32.mrf.mxu0  ;;  %v5779_v10 = vmul.f32 %v5449_v7, %v2809_v18  ;;  %4530 = vmatprep.subr.bf16.mxu1 %v4746_v52 }
 0x140   : > { %v5766_v59 = vmul.f32 %v5270_v29, %v2055_v1  ;;  %v5769_v38 = vmul.f32 %v5440_v35, %v2055_v1  ;;  %8241 = vst [vmem:[#allocation93_spill] sm:$0xff] %v5773_v46  ;;  %v5776_v21 = vmul.f32 %v5565_v20, %v2055_v1  ;;  %v5782_v53 = vmul.f32 %v5641_v23, %v2809_v18 }
 0x141   : > { %8243 = vst [vmem:[#allocation95_spill] sm:$0xff] %v5779_v10  ;;  %v1782_v56 = vadd.f32 %v1766_v11, %v5293_v4  ;;  %v1849_v1 = vrot.slane %v5539_v47, 6  ;;  %v8245_v18 = vrot.slane %v5362_v58, 6  ;;  %v8246_v11 = vrot.slane %v5189_v30, 6 }
 0x142   : > { %8239 = vst [vmem:[#allocation91_spill] sm:$0xff] %v5766_v59  ;;  %8240 = vst [vmem:[#allocation92_spill] sm:$0xff] %v5769_v38  ;;  %v1783_v59 = vadd.f32 %v1767_v60, %v5240_v2  ;;  %v1844_v38 = vrot.slane %v5349_v50, 6  ;;  %v8249_v60 = vrot.slane %v5213_v43, 6  ;;  %v5820_v58 = vmul.f32 %v5463_v62, %v3552_v3  ;;  %4531 = vmatpush3.bf16.msra.mxu1 %v4746_v52 }
 0x143   : > { %8242 = vst [vmem:[#allocation94_spill] sm:$0xff] %v5776_v21  ;;  %8244 = vst [vmem:[#allocation96_spill] sm:$0xff] %v5782_v53  ;;  %v1850_v21 = vrot.slane %v5500_v5, 6  ;;  %v1820_v10 = vadd.f32 %v1804_v14, %v1782_v56  ;;  %v5797_v4 = vsel %vm1874_vm4, %v8245_v18, %v1843_v16  ;;  %v8247_v53 = vrot.slane %v5253_v8, 6  ;;  %v5814_v56 = vld [vmem:[%s7959_s3 + $0x4] ss:$0 sm:$0xff]  ;;  %v5817_v18 = vpop.f32.mrf.mxu0 }
 0x144   : > { %8250 = vst [vmem:[#allocation97_spill] sm:$0xff] %v5817_v18  ;;  %8251 = vst [vmem:[#allocation98_spill] sm:$0xff] %v5820_v58  ;;  %v5837_v40 = vmul.f32 %v5691_v41, %v3552_v3  ;;  %v1941_v32 = vmul.f32 %v5814_v56, %v5797_v4  ;;  %v2016_v58 = vrot.slane %v5393_v0, 2  ;;  %v8256_v43 = vrot.slane %v5253_v8, 2 }
 0x145   : > { %v1897_v39 = vsel %vm1874_vm4, %v8247_v53, %v8246_v11  ;;  %v8248_v2 = vmov %v8247_v53  ;;  %v1821_v53 = vadd.f32 %v1805_v6, %v1783_v59  ;;  %v5824_v11 = vsel %vm1874_vm4, %v1849_v1, %v1850_v21  ;;  %v4411_v49 = vpop.f32.mrf.mxu0  ;;  %4485 = vmatmul.mubr.bf16.gmra.mxu1 %v5417_v17 }
 0x146   : > { %v1898_v14 = vsel %vm1874_vm4, %v8249_v60, %v8248_v2  ;;  %v5828_v2 = vsel %vm1874_vm4, %v1843_v16, %v1844_v38  ;;  %v5833_v60 = vld [vmem:[%s7959_s3 + $0x8] ss:$0 sm:$0xff]  ;;  %8253 = vst [vmem:[#allocation100_spill] sm:$0xff] %v5837_v40  ;;  %v8254_v59 = vrot.slane %v5507_v57, 6  ;;  %v1905_v38 = vmul.f32 %v5405_v61, %v1897_v39  ;;  %4488 = vmatprep.mubr.bf16.mxu1 %v5522_v37 }
 0x147   : > { %8252 = vst [vmem:[#allocation99_spill] sm:$0xff] %v5828_v2  ;;  %v1904_v21 = vmul.f32 %v5405_v61, %v1898_v14  ;;  %v4747_v16 = vld [vmem:[%s7962_s6 + $0xe8] sm:$0xff]   ;;  %v1942_v3 = vmul.f32 %v5814_v56, %v5828_v2  ;;  %v1979_v39 = vmul.f32 %v5833_v60, %v5824_v11  ;;  %v8255_v14 = vrot.slane %v5189_v30, 2 }
 0x148   : > { %v5843_v6 = vsel %vm1874_vm4, %v8254_v59, %v1849_v1  ;;  %v2022_v1 = vrot.slane %v5539_v47, 2  ;;  %v1921_v40 = vadd.f32 %v1905_v38, %v1821_v53  ;;  %v8257_v2 = vrot.slane %v5500_v5, 2  ;;  %4532 = vmatprep.subr.bf16.mxu1 %v4747_v16 }
 0x149   : > { %v1920_v59 = vadd.f32 %v1904_v21, %v1820_v10  ;;  %v2070_v57 = vsel %vm2046_vm3, %v8256_v43, %v8255_v14  ;;  %v1978_v63 = vmul.f32 %v5833_v60, %v5843_v6  ;;  %v8258_v53 = vrot.slane %v5349_v50, 2  ;;  %4533 = vmatpush3.bf16.msra.mxu1 %v4747_v16 }
 0x14a   : > { %v5870_v10 = vsel %vm2046_vm3, %v2022_v1, %v8257_v2  ;;  %v1958_v14 = vadd.f32 %v1942_v3, %v1921_v40  ;;  %v2076_v8 = vmul.f32 %v5270_v29, %v2070_v57  ;;  %v4748_v2 = vld [vmem:[%s7962_s6 + $0xe0] sm:$0xff]   ;;  %v2785_v57 = vrot.slane %v4411_v49, 3  ;;  %v5890_v3 = vpop.f32.mrf.mxu0 }
 0x14b   : > { %v5876_v21 = vsel %vm2046_vm3, %v2016_v58, %v8258_v53  ;;  %v1957_v43 = vadd.f32 %v1941_v32, %v1920_v59  ;;  %v8008_v58 = vrot.slane %v5773_v46, 2  ;;  %v2036_v53 = vrot.slane %v4411_v49, 2  ;;  %8259 = vst [vmem:[#allocation101_spill] sm:$0xff] %v5890_v3  ;;  %4534 = vmatprep.subr.bf16.mxu1 %v4748_v2 }
 0x14c   : > { %v2113_v1 = vmul.f32 %v5440_v35, %v5876_v21  ;;  %v1995_v40 = vadd.f32 %v1979_v39, %v1958_v14  ;;  %v8009_v32 = vrot.slane %v5773_v46, 4  ;;  %v3540_v30 = vrot.slane %v4411_v49, 4  ;;  %v4749_v49 = vld [vmem:[%s7962_s6 + $0xd8] sm:$0xff]  }
 0x14d   : > { %v1994_v52 = vadd.f32 %v1978_v63, %v1957_v43  ;;  %v2053_v59 = vsel %vm2046_vm3, %v8008_v58, %v2036_v53  ;;  %v1768_v38 = vmul.f32 %v5722_v26, %v5476_v48  ;;  %v1769_v17 = vmul.f32 %v5423_v9, %v5722_v26  ;;  %4535 = vmatpush3.bf16.msra.mxu1 %v4748_v2 }
 0x14e   : > { %v2093_v39 = vadd.f32 %v5300_v13, %v1995_v40  ;;  %v2150_v43 = vmul.f32 %v5565_v20, %v5870_v10  ;;  %v5909_v14 = vmul.f32 %v5440_v35, %v2053_v59  ;;  %v5912_v53 = vmul.f32 %v5565_v20, %v2053_v59  ;;  %v5930_v59 = vld [vmem:[%s7960_s4] ss:$0 sm:$0xff]  ;;  %4536 = vmatprep.subr.bf16.mxu1 %v4749_v49 }
 0x14f   : > { %v2092_v63 = vadd.f32 %v2076_v8, %v1994_v52  ;;  %v8262_v8 = vrot.slane %v5773_v46, 3  ;;  %v3551_v16 = vsel %vm3386_vm0, %v8009_v32, %v3540_v30  ;;  %v1784_v37 = vadd.f32 %v1768_v38, %v5382_v54  ;;  %4489 = vmatmul.mubr.bf16.gmra.mxu1 %v5554_v15 }
 0x150   : > { %8260 = vst [vmem:[#allocation102_spill] sm:$0xff] %v5909_v14  ;;  %8261 = vst [vmem:[#allocation103_spill] sm:$0xff] %v5912_v53  ;;  %v2130_v40 = vadd.f32 %v5482_v28, %v2093_v39  ;;  %v1785_v58 = vadd.f32 %v1769_v17, %v5338_v12  ;;  %v5925_v14 = vpop.f32.mrf.mxu0  ;;  %v1806_v30 = vmul.f32 %v5740_v45, %v5607_v55  ;;  %v1846_v38 = vrot.slane %v5476_v48, 6  ;;  %v4750_v17 = vld [vmem:[%s7962_s6 + $0xd0] sm:$0xff]  }
 0x151   : > { %v2807_v13 = vsel %vm2798_vm1, %v8262_v8, %v2785_v57  ;;  %v2129_v52 = vadd.f32 %v2113_v1, %v2092_v63  ;;  %8263 = vst [vmem:[#allocation104_spill] sm:$0xff] %v5925_v14  ;;  %v1807_v54 = vmul.f32 %v5557_v31, %v5740_v45  ;;  %v1847_v1 = vrot.slane %v5423_v9, 6  ;;  %4492 = vmatprep.mubr.bf16.mxu1 %v5615_v33 }
 0x152   : > { %v5933_v57 = vmul.f32 %v5449_v7, %v2807_v13  ;;  %v5936_v8 = vmul.f32 %v5641_v23, %v2807_v13  ;;  %v2167_v28 = vadd.f32 %v5589_v27, %v2130_v40  ;;  %v1822_v63 = vadd.f32 %v1806_v30, %v1784_v37  ;;  %4537 = vmatpush3.bf16.msra.mxu1 %v4749_v49  ;;  %v4751_v49 = vld [vmem:[%s7962_s6 + $0xc8] sm:$0xff]  }
 0x153   : > { %v2166_v12 = vadd.f32 %v2150_v43, %v2129_v52  ;;  %v1823_v39 = vadd.f32 %v1807_v54, %v1785_v58  ;;  %v1852_v13 = vrot.slane %v5607_v55, 6  ;;  %v1853_v32 = vrot.slane %v5557_v31, 6  ;;  %v5963_v58 = vpop.f32.mrf.mxu0  ;;  %4538 = vmatprep.subr.bf16.mxu1 %v4750_v17 }
 0x154   : > { %8264 = vst [vmem:[#allocation105_spill] sm:$0xff] %v5933_v57  ;;  %8265 = vst [vmem:[#allocation106_spill] sm:$0xff] %v5936_v8  ;;  %v2188_v27 = vadd.f32 %v5930_v59, %v2167_v28  ;;  %v5955_v43 = vsel %vm1874_vm4, %v1846_v38, %v1847_v1  ;;  %v8266_v52 = vrot.slane %v5442_v24, 6  ;;  %v8268_v40 = vrot.slane %v5568_v51, 6 }
 0x155   : > { %v2187_v2 = vadd.f32 %v5930_v59, %v2166_v12  ;;  %8267 = vst [vmem:[#allocation107_spill] sm:$0xff] %v5963_v58  ;;  %v5968_v15 = vsel %vm1874_vm4, %v1852_v13, %v1853_v32  ;;  %v1922_v54 = vadd.f32 %v5420_v22, %v1822_v63  ;;  %v1923_v12 = vadd.f32 %v5426_v44, %v1823_v39  ;;  %v4415_v8 = vpop.f32.mrf.mxu0  ;;  %v8304_v58 = vld [vmem:[#allocation48_spill] sm:$0xff] }
 0x156   : > { %v5961_v37 = vsel %vm1874_vm4, %v8266_v52, %v1846_v38  ;;  %v5974_v30 = vsel %vm1874_vm4, %v8268_v40, %v1852_v13  ;;  %v2204_v38 = vmax.f32 %v2188_v27, 0.0  ;;  %v1944_v32 = vmul.f32 %v5814_v56, %v5955_v43  ;;  %v8270_v52 = vld [vmem:[#allocation33_spill] sm:$0xff]  ;;  %4539 = vmatpush3.bf16.msra.mxu1 %v4750_v17 }
 0x157   : > { %v2203_v28 = vmax.f32 %v2187_v2, 0.0  ;;  %v1943_v33 = vmul.f32 %v5814_v56, %v5961_v37  ;;  %v1980_v1 = vmul.f32 %v5833_v60, %v5974_v30  ;;  %v1981_v13 = vmul.f32 %v5833_v60, %v5968_v15  ;;  %4493 = vmatmul.mubr.bf16.gmra.mxu1 %v5681_v36  ;;  %4540 = vmatprep.subr.bf16.mxu1 %v4751_v49 }
 0x158   : > { %v2019_v22 = vrot.slane %v5476_v48, 2  ;;  %v2025_v44 = vrot.slane %v5607_v55, 2  ;;  %v1960_v2 = vadd.f32 %v1944_v32, %v1923_v12  ;;  %v8269_v27 = vrot.slane %v5265_v25, 2 }
 0x159   : > { %v2219_v63 = vpack.c.bf16 %v2204_v38, %v2203_v28  ;;  %v1959_v39 = vadd.f32 %v1943_v33, %v1922_v54  ;;  %v8271_v40 = vrot.slane %v8270_v52, 2  ;;  %v5998_v53 = vmul.f32 %v5463_v62, %v3551_v16 }
 0x15a   : > { %v6001_v24 = vmul.f32 %v5691_v41, %v3551_v16  ;;  %v8274_v18 = vrot.slane %v5557_v31, 2  ;;  %v8276_v12 = vrot.slane %v5423_v9, 2  ;;  %v1997_v33 = vadd.f32 %v1981_v13, %v1960_v2  ;;  %v6034_v16 = vpop.f32.mrf.mxu0  ;;  %4541 = vmatpush3.bf16.msra.mxu1 %v4751_v49 }
 0x15b   : > { %v2068_v57 = vsel %vm2046_vm3, %v8271_v40, %v8269_v27  ;;  %8272 = vst [vmem:[#allocation108_spill] sm:$0xff] %v5998_v53  ;;  %4512 = vmatprep.mubr.bf16.mxu0 %v2219_v63  ;;  %v1996_v38 = vadd.f32 %v1980_v1, %v1959_v39  ;;  %v4752_v27 = vld [vmem:[%s7962_s6 + $0xc0] sm:$0xff]   ;;  %v2039_v17 = vrot.slane %v4415_v8, 2  ;;  %v2788_v63 = vrot.slane %v4415_v8, 3 }
 0x15c   : > { %8273 = vst [vmem:[#allocation109_spill] sm:$0xff] %v6001_v24  ;;  %v6007_v54 = vsel %vm2046_vm3, %v2025_v44, %v8274_v18  ;;  %v6013_v28 = vsel %vm2046_vm3, %v2019_v22, %v8276_v12  ;;  %v2078_v32 = vmul.f32 %v5270_v29, %v2068_v57  ;;  %v8016_v22 = vrot.slane %v5925_v14, 2  ;;  %v8277_v29 = vld [vmem:[#allocation40_spill] sm:$0xff]  ;;  %4542 = vmatprep.subr.bf16.mxu1 %v4752_v27 }
 0x15d   : > { %8275 = vst [vmem:[#allocation110_spill] sm:$0xff] %v6007_v54  ;;  %v2115_v18 = vmul.f32 %v5440_v35, %v6013_v28  ;;  %v2152_v44 = vmul.f32 %v5565_v20, %v6007_v54  ;;  %v2095_v57 = vadd.f32 %v8277_v29, %v1997_v33  ;;  %v8015_v2 = vrot.slane %v5925_v14, 3  ;;  %8278 = vst [vmem:[#allocation40_spill] sm:$0xff] %v6034_v16  ;;  %v8280_v29 = vld [vmem:[#allocation16_spill] sm:$0xff] }
 0x15e   : > { %v2094_v1 = vadd.f32 %v2078_v32, %v1996_v38  ;;  %v2051_v39 = vsel %vm2046_vm3, %v8016_v22, %v2039_v17  ;;  %v8014_v40 = vrot.slane %v5925_v14, 4  ;;  %v3541_v12 = vrot.slane %v4415_v8, 4  ;;  %v8279_v38 = vld [vmem:[#allocation56_spill] sm:$0xff]  ;;  %4543 = vmatpush3.bf16.msra.mxu1 %v4752_v27 }
 0x15f   : > { %v2132_v32 = vadd.f32 %v8279_v38, %v2095_v57  ;;  %v1732_v13 = vmul.f32 %v8280_v29, %v5393_v0  ;;  %v6041_v53 = vmul.f32 %v5440_v35, %v2051_v39  ;;  %v2805_v8 = vsel %vm2798_vm1, %v8015_v2, %v2788_v63  ;;  %v6067_v2 = vpop.f32.mrf.mxu0 }
 0x160   : > { %v2131_v36 = vadd.f32 %v2115_v18, %v2094_v1  ;;  %v3550_v49 = vsel %vm3386_vm0, %v8014_v40, %v3541_v12  ;;  %v1770_v18 = vmul.f32 %v5722_v26, %v5539_v47  ;;  %v6055_v57 = vmul.f32 %v5565_v20, %v2051_v39  ;;  %8285 = vst [vmem:[#allocation113_spill] sm:$0xff] %v6067_v2 }
 0x161   : > { %8281 = vst [vmem:[#allocation56_spill] sm:$0xff] %v6041_v53  ;;  %v2169_v1 = vadd.f32 %v5653_v42, %v2132_v32  ;;  %v1733_v38 = vmul.f32 %v5349_v50, %v8280_v29  ;;  %v6060_v33 = vmul.f32 %v5449_v7, %v2805_v8  ;;  %v6063_v63 = vmul.f32 %v5641_v23, %v2805_v8  ;;  %v8286_v7 = vld [vmem:[#allocation70_spill] sm:$0xff]  ;;  %v8287_v32 = vld [vmem:[#allocation65_spill] sm:$0xff]  ;;  %v8290_v53 = vld [vmem:[#allocation71_spill] sm:$0xff] }
 0x162   : > { %v2168_v17 = vadd.f32 %v2152_v44, %v2131_v36  ;;  %8282 = vst [vmem:[#allocation16_spill] sm:$0xff] %v6055_v57  ;;  %v1771_v12 = vmul.f32 %v5500_v5, %v5722_v26  ;;  %v1786_v40 = vadd.f32 %v1770_v18, %v1732_v13  ;;  %v1808_v39 = vmul.f32 %v5740_v45, %v5671_v34 }
 0x163   : > { %8283 = vst [vmem:[#allocation111_spill] sm:$0xff] %v6060_v33  ;;  %8284 = vst [vmem:[#allocation112_spill] sm:$0xff] %v6063_v63  ;;  %v2190_v44 = vadd.f32 %v5930_v59, %v2169_v1  ;;  %v1809_v36 = vmul.f32 %v8286_v7, %v5740_v45  ;;  %4592 = vmatprep.subr.bf16.mxu1 %v8287_v32  ;;  %v6077_v29 = vmul.f32 %v5463_v62, %v3550_v49 }
 0x164   : > { %v2189_v42 = vadd.f32 %v5930_v59, %v2168_v17  ;;  %v1787_v8 = vadd.f32 %v1771_v12, %v1733_v38  ;;  %v1855_v13 = vrot.slane %v5671_v34, 6  ;;  %v1856_v27 = vrot.slane %v8286_v7, 6  ;;  %v8293_v38 = vld [vmem:[#allocation99_spill] sm:$0xff] }
 0x165   : > { %8288 = vst [vmem:[#allocation65_spill] sm:$0xff] %v6077_v29  ;;  %v2206_v17 = vmax.f32 %v2190_v44, 0.0  ;;  %v1824_v22 = vadd.f32 %v1808_v39, %v1786_v40  ;;  %v1908_v1 = vmul.f32 %v5405_v61, %v5797_v4  ;;  %v8291_v63 = vrot.slane %v8290_v53, 6 }
 0x166   : > { %v2205_v18 = vmax.f32 %v2189_v42, 0.0  ;;  %v1825_v24 = vadd.f32 %v1809_v36, %v1787_v8  ;;  %v6085_v33 = vsel %vm1874_vm4, %v1855_v13, %v1856_v27  ;;  %v1909_v12 = vmul.f32 %v5405_v61, %v8293_v38  ;;  %v6095_v42 = vpop.f32.mrf.mxu0  ;;  %v6105_v36 = vld [vmem:[%s7962_s6 + $0x130] sm:$0xff]  }
 0x167   : > { %8289 = vst [vmem:[#allocation114_spill] sm:$0xff] %v6085_v33  ;;  %v6091_v62 = vsel %vm1874_vm4, %v8291_v63, %v1855_v13  ;;  %8294 = vst [vmem:[#allocation99_spill] sm:$0xff] %v6095_v42  ;;  %v6098_v44 = vmul.f32 %v5691_v41, %v3550_v49  ;;  %v1924_v4 = vadd.f32 %v1908_v1, %v1824_v22  ;;  %v2028_v27 = vrot.slane %v5671_v34, 2 }
 0x168   : > { %8292 = vst [vmem:[#allocation115_spill] sm:$0xff] %v6091_v62  ;;  %v2220_v40 = vpack.c.bf16 %v2206_v17, %v2205_v18  ;;  %v1945_v39 = vmul.f32 %v5814_v56, %v5843_v6  ;;  %8296 = vst [vmem:[#allocation117_spill] sm:$0xff] %v6105_v36  ;;  %v1925_v63 = vadd.f32 %v1909_v12, %v1825_v24  ;;  %v6117_v18 = vld [vmem:[%s7959_s3 + $0x2] ss:$0 sm:$0xff]  ;;  %v8298_v38 = vrot.slane %v8286_v7, 2 }
 0x169   : > { %8295 = vst [vmem:[#allocation116_spill] sm:$0xff] %v6098_v44  ;;  %v1946_v8 = vmul.f32 %v5814_v56, %v5824_v11  ;;  %v1983_v13 = vmul.f32 %v5833_v60, %v6085_v33  ;;  %v1982_v22 = vmul.f32 %v5833_v60, %v6091_v62  ;;  %8297 = vst [vmem:[#allocation118_spill] sm:$0xff] %v6117_v18  ;;  %v8023_v14 = vrot.slane %v6067_v2, 3 }
 0x16a   : > { %4513 = vmatmul.mubr.bf16.vlgmr.msra.gmra.mxu0 %v2220_v40  ;;  %v1961_v49 = vadd.f32 %v1945_v39, %v1924_v4  ;;  %v2080_v24 = vmul.f32 %v6117_v18, %v5876_v21  ;;  %v2117_v17 = vmul.f32 %v5440_v35, %v5870_v10  ;;  %v6127_v12 = vsel %vm2046_vm3, %v2028_v27, %v8298_v38  ;;  %v6137_v21 = vld [vmem:[%s7959_s3 + $0x15] ss:$0 sm:$0xff]  ;;  %v4419_v39 = vpop.f32.mrf.mxu0  ;;  %v6150_v4 = vld [vmem:[%s7959_s3 + $0x21] ss:$0 sm:$0xff] }
 0x16b   : > { %v1962_v1 = vadd.f32 %v1946_v8, %v1925_v63  ;;  %8299 = vst [vmem:[#allocation119_spill] sm:$0xff] %v6127_v12  ;;  %v6131_v40 = vmul.f32 %v6067_v2, %v5740_v45  ;;  %4561 = vmatpush3.bf16.msra.mxu0 %v8287_v32  ;;  %v2154_v8 = vmul.f32 %v5565_v20, %v6127_v12  ;;  %v6156_v32 = vld [vmem:[%s7962_s6 + $0x128] sm:$0xff]   ;;  %v2791_v57 = vrot.slane %v4419_v39, 3 }
 0x16c   : > { %v1998_v63 = vadd.f32 %v1982_v22, %v1961_v49  ;;  %v6144_v27 = vmul.f32 %v6067_v2, %v6137_v21  ;;  %4562 = vmatprep.subr.bf16.mxu0 %v6105_v36  ;;  %8302 = vst [vmem:[#allocation122_spill] sm:$0xff] %v6156_v32  ;;  %v6160_v22 = vmul.f32 %v6067_v2, %v6150_v4  ;;  %v8024_v52 = vrot.slane %v6067_v2, 4 }
 0x16d   : > { %8300 = vst [vmem:[#allocation120_spill] sm:$0xff] %v6131_v40  ;;  %v1999_v49 = vadd.f32 %v1983_v13, %v1962_v1  ;;  %v2042_v40 = vrot.slane %v4419_v39, 2  ;;  %v3542_v13 = vrot.slane %v4419_v39, 4  ;;  %v8305_v39 = vld [vmem:[#allocation64_spill] sm:$0xff] }
 0x16e   : > { %8301 = vst [vmem:[#allocation121_spill] sm:$0xff] %v6144_v27  ;;  %8303 = vst [vmem:[#allocation123_spill] sm:$0xff] %v6160_v22  ;;  %v2096_v44 = vadd.f32 %v2080_v24, %v1998_v63  ;;  %v8022_v27 = vrot.slane %v6067_v2, 2  ;;  %v6177_v63 = vld [vmem:[%s7959_s3 + $0x1] ss:$0 sm:$0xff]  ;;  %v8310_v2 = vld [vmem:[#allocation82_spill] sm:$0xff] }
 0x16f   : > { %v2097_v16 = vadd.f32 %v8304_v58, %v1999_v49  ;;  %4563 = vmatpush3.bf16.msra.mxu0 %v6105_v36  ;;  %v1734_v58 = vmul.f32 %v6177_v63, %v5476_v48  ;;  %v8311_v36 = vrot.slane %v8310_v2, 6 }
 0x170   : > { %v2133_v1 = vadd.f32 %v2117_v17, %v2096_v44  ;;  %v2049_v24 = vsel %vm2046_vm3, %v8022_v27, %v2042_v40  ;;  %4564 = vmatprep.subr.bf16.mxu0 %v6156_v32  ;;  %v2803_v44 = vsel %vm2798_vm1, %v8023_v14, %v2791_v57  ;;  %v3549_v17 = vsel %vm3386_vm0, %v8024_v52, %v3542_v13  ;;  %v8307_v27 = vld [vmem:[#allocation84_spill] sm:$0xff]  ;;  %v8308_v14 = vld [vmem:[#allocation90_spill] sm:$0xff] }
 0x171   : > { %v2134_v49 = vadd.f32 %v8305_v39, %v2097_v16  ;;  %v1735_v40 = vmul.f32 %v6177_v63, %v5423_v9  ;;  %v6194_v38 = vmul.f32 %v5565_v20, %v2049_v24  ;;  %v1772_v16 = vmul.f32 %v5722_v26, %v5607_v55  ;;  %v8309_v13 = vld [vmem:[#allocation80_spill] sm:$0xff] }
 0x172   : > { %v2170_v22 = vadd.f32 %v2154_v8, %v2133_v1  ;;  %v1773_v39 = vmul.f32 %v5557_v31, %v5722_v26  ;;  %v1810_v29 = vmul.f32 %v5740_v45, %v8308_v14  ;;  %v1811_v52 = vmul.f32 %v8309_v13, %v5740_v45 }
 0x173   : > { %8306 = vst [vmem:[#allocation48_spill] sm:$0xff] %v6194_v38  ;;  %v2171_v57 = vadd.f32 %v8307_v27, %v2134_v49  ;;  %v1858_v42 = vrot.slane %v8308_v14, 6  ;;  %4565 = vmatpush3.bf16.msra.mxu0 %v6156_v32  ;;  %v1788_v1 = vadd.f32 %v1772_v16, %v1734_v58  ;;  %v1859_v38 = vrot.slane %v8309_v13, 6  ;;  %v6212_v27 = vld [vmem:[%s7962_s6 + $0x120] sm:$0xff]  }
 0x174   : > { %v2191_v8 = vadd.f32 %v5930_v59, %v2170_v22  ;;  %v1789_v24 = vadd.f32 %v1773_v39, %v1735_v40  ;;  %v1910_v22 = vmul.f32 %v5405_v61, %v5961_v37  ;;  %v1911_v58 = vmul.f32 %v5405_v61, %v5955_v43  ;;  %4566 = vmatprep.subr.bf16.mxu0 %v6212_v27 }
 0x175   : > { %v2192_v49 = vadd.f32 %v5930_v59, %v2171_v57  ;;  %v6219_v25 = vsel %vm1874_vm4, %v8311_v36, %v1858_v42  ;;  %v1826_v16 = vadd.f32 %v1810_v29, %v1788_v1  ;;  %v6227_v32 = vsel %vm1874_vm4, %v1858_v42, %v1859_v38  ;;  %v6241_v42 = vpop.f32.mrf.mxu0 }
 0x176   : > { %8312 = vst [vmem:[#allocation64_spill] sm:$0xff] %v6219_v25  ;;  %v2207_v40 = vmax.f32 %v2191_v8, 0.0  ;;  %v1827_v39 = vadd.f32 %v1811_v52, %v1789_v24  ;;  %8313 = vst [vmem:[#allocation84_spill] sm:$0xff] %v6227_v32  ;;  %v6231_v2 = vmul.f32 %v5641_v23, %v2803_v44  ;;  %v1947_v36 = vmul.f32 %v5814_v56, %v5974_v30  ;;  %v6253_v24 = vld [vmem:[%s7959_s3 + $0x11] ss:$0 sm:$0xff] }
 0x177   : > { %v2208_v57 = vmax.f32 %v2192_v49, 0.0  ;;  %v1948_v37 = vmul.f32 %v5814_v56, %v5968_v15  ;;  %4567 = vmatpush3.bf16.msra.mxu0 %v6212_v27  ;;  %v1926_v61 = vadd.f32 %v1910_v22, %v1826_v16  ;;  %v1985_v52 = vmul.f32 %v5833_v60, %v6227_v32  ;;  %8315 = vst [vmem:[#allocation125_spill] sm:$0xff] %v6241_v42  ;;  %v6308_v32 = vld [vmem:[%s7959_s3 + $0x14] ss:$0 sm:$0xff] }
 0x178   : > { %8314 = vst [vmem:[#allocation124_spill] sm:$0xff] %v6231_v2  ;;  %v1927_v43 = vadd.f32 %v1911_v58, %v1827_v39  ;;  %v2031_v29 = vrot.slane %v8308_v14, 2  ;;  %v6244_v44 = vmul.f32 %v5691_v41, %v3549_v17  ;;  %v1984_v8 = vmul.f32 %v5833_v60, %v6219_v25  ;;  %v6310_v25 = vpop.f32.mrf.mxu0 }
 0x179   : > { %v2221_v38 = vpack.c.bf16 %v2208_v57, %v2207_v40  ;;  %v2082_v1 = vmul.f32 %v6117_v18, %v6013_v28  ;;  %v1963_v49 = vadd.f32 %v1947_v36, %v1926_v61  ;;  %v8317_v58 = vrot.slane %v8309_v13, 2 }
 0x17a   : > { %8316 = vst [vmem:[#allocation126_spill] sm:$0xff] %v6244_v44  ;;  %v1964_v22 = vadd.f32 %v1948_v37, %v1927_v43  ;;  %v2119_v17 = vmul.f32 %v5440_v35, %v6007_v54  ;;  %v6267_v16 = vmul.f32 %v5740_v45, %v6241_v42  ;;  %v6272_v57 = vmul.f32 %v6137_v21, %v6241_v42  ;;  %v8321_v44 = vld [vmem:[#allocation55_spill] sm:$0xff] }
 0x17b   : > { %v6259_v40 = vsel %vm2046_vm3, %v2031_v29, %v8317_v58  ;;  %4516 = vmatprep.mubr.bf16.mxu0 %v2221_v38  ;;  %v2000_v36 = vadd.f32 %v1984_v8, %v1963_v49  ;;  %v2504_v61 = vmul.f32 %v6253_v24, %v5393_v0  ;;  %v2505_v35 = vmul.f32 %v5349_v50, %v6253_v24 }
 0x17c   : > { %8318 = vst [vmem:[#allocation127_spill] sm:$0xff] %v6259_v40  ;;  %v2156_v28 = vmul.f32 %v5565_v20, %v6259_v40  ;;  %8319 = vst [vmem:[#allocation128_spill] sm:$0xff] %v6267_v16  ;;  %v2001_v37 = vadd.f32 %v1985_v52, %v1964_v22  ;;  %v2542_v43 = vmul.f32 %v6137_v21, %v5607_v55  ;;  %v2584_v38 = vrot.slane %v5393_v0, 5  ;;  %v8322_v52 = vld [vmem:[#allocation11_spill] sm:$0xff]  ;;  %v8323_v22 = vld [vmem:[#allocation6_spill] sm:$0xff] }
 0x17d   : > { %8320 = vst [vmem:[#allocation129_spill] sm:$0xff] %v6272_v57  ;;  %v2543_v29 = vmul.f32 %v5557_v31, %v6137_v21  ;;  %v2585_v58 = vrot.slane %v5349_v50, 5  ;;  %v2098_v39 = vadd.f32 %v2082_v1, %v2000_v36  ;;  %v2520_v49 = vadd.f32 %v2504_v61, %v8322_v52  ;;  %v6290_v57 = vld [vmem:[%s7959_s3 + $0x10] ss:$0 sm:$0xff]  ;;  %v8325_v1 = vld [vmem:[#allocation39_spill] sm:$0xff]  ;;  %8329 = vst [vmem:[#allocation6_spill] sm:$0xff] %v6310_v25 }
 0x17e   : > { %v2099_v8 = vadd.f32 %v8321_v44, %v2001_v37  ;;  %v2521_v2 = vadd.f32 %v2505_v35, %v8323_v22  ;;  %v2593_v16 = vrot.slane %v5607_v55, 5  ;;  %v2594_v40 = vrot.slane %v5557_v31, 5  ;;  %v8328_v61 = vld [vmem:[#allocation73_spill] sm:$0xff] }
 0x17f   : > { %v6296_v54 = vsel %vm2616_vm2, %v2584_v38, %v2585_v58  ;;  %v8326_v36 = vrot.slane %v8325_v1, 5  ;;  %v2135_v37 = vadd.f32 %v2119_v17, %v2098_v39  ;;  %v2558_v52 = vadd.f32 %v2542_v43, %v2520_v49 }
 0x180   : > { %8324 = vst [vmem:[#allocation55_spill] sm:$0xff] %v6296_v54  ;;  %v2136_v35 = vadd.f32 %v8328_v61, %v2099_v8  ;;  %v2559_v22 = vadd.f32 %v2543_v29, %v2521_v2  ;;  %v6314_v58 = vsel %vm2616_vm2, %v2593_v16, %v2594_v40  ;;  %v8331_v1 = vrot.slane %v5568_v51, 5  ;;  %v8333_v29 = vld [vmem:[#allocation94_spill] sm:$0xff] }
 0x181   : > { %v6302_v44 = vsel %vm2616_vm2, %v8326_v36, %v2584_v38  ;;  %8330 = vst [vmem:[#allocation73_spill] sm:$0xff] %v6314_v58  ;;  %v2688_v39 = vmul.f32 %v6290_v57, %v6296_v54  ;;  %v2172_v43 = vadd.f32 %v2156_v28, %v2135_v37  ;;  %v8334_v8 = vld [vmem:[#allocation18_spill] sm:$0xff]  ;;  %v8335_v36 = vld [vmem:[#allocation19_spill] sm:$0xff]  ;;  %v2774_v51 = vrot.slane %v5607_v55, 3 }
 0x182   : > { %8327 = vst [vmem:[#allocation11_spill] sm:$0xff] %v6302_v44  ;;  %v6320_v17 = vsel %vm2616_vm2, %v8331_v1, %v2593_v16  ;;  %v2687_v2 = vmul.f32 %v6290_v57, %v6302_v44  ;;  %v2173_v38 = vadd.f32 %v8333_v29, %v2136_v35  ;;  %v2666_v49 = vadd.f32 %v8334_v8, %v2558_v52  ;;  %v6337_v29 = vpop.f32.mrf.mxu0  ;;  %v6359_v52 = vld [vmem:[%s7959_s3 + $0x12] ss:$0 sm:$0xff] }
 0x183   : > { %8332 = vst [vmem:[#allocation130_spill] sm:$0xff] %v6320_v17  ;;  %v2667_v40 = vadd.f32 %v8335_v36, %v2559_v22  ;;  %v2724_v61 = vmul.f32 %v6308_v32, %v6320_v17  ;;  %v2725_v16 = vmul.f32 %v6308_v32, %v6314_v58  ;;  %v2765_v1 = vrot.slane %v5393_v0, 3  ;;  %8336 = vst [vmem:[#allocation94_spill] sm:$0xff] %v6337_v29 }
 0x184   : > { %v2193_v44 = vadd.f32 %v5930_v59, %v2172_v43  ;;  %v2194_v28 = vadd.f32 %v5930_v59, %v2173_v38  ;;  %v2703_v37 = vadd.f32 %v2687_v2, %v2666_v49  ;;  %v6342_v22 = vmul.f32 %v6150_v4, %v6241_v42  ;;  %v4423_v42 = vpop.f32.mrf.mxu0 }
 0x185   : > { %v2704_v35 = vadd.f32 %v2688_v39, %v2667_v40  ;;  %v8338_v8 = vrot.slane %v5557_v31, 3  ;;  %v8340_v43 = vrot.slane %v5349_v50, 3  ;;  %v8347_v54 = vrot.slane %v5423_v9, 4 }
 0x186   : > { %8337 = vst [vmem:[#allocation18_spill] sm:$0xff] %v6342_v22  ;;  %v2209_v39 = vmax.f32 %v2193_v44, 0.0  ;;  %v2210_v38 = vmax.f32 %v2194_v28, 0.0  ;;  %v2740_v49 = vadd.f32 %v2724_v61, %v2703_v37  ;;  %v8343_v61 = vld [vmem:[#allocation20_spill] sm:$0xff]  ;;  %v8344_v28 = vld [vmem:[#allocation13_spill] sm:$0xff]  ;;  %v8348_v50 = vrot.slane %v5476_v48, 4 }
 0x187   : > { %v6348_v36 = vsel %vm2798_vm1, %v2774_v51, %v8338_v8  ;;  %v6354_v2 = vsel %vm2798_vm1, %v2765_v1, %v8340_v43  ;;  %v2741_v40 = vadd.f32 %v2725_v16, %v2704_v35  ;;  %v6367_v8 = vmul.f32 %v6310_v25, %v5740_v45  ;;  %v6379_v43 = vld [vmem:[%s7959_s3 + $0x1d] ss:$0 sm:$0xff] }
 0x188   : > { %8339 = vst [vmem:[#allocation19_spill] sm:$0xff] %v6348_v36  ;;  %8341 = vst [vmem:[#allocation131_spill] sm:$0xff] %v6354_v2  ;;  %v2869_v22 = vmul.f32 %v6359_v52, %v6354_v2  ;;  %v2906_v51 = vmul.f32 %v5641_v23, %v6348_v36  ;;  %v2222_v1 = vpack.c.bf16 %v2210_v38, %v2209_v39  ;;  %v3543_v58 = vrot.slane %v4423_v42, 4 }
 0x189   : > { %8342 = vst [vmem:[#allocation132_spill] sm:$0xff] %v6367_v8  ;;  %v2848_v16 = vadd.f32 %v8343_v61, %v2740_v49  ;;  %v2849_v37 = vadd.f32 %v8344_v28, %v2741_v40  ;;  %v6374_v35 = vmul.f32 %v6310_v25, %v6137_v21  ;;  %v6384_v8 = vld [vmem:[%s7959_s3 + $0x19] ss:$0 sm:$0xff]  ;;  %v3279_v38 = vmul.f32 %v8309_v13, %v6379_v43  ;;  %v6401_v28 = vld [vmem:[%s7962_s6 + $0x110] sm:$0xff]   ;;  %v6409_v40 = vld [vmem:[%s7960_s4 + $0x1] ss:$0 sm:$0xff] }
 0x18a   : > { %v3241_v39 = vmul.f32 %v6384_v8, %v5423_v9  ;;  %v3317_v49 = vmul.f32 %v6310_v25, %v6150_v4  ;;  %v6396_v61 = vld [vmem:[%s7962_s6 + $0x118] sm:$0xff]   ;;  %4517 = vmatmul.mubr.bf16.gmra.mxu0 %v2222_v1  ;;  %v6417_v1 = vsel %vm3386_vm0, %v8348_v50, %v8347_v54 }
 0x18b   : > { %8345 = vst [vmem:[#allocation20_spill] sm:$0xff] %v6374_v35  ;;  %v2885_v44 = vadd.f32 %v2869_v22, %v2848_v16  ;;  %v8346_v35 = vld [vmem:[#allocation50_spill] sm:$0xff]  ;;  %8349 = vst [vmem:[#allocation13_spill] sm:$0xff] %v6417_v1  ;;  %v8060_v22 = vrot.slane %v6310_v25, 2  ;;  %v2045_v16 = vrot.slane %v4423_v42, 2  ;;  %4568 = vmatprep.subr.bf16.mxu0 %v6396_v61 }
 0x18c   : > { %v2886_v36 = vadd.f32 %v8346_v35, %v2849_v37  ;;  %v3295_v17 = vadd.f32 %v3279_v38, %v3241_v39  ;;  %v8350_v35 = vld [vmem:[#allocation76_spill] sm:$0xff]  ;;  %v6425_v39 = vld [vmem:[%s7959_s3 + $0x18] ss:$0 sm:$0xff]  ;;  %4569 = vmatpush3.bf16.msra.mxu0 %v6396_v61 }
 0x18d   : > { %v2922_v37 = vadd.f32 %v2906_v51, %v2885_v44  ;;  %v3435_v38 = vmul.f32 %v6425_v39, %v6417_v1  ;;  %v2047_v54 = vsel %vm2046_vm3, %v8060_v22, %v2045_v16  ;;  %v2794_v51 = vrot.slane %v4423_v42, 3  ;;  %4570 = vmatprep.subr.bf16.mxu0 %v6401_v28 }
 0x18e   : > { %v2923_v2 = vadd.f32 %v8350_v35, %v2886_v36  ;;  %v3333_v50 = vadd.f32 %v3317_v49, %v3295_v17  ;;  %v8062_v36 = vrot.slane %v6310_v25, 3  ;;  %v8061_v1 = vrot.slane %v6310_v25, 4  ;;  %v6476_v17 = vld [vmem:[%s7959_s3] ss:$0 sm:$0xff] }
 0x18f   : > { %v2943_v44 = vadd.f32 %v6409_v40, %v2922_v37  ;;  %v6444_v49 = vmul.f32 %v5565_v20, %v2047_v54  ;;  %v1737_v20 = vmul.f32 %v6177_v63, %v5500_v5  ;;  %v1812_v54 = vmul.f32 %v5740_v45, %v5890_v3 }
 0x190   : > { %v2944_v35 = vadd.f32 %v6409_v40, %v2923_v2  ;;  %v6440_v0 = vadd.f32 %v3435_v38, %v3333_v50  ;;  %v6450_v16 = vsel %vm2798_vm1, %v8062_v36, %v2794_v51  ;;  %v6456_v42 = vsel %vm3386_vm0, %v8061_v1, %v3543_v58  ;;  %4571 = vmatpush3.bf16.msra.mxu0 %v6401_v28 }
 0x191   : > { %8352 = vst [vmem:[#allocation76_spill] sm:$0xff] %v6444_v49  ;;  %v2959_v22 = vmax.f32 %v2943_v44, 0.0  ;;  %v1736_v2 = vmul.f32 %v6177_v63, %v5539_v47  ;;  %v1774_v38 = vmul.f32 %v5722_v26, %v5671_v34  ;;  %v1775_v50 = vmul.f32 %v8286_v7, %v5722_v26 }
 0x192   : > { %8351 = vst [vmem:[#allocation50_spill] sm:$0xff] %v6440_v0  ;;  %v2960_v37 = vmax.f32 %v2944_v35, 0.0  ;;  %v1813_v58 = vmul.f32 %v5773_v46, %v5740_v45  ;;  %v1861_v44 = vrot.slane %v5890_v3, 6  ;;  %v1862_v35 = vrot.slane %v5773_v46, 6  ;;  %v8354_v0 = vld [vmem:[#allocation97_spill] sm:$0xff] }
 0x193   : > { %v1790_v1 = vadd.f32 %v1774_v38, %v1736_v2  ;;  %v1791_v36 = vadd.f32 %v1775_v50, %v1737_v20  ;;  %v1912_v26 = vmul.f32 %v6476_v17, %v5843_v6  ;;  %v8355_v49 = vrot.slane %v8354_v0, 6 }
 0x194   : > { %v2975_v51 = vpack.c.bf16 %v2960_v37, %v2959_v22  ;;  %v1913_v22 = vmul.f32 %v6476_v17, %v5824_v11  ;;  %v6484_v37 = vsel %vm1874_vm4, %v1861_v44, %v1862_v35  ;;  %v1949_v20 = vmul.f32 %v5814_v56, %v6091_v62  ;;  %v8362_v62 = vld [vmem:[#allocation24_spill] sm:$0xff] }
 0x195   : > { %8353 = vst [vmem:[#allocation133_spill] sm:$0xff] %v6484_v37  ;;  %v6490_v2 = vsel %vm1874_vm4, %v8355_v49, %v1861_v44  ;;  %v1950_v6 = vmul.f32 %v5814_v56, %v6085_v33  ;;  %v1828_v38 = vadd.f32 %v1812_v54, %v1790_v1  ;;  %v1829_v50 = vadd.f32 %v1813_v58, %v1791_v36  ;;  %v6506_v44 = vld [vmem:[%s7959_s3 + $0x6] ss:$0 sm:$0xff] }
 0x196   : > { %4544 = vmatprep.mubr.bf16.mxu1 %v2975_v51  ;;  %8356 = vst [vmem:[#allocation134_spill] sm:$0xff] %v6490_v2  ;;  %v1986_v11 = vmul.f32 %v5833_v60, %v6490_v2  ;;  %v1987_v51 = vmul.f32 %v5833_v60, %v6484_v37  ;;  %v2034_v35 = vrot.slane %v5890_v3, 2  ;;  %v2084_v49 = vmul.f32 %v6117_v18, %v5870_v10  ;;  %v8360_v37 = vld [vmem:[#allocation31_spill] sm:$0xff] }
 0x197   : > { %8357 = vst [vmem:[#allocation135_spill] sm:$0xff] %v6506_v44  ;;  %v2121_v56 = vmul.f32 %v6506_v44, %v6127_v12  ;;  %v2506_v1 = vmul.f32 %v6253_v24, %v5476_v48  ;;  %v1928_v36 = vadd.f32 %v1912_v26, %v1828_v38  ;;  %v1929_v54 = vadd.f32 %v1913_v22, %v1829_v50  ;;  %v6529_v50 = vld [vmem:[%s7959_s3 + $0xa] ss:$0 sm:$0xff] }
 0x198   : > { %v2507_v60 = vmul.f32 %v5423_v9, %v6253_v24  ;;  %v2544_v58 = vmul.f32 %v6137_v21, %v5671_v34  ;;  %v8358_v10 = vrot.slane %v5773_v46, 2  ;;  %v2545_v12 = vmul.f32 %v8286_v7, %v6137_v21  ;;  %8361 = vst [vmem:[#allocation31_spill] sm:$0xff] %v6529_v50 }
 0x199   : > { %v2522_v2 = vadd.f32 %v2506_v1, %v8360_v37  ;;  %v2587_v26 = vrot.slane %v5476_v48, 5  ;;  %v1965_v22 = vadd.f32 %v1949_v20, %v1928_v36  ;;  %v1966_v38 = vadd.f32 %v1950_v6, %v1929_v54  ;;  %v8363_v36 = vld [vmem:[#allocation46_spill] sm:$0xff] }
 0x19a   : > { %v6520_v25 = vsel %vm2046_vm3, %v2034_v35, %v8358_v10  ;;  %v2523_v35 = vadd.f32 %v2507_v60, %v8362_v62  ;;  %v2588_v37 = vrot.slane %v5423_v9, 5  ;;  %v2596_v1 = vrot.slane %v5671_v34, 5 }
 0x19b   : > { %8359 = vst [vmem:[#allocation136_spill] sm:$0xff] %v6520_v25  ;;  %v2158_v33 = vmul.f32 %v6529_v50, %v6520_v25  ;;  %v2560_v10 = vadd.f32 %v2544_v58, %v2522_v2  ;;  %v2597_v0 = vrot.slane %v8286_v7, 5  ;;  %v2002_v44 = vadd.f32 %v1986_v11, %v1965_v22  ;;  %v8371_v58 = vld [vmem:[#allocation63_spill] sm:$0xff] }
 0x19c   : > { %v2003_v20 = vadd.f32 %v1987_v51, %v1966_v38  ;;  %v2561_v6 = vadd.f32 %v2545_v12, %v2523_v35  ;;  %v8364_v54 = vrot.slane %v8363_v36, 5  ;;  %v8367_v62 = vrot.slane %v8290_v53, 5  ;;  %v8370_v12 = vld [vmem:[#allocation34_spill] sm:$0xff]  ;;  %v8372_v38 = vld [vmem:[#allocation35_spill] sm:$0xff] }
 0x19d   : > { %v6545_v25 = vsel %vm2616_vm2, %v2596_v1, %v2597_v0  ;;  %v6555_v11 = vsel %vm2616_vm2, %v2587_v26, %v2588_v37  ;;  %v2668_v51 = vadd.f32 %v8370_v12, %v2560_v10  ;;  %v2100_v60 = vadd.f32 %v2084_v49, %v2002_v44  ;;  %v8373_v49 = vld [vmem:[#allocation83_spill] sm:$0xff] }
 0x19e   : > { %v6541_v18 = vsel %vm2616_vm2, %v8364_v54, %v2587_v26  ;;  %8366 = vst [vmem:[#allocation46_spill] sm:$0xff] %v6545_v25  ;;  %v6551_v2 = vsel %vm2616_vm2, %v8367_v62, %v2596_v1  ;;  %8369 = vst [vmem:[#allocation138_spill] sm:$0xff] %v6555_v11  ;;  %v2101_v22 = vadd.f32 %v8371_v58, %v2003_v20  ;;  %v2768_v37 = vrot.slane %v5476_v48, 3  ;;  %v6571_v62 = vpop.f32.mrf.mxu0 }
 0x19f   : > { %8365 = vst [vmem:[#allocation24_spill] sm:$0xff] %v6541_v18  ;;  %8368 = vst [vmem:[#allocation137_spill] sm:$0xff] %v6551_v2  ;;  %v2669_v35 = vadd.f32 %v8372_v38, %v2561_v6  ;;  %v2689_v0 = vmul.f32 %v6290_v57, %v6541_v18  ;;  %v2690_v54 = vmul.f32 %v6290_v57, %v6555_v11  ;;  %v2777_v6 = vrot.slane %v5671_v34, 3  ;;  %v8378_v11 = vld [vmem:[#allocation12_spill] sm:$0xff] }
 0x1a0   : > { %v2726_v1 = vmul.f32 %v6308_v32, %v6551_v2  ;;  %v2727_v26 = vmul.f32 %v6308_v32, %v6545_v25  ;;  %v2137_v10 = vadd.f32 %v2121_v56, %v2100_v60  ;;  %v2138_v44 = vadd.f32 %v8373_v49, %v2101_v22  ;;  %8374 = vst [vmem:[#allocation34_spill] sm:$0xff] %v6571_v62  ;;  %v8380_v60 = vld [vmem:[#allocation26_spill] sm:$0xff]  ;;  %v8382_v49 = vld [vmem:[#allocation103_spill] sm:$0xff] }
 0x1a1   : > { %v2705_v20 = vadd.f32 %v2689_v0, %v2668_v51  ;;  %v6575_v12 = vmul.f32 %v5641_v23, %v6450_v16  ;;  %v2706_v58 = vadd.f32 %v2690_v54, %v2669_v35  ;;  %v8376_v38 = vrot.slane %v5423_v9, 3 }
 0x1a2   : > { %v8379_v56 = vrot.slane %v8378_v11, 3  ;;  %v8381_v22 = vrot.slane %v8380_v60, 3  ;;  %v2174_v0 = vadd.f32 %v2158_v33, %v2137_v10  ;;  %v2175_v18 = vadd.f32 %v8382_v49, %v2138_v44 }
 0x1a3   : > { %8375 = vst [vmem:[#allocation63_spill] sm:$0xff] %v6575_v12  ;;  %v6581_v53 = vsel %vm2798_vm1, %v2768_v37, %v8376_v38  ;;  %v2742_v2 = vadd.f32 %v2726_v1, %v2705_v20  ;;  %v8383_v23 = vrot.slane %v8286_v7, 3  ;;  %v6598_v35 = vmul.f32 %v5691_v41, %v6456_v42  ;;  %v6603_v37 = vld [vmem:[%s7959_s3 + $0xe] ss:$0 sm:$0xff]  ;;  %v6617_v42 = vld [vmem:[%s7959_s3 + $0x16] ss:$0 sm:$0xff] }
 0x1a4   : > { %8377 = vst [vmem:[#allocation35_spill] sm:$0xff] %v6581_v53  ;;  %v2824_v51 = vsel %vm2798_vm1, %v8381_v22, %v8379_v56  ;;  %v2743_v54 = vadd.f32 %v2727_v26, %v2706_v58  ;;  %v6608_v1 = vmul.f32 %v5740_v45, %v6571_v62  ;;  %v2195_v10 = vadd.f32 %v5930_v59, %v2174_v0  ;;  %v8389_v0 = vld [vmem:[#allocation59_spill] sm:$0xff] }
 0x1a5   : > { %v6594_v16 = vsel %vm2798_vm1, %v2777_v6, %v8383_v23  ;;  %8385 = vst [vmem:[#allocation103_spill] sm:$0xff] %v6598_v35  ;;  %v2834_v33 = vmul.f32 %v6603_v37, %v2824_v51  ;;  %v2196_v44 = vadd.f32 %v5930_v59, %v2175_v18  ;;  %v2871_v41 = vmul.f32 %v6359_v52, %v6581_v53  ;;  %v8387_v6 = vld [vmem:[#allocation29_spill] sm:$0xff]  ;;  %v6630_v59 = vld [vmem:[%s7962_s6 + $0x108] sm:$0xff]  }
 0x1a6   : > { %8384 = vst [vmem:[#allocation83_spill] sm:$0xff] %v6594_v16  ;;  %8386 = vst [vmem:[#allocation139_spill] sm:$0xff] %v6608_v1  ;;  %v2908_v26 = vmul.f32 %v6617_v42, %v6594_v16  ;;  %v2851_v58 = vadd.f32 %v8387_v6, %v2743_v54  ;;  %v6625_v38 = vmul.f32 %v6137_v21, %v6571_v62  ;;  %v2211_v18 = vmax.f32 %v2195_v10, 0.0 }
 0x1a7   : > { %v2850_v20 = vadd.f32 %v2834_v33, %v2742_v2  ;;  %v2212_v56 = vmax.f32 %v2196_v44, 0.0  ;;  %v3240_v22 = vmul.f32 %v6384_v8, %v5476_v48  ;;  %v3278_v2 = vmul.f32 %v6379_v43, %v8308_v14  ;;  %4572 = vmatprep.subr.bf16.mxu0 %v6630_v59 }
 0x1a8   : > { %8388 = vst [vmem:[#allocation29_spill] sm:$0xff] %v6625_v38  ;;  %v2888_v49 = vadd.f32 %v8389_v0, %v2851_v58  ;;  %v8079_v23 = vrot.slane %v6571_v62, 4  ;;  %v8390_v54 = vrot.slane %v5476_v48, 4  ;;  %v8391_v33 = vrot.slane %v8363_v36, 4  ;;  %4573 = vmatpush3.bf16.msra.mxu0 %v6630_v59  ;;  %v8393_v0 = vld [vmem:[#allocation87_spill] sm:$0xff] }
 0x1a9   : > { %v2887_v51 = vadd.f32 %v2871_v41, %v2850_v20  ;;  %v2223_v10 = vpack.c.bf16 %v2212_v56, %v2211_v18  ;;  %v3316_v41 = vmul.f32 %v6150_v4, %v6571_v62  ;;  %v2508_v20 = vmul.f32 %v6253_v24, %v5539_v47 }
 0x1aa   : > { %v6644_v6 = vsel %vm3386_vm0, %v8391_v33, %v8390_v54  ;;  %v2925_v36 = vadd.f32 %v8393_v0, %v2888_v49  ;;  %v3294_v45 = vadd.f32 %v3278_v2, %v3240_v22  ;;  %v2509_v54 = vmul.f32 %v5500_v5, %v6253_v24  ;;  %v8396_v49 = vld [vmem:[#allocation36_spill] sm:$0xff] }
 0x1ab   : > { %8392 = vst [vmem:[#allocation59_spill] sm:$0xff] %v6644_v6  ;;  %v2924_v58 = vadd.f32 %v2908_v26, %v2887_v51  ;;  %4520 = vmatprep.mubr.bf16.mxu0 %v2223_v10  ;;  %v8394_v18 = vrot.slane %v6337_v29, 4  ;;  %v3434_v33 = vmul.f32 %v6425_v39, %v6644_v6  ;;  %v2546_v26 = vmul.f32 %v6137_v21, %v8308_v14 }
 0x1ac   : > { %v2547_v22 = vmul.f32 %v8309_v13, %v6137_v21  ;;  %v2946_v51 = vadd.f32 %v6409_v40, %v2925_v36  ;;  %v2525_v10 = vadd.f32 %v2509_v54, %v8396_v49  ;;  %v2590_v0 = vrot.slane %v5539_v47, 5  ;;  %v8399_v36 = vld [vmem:[#allocation54_spill] sm:$0xff]  ;;  %v8404_v49 = vld [vmem:[#allocation33_spill] sm:$0xff] }
 0x1ad   : > { %v6662_v56 = vsel %vm3386_vm0, %v8394_v18, %v8079_v23  ;;  %v2945_v2 = vadd.f32 %v6409_v40, %v2924_v58  ;;  %v3332_v44 = vadd.f32 %v3316_v41, %v3294_v45  ;;  %v8397_v18 = vld [vmem:[#allocation43_spill] sm:$0xff]  ;;  %v2591_v35 = vrot.slane %v5500_v5, 5 }
 0x1ae   : > { %8395 = vst [vmem:[#allocation87_spill] sm:$0xff] %v6662_v56  ;;  %v2524_v23 = vadd.f32 %v2508_v20, %v8397_v18  ;;  %v2599_v56 = vrot.slane %v8308_v14, 5  ;;  %v2962_v11 = vmax.f32 %v2946_v51, 0.0  ;;  %v2563_v6 = vadd.f32 %v2547_v22, %v2525_v10  ;;  %v8402_v41 = vld [vmem:[#allocation27_spill] sm:$0xff]  ;;  %v8408_v51 = vld [vmem:[#allocation28_spill] sm:$0xff] }
 0x1af   : > { %v2961_v60 = vmax.f32 %v2945_v2, 0.0  ;;  %v2600_v12 = vrot.slane %v8309_v13, 5  ;;  %v6680_v58 = vsel %vm2616_vm2, %v2590_v0, %v2591_v35  ;;  %v8400_v54 = vrot.slane %v8399_v36, 5 }
 0x1b0   : > { %v2562_v38 = vadd.f32 %v2546_v26, %v2524_v23  ;;  %8398 = vst [vmem:[#allocation36_spill] sm:$0xff] %v6680_v58  ;;  %v8403_v20 = vrot.slane %v8402_v41, 5  ;;  %v8405_v18 = vrot.slane %v8404_v49, 5  ;;  %v6697_v23 = vld [vmem:[%s7962_s6 + $0x100] sm:$0xff]   ;;  %v8409_v10 = vrot.slane %v8408_v51, 5  ;;  %v6738_v51 = vpop.f32.mrf.mxu0 }
 0x1b1   : > { %v6686_v45 = vsel %vm2616_vm2, %v8400_v54, %v2590_v0  ;;  %v2976_v35 = vpack.c.bf16 %v2962_v11, %v2961_v60  ;;  %v6701_v26 = vsel %vm2616_vm2, %v2599_v56, %v2600_v12  ;;  %v6712_v54 = vld [vmem:[%s7959_s3 + $0xc] ss:$0 sm:$0xff]  ;;  %4574 = vmatprep.subr.bf16.mxu0 %v6697_v23  ;;  %v8414_v29 = vrot.slane %v8404_v49, 3  ;;  %8415 = vst [vmem:[#allocation141_spill] sm:$0xff] %v6738_v51 }
 0x1b2   : > { %8401 = vst [vmem:[#allocation43_spill] sm:$0xff] %v6686_v45  ;;  %v2639_v22 = vsel %vm2616_vm2, %v8405_v18, %v8403_v20  ;;  %8406 = vst [vmem:[#allocation54_spill] sm:$0xff] %v6701_v26  ;;  %v8407_v2 = vmov %v8405_v18  ;;  %v8410_v18 = vld [vmem:[#allocation82_spill] sm:$0xff]  ;;  %v2691_v1 = vmul.f32 %v6290_v57, %v6686_v45  ;;  %4575 = vmatpush3.bf16.msra.mxu0 %v6697_v23  ;;  %v8422_v45 = vld [vmem:[#allocation117_spill] sm:$0xff]  ;;  %v8103_v9 = vrot.slane %v6738_v51, 4 }
 0x1b3   : > { %v2640_v0 = vsel %vm2616_vm2, %v8409_v10, %v8407_v2  ;;  %v2655_v20 = vmul.f32 %v6712_v54, %v2639_v22  ;;  %v8411_v11 = vrot.slane %v8410_v18, 5  ;;  %v2692_v2 = vmul.f32 %v6290_v57, %v6680_v58  ;;  %4545 = vmatmul.mubr.bf16.vlgmr.msra.gmra.mxu1 %v2976_v35 }
 0x1b4   : > { %v2654_v60 = vmul.f32 %v6712_v54, %v2640_v0  ;;  %v2729_v22 = vmul.f32 %v6308_v32, %v6701_v26  ;;  %v2771_v18 = vrot.slane %v5539_v47, 3  ;;  %v8420_v26 = vrot.slane %v5500_v5, 3 }
 0x1b5   : > { %v6719_v12 = vsel %vm2616_vm2, %v8411_v11, %v2599_v56  ;;  %v2671_v10 = vadd.f32 %v2655_v20, %v2563_v6  ;;  %v2780_v56 = vrot.slane %v8308_v14, 3  ;;  %v8413_v11 = vrot.slane %v8402_v41, 3  ;;  %v6743_v6 = vld [vmem:[%s7959_s3 + $0xd] ss:$0 sm:$0xff] }
 0x1b6   : > { %8412 = vst [vmem:[#allocation140_spill] sm:$0xff] %v6719_v12  ;;  %v2670_v0 = vadd.f32 %v2654_v60, %v2562_v38  ;;  %v2481_v35 = vmul.f32 %v6743_v6, %v8286_v7  ;;  %v8416_v20 = vld [vmem:[#allocation104_spill] sm:$0xff]  ;;  %v4773_v60 = vld [vmem:[%s7962_s6 + $0x138] sm:$0xff]   ;;  %v6752_v41 = vadd.f32 %v3434_v33, %v3332_v44  ;;  %v6764_v58 = vsel %vm2798_vm1, %v2771_v18, %v8420_v26 }
 0x1b7   : > { %v2822_v62 = vsel %vm2798_vm1, %v8414_v29, %v8413_v11  ;;  %v2519_v38 = vmul.f32 %v8416_v20, %v6253_v24  ;;  %4600 = vmatpush3.bf16.msra.mxu1 %v4773_v60  ;;  %v2708_v29 = vadd.f32 %v2692_v2, %v2671_v10  ;;  %v8418_v11 = vrot.slane %v8309_v13, 3  ;;  %8421 = vst [vmem:[#allocation143_spill] sm:$0xff] %v6764_v58  ;;  %v8423_v60 = vld [vmem:[#allocation40_spill] sm:$0xff] }
 0x1b8   : > { %8417 = vst [vmem:[#allocation104_spill] sm:$0xff] %v6752_v41  ;;  %4593 = vmatprep.subr.bf16.mxu1 %v8422_v45  ;;  %v2707_v16 = vadd.f32 %v2691_v1, %v2670_v0  ;;  %v2728_v44 = vmul.f32 %v6308_v32, %v6719_v12  ;;  %v2836_v33 = vmul.f32 %v6603_v37, %v2822_v62  ;;  %v2606_v41 = vrot.slane %v8416_v20, 5  ;;  %v6779_v0 = vpop.f32.mrf.mxu0  ;;  %v8424_v62 = vld [vmem:[#allocation42_spill] sm:$0xff] }
 0x1b9   : > { %v6758_v49 = vsel %vm2798_vm1, %v2780_v56, %v8418_v11  ;;  %v2535_v2 = vadd.f32 %v2519_v38, %v2481_v35  ;;  %v2745_v10 = vadd.f32 %v2729_v22, %v2708_v29  ;;  %v2557_v56 = vmul.f32 %v6738_v51, %v6137_v21  ;;  %v8425_v29 = vld [vmem:[#allocation122_spill] sm:$0xff] }
 0x1ba   : > { %8419 = vst [vmem:[#allocation142_spill] sm:$0xff] %v6758_v49  ;;  %v8093_v11 = vrot.slane %v8423_v60, 5  ;;  %v2744_v53 = vadd.f32 %v2728_v44, %v2707_v16  ;;  %v2873_v26 = vmul.f32 %v6359_v52, %v6764_v58  ;;  %v2910_v1 = vmul.f32 %v6617_v42, %v6758_v49  ;;  %v4427_v12 = vpop.f32.mrf.mxu0 }
 0x1bb   : > { %4601 = vmatpush3.bf16.msra.mxu1 %v8422_v45  ;;  %v2853_v22 = vadd.f32 %v8424_v62, %v2745_v10  ;;  %v2573_v35 = vadd.f32 %v2557_v56, %v2535_v2  ;;  %v2665_v38 = vmul.f32 %v6712_v54, %v6545_v25  ;;  %v3243_v18 = vmul.f32 %v6384_v8, %v5500_v5  ;;  %v8426_v10 = vld [vmem:[#allocation67_spill] sm:$0xff]  ;;  %v8427_v25 = vld [vmem:[#allocation96_spill] sm:$0xff] }
 0x1bc   : > { %v6787_v16 = vsel %vm2616_vm2, %v8093_v11, %v2606_v41  ;;  %4594 = vmatprep.subr.bf16.mxu1 %v8425_v29  ;;  %v2852_v44 = vadd.f32 %v2836_v33, %v2744_v53  ;;  %v3281_v45 = vmul.f32 %v5773_v46, %v6379_v43  ;;  %v3319_v2 = vmul.f32 %v6738_v51, %v6150_v4 }
 0x1bd   : > { %v2890_v56 = vadd.f32 %v8426_v10, %v2853_v22  ;;  %v2681_v62 = vadd.f32 %v2665_v38, %v2573_v35  ;;  %v8101_v41 = vrot.slane %v5539_v47, 4  ;;  %v8104_v11 = vrot.slane %v5890_v3, 4 }
 0x1be   : > { %v2889_v49 = vadd.f32 %v2873_v26, %v2852_v44  ;;  %v2702_v53 = vmul.f32 %v6290_v57, %v6787_v16  ;;  %v8102_v33 = vrot.slane %v6738_v51, 3  ;;  %v3297_v58 = vadd.f32 %v3281_v45, %v3243_v18 }
 0x1bf   : > { %4602 = vmatpush3.bf16.msra.mxu1 %v8425_v29  ;;  %v2927_v7 = vadd.f32 %v8427_v25, %v2890_v56  ;;  %v8428_v22 = vrot.slane %v5773_v46, 4  ;;  %v8430_v35 = vrot.slane %v5500_v5, 4  ;;  %v6833_v56 = vld [vmem:[%s7959_s3 + $0x1c] ss:$0 sm:$0xff]  ;;  %v8442_v44 = vrot.slane %v8416_v20, 2 }
 0x1c0   : > { %4595 = vmatprep.subr.bf16.mxu1 %v6212_v27  ;;  %v2926_v25 = vadd.f32 %v2910_v1, %v2889_v49  ;;  %v3335_v38 = vadd.f32 %v3319_v2, %v3297_v58  ;;  %v6828_v10 = vadd.f32 %v2702_v53, %v2681_v62  ;;  %v1738_v2 = vmul.f32 %v6177_v63, %v5607_v55  ;;  %v6851_v62 = vld [vmem:[%s7959_s3 + $0x5] ss:$0 sm:$0xff] }
 0x1c1   : > { %v6813_v26 = vsel %vm3386_vm0, %v8104_v11, %v8428_v22  ;;  %v6821_v18 = vsel %vm3386_vm0, %v8101_v41, %v8430_v35  ;;  %v2948_v45 = vadd.f32 %v6409_v40, %v2927_v7  ;;  %v2797_v22 = vrot.slane %v4427_v12, 3 }
 0x1c2   : > { %8429 = vst [vmem:[#allocation117_spill] sm:$0xff] %v6813_v26  ;;  %8431 = vst [vmem:[#allocation40_spill] sm:$0xff] %v6821_v18  ;;  %v3437_v29 = vmul.f32 %v6425_v39, %v6821_v18  ;;  %v3544_v35 = vrot.slane %v4427_v12, 4  ;;  %v2947_v41 = vadd.f32 %v6409_v40, %v2926_v25  ;;  %v3474_v58 = vmul.f32 %v6833_v56, %v6813_v26 }
 0x1c3   : > { %8432 = vst [vmem:[#allocation42_spill] sm:$0xff] %v6828_v10  ;;  %4603 = vmatpush3.bf16.msra.mxu1 %v6212_v27  ;;  %v2799_v7 = vsel %vm2798_vm1, %v8102_v33, %v2797_v22  ;;  %v1739_v12 = vmul.f32 %v6177_v63, %v5557_v31  ;;  %v1776_v53 = vmul.f32 %v6851_v62, %v8308_v14  ;;  %v2964_v25 = vmax.f32 %v2948_v45, 0.0  ;;  %v4775_v33 = vld [vmem:[%s7959_s3 + $0x9] ss:$0 sm:$0xff]  ;;  %v8448_v10 = vld [vmem:[#allocation41_spill] sm:$0xff] }
 0x1c4   : > { %v3453_v49 = vadd.f32 %v3437_v29, %v3335_v38  ;;  %4596 = vmatprep.subr.bf16.mxu1 %v6396_v61  ;;  %v2963_v27 = vmax.f32 %v2947_v41, 0.0  ;;  %v6862_v29 = vsel %vm3386_vm0, %v8103_v9, %v3544_v35  ;;  %v1777_v63 = vmul.f32 %v6851_v62, %v8309_v13 }
 0x1c5   : > { %8434 = vst [vmem:[#allocation67_spill] sm:$0xff] %v6862_v29  ;;  %v1792_v22 = vadd.f32 %v1776_v53, %v1738_v2  ;;  %v1814_v1 = vmul.f32 %v4775_v33, %v8423_v60  ;;  %v1815_v41 = vmul.f32 %v4775_v33, %v8416_v20  ;;  %v1865_v35 = vrot.slane %v8416_v20, 6  ;;  %v8446_v29 = vld [vmem:[#allocation127_spill] sm:$0xff] }
 0x1c6   : > { %v6856_v38 = vadd.f32 %v3474_v58, %v3453_v49  ;;  %v2977_v45 = vpack.c.bf16 %v2964_v25, %v2963_v27  ;;  %v6872_v49 = vmul.f32 %v6617_v42, %v2799_v7  ;;  %v1864_v58 = vrot.slane %v8423_v60, 6  ;;  %v8437_v7 = vld [vmem:[#allocation107_spill] sm:$0xff] }
 0x1c7   : > { %4604 = vmatpush3.bf16.msra.mxu1 %v6396_v61  ;;  %v1793_v9 = vadd.f32 %v1777_v63, %v1739_v12  ;;  %v1830_v2 = vadd.f32 %v1814_v1, %v1792_v22  ;;  %v1914_v53 = vmul.f32 %v6476_v17, %v5974_v30  ;;  %v1915_v11 = vmul.f32 %v6476_v17, %v5968_v15  ;;  %v6895_v30 = vld [vmem:[%s7959_s3 + $0x4] ss:$0 sm:$0xff]  ;;  %v8440_v1 = vld [vmem:[#allocation64_spill] sm:$0xff] }
 0x1c8   : > { %8433 = vst [vmem:[#allocation122_spill] sm:$0xff] %v6856_v38  ;;  %8435 = vst [vmem:[#allocation96_spill] sm:$0xff] %v6872_v49  ;;  %4597 = vmatprep.subr.bf16.mxu1 %v6401_v28  ;;  %4548 = vmatprep.mubr.bf16.mxu1 %v2977_v45  ;;  %v6884_v33 = vsel %vm1874_vm4, %v1864_v58, %v1865_v35  ;;  %v8438_v27 = vrot.slane %v8437_v7, 6  ;;  %v1951_v15 = vmul.f32 %v6895_v30, %v8440_v1  ;;  %v8441_v22 = vld [vmem:[#allocation84_spill] sm:$0xff]  ;;  %v8447_v38 = vld [vmem:[#allocation135_spill] sm:$0xff] }
 0x1c9   : > { %8436 = vst [vmem:[#allocation144_spill] sm:$0xff] %v6884_v33  ;;  %v2037_v12 = vrot.slane %v8423_v60, 2  ;;  %v1831_v25 = vadd.f32 %v1815_v41, %v1793_v9  ;;  %v1930_v63 = vadd.f32 %v1914_v53, %v1830_v2  ;;  %v1952_v45 = vmul.f32 %v6895_v30, %v8441_v22  ;;  %v8444_v41 = vld [vmem:[#allocation110_spill] sm:$0xff] }
 0x1ca   : > { %v6890_v61 = vsel %vm1874_vm4, %v8438_v27, %v1864_v58  ;;  %v6905_v58 = vld [vmem:[%s7959_s3 + $0x8] ss:$0 sm:$0xff]  ;;  %v8445_v2 = vld [vmem:[#allocation118_spill] sm:$0xff]  ;;  %v2123_v26 = vmul.f32 %v8447_v38, %v8446_v29  ;;  %v8450_v29 = vld [vmem:[#allocation11_spill] sm:$0xff] }
 0x1cb   : > { %8439 = vst [vmem:[#allocation107_spill] sm:$0xff] %v6890_v61  ;;  %v1988_v35 = vmul.f32 %v6905_v58, %v6890_v61  ;;  %v1989_v27 = vmul.f32 %v6905_v58, %v6884_v33  ;;  %v6915_v9 = vsel %vm2046_vm3, %v2037_v12, %v8442_v44  ;;  %v2086_v53 = vmul.f32 %v8445_v2, %v8444_v41  ;;  %v8449_v33 = vld [vmem:[#allocation37_spill] sm:$0xff] }
 0x1cc   : > { %8443 = vst [vmem:[#allocation145_spill] sm:$0xff] %v6915_v9  ;;  %4605 = vmatpush3.bf16.msra.mxu1 %v6401_v28  ;;  %v1931_v18 = vadd.f32 %v1915_v11, %v1831_v25  ;;  %v1967_v49 = vadd.f32 %v1951_v15, %v1930_v63  ;;  %v2472_v61 = vmul.f32 %v6743_v6, %v8448_v10  ;;  %v2602_v25 = vrot.slane %v5890_v3, 5 }
 0x1cd   : > { %v2473_v22 = vmul.f32 %v6743_v6, %v8449_v33  ;;  %4598 = vmatprep.subr.bf16.mxu1 %v6630_v59  ;;  %v2510_v44 = vmul.f32 %v6253_v24, %v5607_v55  ;;  %v2511_v12 = vmul.f32 %v5557_v31, %v6253_v24  ;;  %v2548_v41 = vmul.f32 %v6137_v21, %v5890_v3 }
 0x1ce   : > { %v2549_v28 = vmul.f32 %v5773_v46, %v6137_v21  ;;  %v1968_v11 = vadd.f32 %v1952_v45, %v1931_v18  ;;  %v2004_v15 = vadd.f32 %v1988_v35, %v1967_v49  ;;  %v2603_v63 = vrot.slane %v5773_v46, 5  ;;  %v8452_v49 = vld [vmem:[#allocation97_spill] sm:$0xff] }
 0x1cf   : > { %v2160_v2 = vmul.f32 %v6529_v50, %v6915_v9  ;;  %v2526_v33 = vadd.f32 %v2510_v44, %v2472_v61  ;;  %v2527_v10 = vadd.f32 %v2511_v12, %v2473_v22  ;;  %v2656_v1 = vmul.f32 %v6712_v54, %v8450_v29  ;;  %v8455_v44 = vld [vmem:[#allocation55_spill] sm:$0xff]  ;;  %v8683_v19 = vld [vmem:[#allocation122_spill] sm:$0xff] }
 0x1d0   : > { %4606 = vmatpush3.bf16.msra.mxu1 %v6630_v59  ;;  %v2005_v13 = vadd.f32 %v1989_v27, %v1968_v11  ;;  %v2102_v14 = vadd.f32 %v2086_v53, %v2004_v15  ;;  %v6944_v18 = vsel %vm2616_vm2, %v2602_v25, %v2603_v63  ;;  %v8453_v45 = vrot.slane %v8452_v49, 5  ;;  %v8456_v59 = vld [vmem:[#allocation130_spill] sm:$0xff]  ;;  %v8457_v53 = vld [vmem:[#allocation72_spill] sm:$0xff]  ;;  %v8458_v15 = vld [vmem:[#allocation73_spill] sm:$0xff] }
 0x1d1   : > { %8451 = vst [vmem:[#allocation110_spill] sm:$0xff] %v6944_v18  ;;  %4599 = vmatprep.subr.bf16.mxu1 %v6697_v23  ;;  %v2564_v61 = vadd.f32 %v2548_v41, %v2526_v33  ;;  %v2565_v22 = vadd.f32 %v2549_v28, %v2527_v10  ;;  %v2657_v29 = vmul.f32 %v6712_v54, %v8455_v44  ;;  %v2783_v33 = vrot.slane %v5890_v3, 3  ;;  %v6965_v41 = vpop.f32.mrf.mxu0  ;;  %v8460_v28 = vld [vmem:[#allocation92_spill] sm:$0xff] }
 0x1d2   : > { %v6950_v35 = vsel %vm2616_vm2, %v8453_v45, %v2602_v25  ;;  %v2693_v27 = vmul.f32 %v6290_v57, %v8456_v59  ;;  %v2103_v12 = vadd.f32 %v8457_v53, %v2005_v13  ;;  %v2139_v11 = vadd.f32 %v2123_v26, %v2102_v14  ;;  %8459 = vst [vmem:[#allocation135_spill] sm:$0xff] %v6965_v41  ;;  %v8461_v26 = vld [vmem:[#allocation131_spill] sm:$0xff] }
 0x1d3   : > { %8454 = vst [vmem:[#allocation118_spill] sm:$0xff] %v6950_v35  ;;  %v2694_v63 = vmul.f32 %v6290_v57, %v8458_v15  ;;  %v2730_v25 = vmul.f32 %v6308_v32, %v6950_v35  ;;  %v2672_v45 = vadd.f32 %v2656_v1, %v2564_v61  ;;  %v2673_v9 = vadd.f32 %v2657_v29, %v2565_v22  ;;  %v8462_v53 = vld [vmem:[#allocation19_spill] sm:$0xff] }
 0x1d4   : > { %v2731_v10 = vmul.f32 %v6308_v32, %v6944_v18  ;;  %4607 = vmatpush3.bf16.msra.mxu1 %v6697_v23  ;;  %v2140_v13 = vadd.f32 %v8460_v28, %v2103_v12  ;;  %v2176_v14 = vadd.f32 %v2160_v2, %v2139_v11  ;;  %v2838_v44 = vmul.f32 %v6603_v37, %v8461_v26  ;;  %v8463_v18 = vld [vmem:[#allocation16_spill] sm:$0xff]  ;;  %v6981_v23 = vld [vmem:[%s7960_s4] ss:$0 sm:$0xff] }
 0x1d5   : > { %v2875_v35 = vmul.f32 %v6359_v52, %v8462_v53  ;;  %v2709_v1 = vadd.f32 %v2693_v27, %v2672_v45  ;;  %v2710_v61 = vadd.f32 %v2694_v63, %v2673_v9  ;;  %v2480_v22 = vmul.f32 %v6743_v6, %v5671_v34 }
 0x1d6   : > { %v2518_v29 = vmul.f32 %v6253_v24, %v8423_v60  ;;  %v2177_v15 = vadd.f32 %v8463_v18, %v2140_v13  ;;  %v2197_v2 = vadd.f32 %v6981_v23, %v2176_v14  ;;  %v8464_v12 = vrot.slane %v5773_v46, 3 }
 0x1d7   : > { %v2556_v27 = vmul.f32 %v6137_v21, %v6965_v41  ;;  %v2746_v11 = vadd.f32 %v2730_v25, %v2709_v1  ;;  %v2747_v63 = vadd.f32 %v2731_v10, %v2710_v61  ;;  %v2614_v18 = vrot.slane %v6965_v41, 5  ;;  %v8469_v21 = vld [vmem:[#allocation49_spill] sm:$0xff] }
 0x1d8   : > { %v6988_v9 = vsel %vm2798_vm1, %v2783_v33, %v8464_v12  ;;  %v2534_v45 = vadd.f32 %v2518_v29, %v2480_v22  ;;  %v2198_v28 = vadd.f32 %v6981_v23, %v2177_v15  ;;  %v2213_v13 = vmax.f32 %v2197_v2, 0.0  ;;  %v8468_v33 = vld [vmem:[#allocation137_spill] sm:$0xff] }
 0x1d9   : > { %8465 = vst [vmem:[#allocation11_spill] sm:$0xff] %v6988_v9  ;;  %v8466_v26 = vrot.slane %v8423_v60, 5  ;;  %v8467_v14 = vrot.slane %v8437_v7, 5  ;;  %v2664_v12 = vmul.f32 %v6712_v54, %v8468_v33  ;;  %v2854_v59 = vadd.f32 %v2838_v44, %v2746_v11  ;;  %v8472_v11 = vld [vmem:[#allocation75_spill] sm:$0xff] }
 0x1da   : > { %v2855_v25 = vadd.f32 %v8469_v21, %v2747_v63  ;;  %v2572_v10 = vadd.f32 %v2556_v27, %v2534_v45  ;;  %v8470_v1 = vrot.slane %v6738_v51, 5  ;;  %v2214_v61 = vmax.f32 %v2198_v28, 0.0 }
 0x1db   : > { %v2624_v53 = vsel %vm2616_vm2, %v8467_v14, %v8466_v26  ;;  %v2912_v22 = vmul.f32 %v6617_v42, %v6988_v9  ;;  %v8471_v29 = vrot.slane %v6779_v0, 5  ;;  %v2891_v44 = vadd.f32 %v2875_v35, %v2854_v59 }
 0x1dc   : > { %v2617_v15 = vsel %vm2616_vm2, %v2614_v18, %v8470_v1  ;;  %v2701_v26 = vmul.f32 %v6290_v57, %v2624_v53  ;;  %v2892_v63 = vadd.f32 %v8472_v11, %v2855_v25  ;;  %v2680_v27 = vadd.f32 %v2664_v12, %v2572_v10 }
 0x1dd   : > { %v2618_v2 = vsel %vm2616_vm2, %v8471_v29, %v2614_v18  ;;  %v7016_v45 = vmul.f32 %v6308_v32, %v2617_v15  ;;  %v2224_v14 = vpack.c.bf16 %v2214_v61, %v2213_v13  ;;  %v3242_v21 = vmul.f32 %v6384_v8, %v5539_v47  ;;  %v8475_v29 = vld [vmem:[#allocation106_spill] sm:$0xff] }
 0x1de   : > { %v7019_v28 = vmul.f32 %v6308_v32, %v2618_v2  ;;  %v3280_v1 = vmul.f32 %v6379_v43, %v5890_v3  ;;  %v2928_v18 = vadd.f32 %v2912_v22, %v2891_v44  ;;  %v2929_v51 = vadd.f32 %v8475_v29, %v2892_v63 }
 0x1df   : > { %8473 = vst [vmem:[#allocation97_spill] sm:$0xff] %v7016_v45  ;;  %v3318_v59 = vmul.f32 %v6150_v4, %v6965_v41  ;;  %4521 = vmatmul.mubr.bf16.gmra.mxu0 %v2224_v14  ;;  %v8118_v13 = vrot.slane %v6965_v41, 4  ;;  %v8476_v25 = vrot.slane %v5890_v3, 4  ;;  %v8477_v10 = vrot.slane %v8452_v49, 4 }
 0x1e0   : > { %8474 = vst [vmem:[#allocation55_spill] sm:$0xff] %v7019_v28  ;;  %v3296_v12 = vadd.f32 %v3280_v1, %v3242_v21  ;;  %v8479_v61 = vrot.slane %v5539_v47, 4  ;;  %v8480_v22 = vrot.slane %v8399_v36, 4  ;;  %v2949_v4 = vadd.f32 %v6409_v40, %v2928_v18 }
 0x1e1   : > { %v7036_v15 = vsel %vm3386_vm0, %v8477_v10, %v8476_v25  ;;  %v2950_v44 = vadd.f32 %v6409_v40, %v2929_v51  ;;  %v7046_v11 = vadd.f32 %v2701_v26, %v2680_v27  ;;  %v8482_v14 = vrot.slane %v6779_v0, 4  ;;  %v8484_v27 = vld [vmem:[#allocation45_spill] sm:$0xff]  ;;  %v8485_v10 = vld [vmem:[#allocation70_spill] sm:$0xff] }
 0x1e2   : > { %8478 = vst [vmem:[#allocation72_spill] sm:$0xff] %v7036_v15  ;;  %v3406_v2 = vsel %vm3386_vm0, %v8480_v22, %v8479_v61  ;;  %v3334_v49 = vadd.f32 %v3318_v59, %v3296_v12  ;;  %v3473_v1 = vmul.f32 %v6833_v56, %v7036_v15  ;;  %v2965_v18 = vmax.f32 %v2949_v4, 0.0  ;;  %v7064_v59 = vpop.f32.mrf.mxu0  ;;  %v7069_v12 = vld [vmem:[%s7959_s3 + $0x20] ss:$0 sm:$0xff]  ;;  %v4779_v22 = vld [vmem:[%s7959_s3 + $0x15] ss:$0 sm:$0xff] }
 0x1e3   : > { %8481 = vst [vmem:[#allocation92_spill] sm:$0xff] %v7046_v11  ;;  %v3436_v63 = vmul.f32 %v6425_v39, %v3406_v2  ;;  %v3390_v21 = vsel %vm3386_vm0, %v8482_v14, %v8118_v13  ;;  %v7056_v36 = vmul.f32 %v6833_v56, %v3406_v2  ;;  %v2966_v51 = vmax.f32 %v2950_v44, 0.0  ;;  %v8511_v11 = vld [vmem:[#allocation114_spill] sm:$0xff] }
 0x1e4   : > { %v2474_v26 = vmul.f32 %v6743_v6, %v5476_v48  ;;  %v2475_v29 = vmul.f32 %v6743_v6, %v8484_v27  ;;  %v2512_v25 = vmul.f32 %v6253_v24, %v5671_v34  ;;  %v2513_v61 = vmul.f32 %v8485_v10, %v6253_v24  ;;  %v8489_v24 = vld [vmem:[#allocation138_spill] sm:$0xff] }
 0x1e5   : > { %8483 = vst [vmem:[#allocation131_spill] sm:$0xff] %v7056_v36  ;;  %v3452_v0 = vadd.f32 %v3436_v63, %v3334_v49  ;;  %v2550_v2 = vmul.f32 %v4779_v22, %v8423_v60  ;;  %v2978_v4 = vpack.c.bf16 %v2966_v51, %v2965_v18  ;;  %v7080_v44 = vmul.f32 %v7069_v12, %v3390_v21  ;;  %v8487_v49 = vld [vmem:[#allocation24_spill] sm:$0xff]  ;;  %v8490_v18 = vld [vmem:[#allocation46_spill] sm:$0xff] }
 0x1e6   : > { %v2551_v63 = vmul.f32 %v4779_v22, %v8416_v20  ;;  %v2658_v14 = vmul.f32 %v6712_v54, %v8487_v49  ;;  %v2528_v35 = vadd.f32 %v2512_v25, %v2474_v26  ;;  %v2529_v36 = vadd.f32 %v2513_v61, %v2475_v29  ;;  %v8491_v29 = vld [vmem:[#allocation35_spill] sm:$0xff] }
 0x1e7   : > { %8486 = vst [vmem:[#allocation16_spill] sm:$0xff] %v7080_v44  ;;  %v7085_v13 = vadd.f32 %v3473_v1, %v3452_v0  ;;  %v2659_v15 = vmul.f32 %v6712_v54, %v8489_v24  ;;  %4549 = vmatmul.mubr.bf16.gmra.mxu1 %v2978_v4  ;;  %v2695_v27 = vmul.f32 %v6290_v57, %v8468_v33  ;;  %v2786_v22 = vrot.slane %v8423_v60, 3  ;;  %v7095_v44 = vpop.f32.mrf.mxu0 }
 0x1e8   : > { %v2696_v21 = vmul.f32 %v6290_v57, %v8490_v18  ;;  %v2732_v51 = vmul.f32 %v6308_v32, %v2624_v53  ;;  %v2566_v1 = vadd.f32 %v2550_v2, %v2528_v35  ;;  %v2567_v0 = vadd.f32 %v2551_v63, %v2529_v36  ;;  %v7114_v35 = vld [vmem:[%s7959_s3 + $0x21] ss:$0 sm:$0xff] }
 0x1e9   : > { %8488 = vst [vmem:[#allocation137_spill] sm:$0xff] %v7085_v13  ;;  %v2733_v26 = vmul.f32 %v6308_v32, %v6787_v16  ;;  %v2840_v25 = vmul.f32 %v6603_v37, %v8491_v29  ;;  %v8492_v61 = vrot.slane %v8416_v20, 3  ;;  %v3245_v57 = vmul.f32 %v6384_v8, %v5557_v31  ;;  %v8494_v2 = vld [vmem:[#allocation83_spill] sm:$0xff]  ;;  %v4431_v29 = vpop.f32.mrf.mxu0 }
 0x1ea   : > { %v3283_v53 = vmul.f32 %v8416_v20, %v6379_v43  ;;  %v3321_v32 = vmul.f32 %v7114_v35, %v7064_v59  ;;  %v2674_v16 = vadd.f32 %v2658_v14, %v2566_v1  ;;  %v2675_v36 = vadd.f32 %v2659_v15, %v2567_v0 }
 0x1eb   : > { %v7105_v33 = vsel %vm2798_vm1, %v2786_v22, %v8492_v61  ;;  %v2877_v4 = vmul.f32 %v6359_v52, %v8494_v2  ;;  %v8121_v63 = vrot.slane %v5607_v55, 4  ;;  %v8123_v18 = vrot.slane %v8423_v60, 4 }
 0x1ec   : > { %8493 = vst [vmem:[#allocation49_spill] sm:$0xff] %v7105_v33  ;;  %v2914_v49 = vmul.f32 %v6617_v42, %v7105_v33  ;;  %v3299_v24 = vadd.f32 %v3283_v53, %v3245_v57  ;;  %v8122_v22 = vrot.slane %v7064_v59, 4  ;;  %v2711_v61 = vadd.f32 %v2695_v27, %v2674_v16  ;;  %v8509_v33 = vld [vmem:[#allocation115_spill] sm:$0xff] }
 0x1ed   : > { %v2712_v13 = vadd.f32 %v2696_v21, %v2675_v36  ;;  %v8495_v48 = vrot.slane %v5557_v31, 4  ;;  %v3545_v14 = vrot.slane %v4431_v29, 4  ;;  %v8496_v0 = vrot.slane %v8416_v20, 4  ;;  %v8502_v21 = vld [vmem:[#allocation113_spill] sm:$0xff] }
 0x1ee   : > { %v3337_v1 = vadd.f32 %v3321_v32, %v3299_v24  ;;  %v2748_v53 = vadd.f32 %v2732_v51, %v2711_v61  ;;  %v7161_v51 = vld [vmem:[%s7959_s3 + $0x1] ss:$0 sm:$0xff]  ;;  %v8499_v61 = vld [vmem:[#allocation58_spill] sm:$0xff]  ;;  %v1916_v2 = vmul.f32 %v6476_v17, %v8509_v33  ;;  %v8515_v33 = vld [vmem:[#allocation128_spill] sm:$0xff] }
 0x1ef   : > { %v7131_v15 = vsel %vm3386_vm0, %v8121_v63, %v8495_v48  ;;  %v7139_v57 = vsel %vm3386_vm0, %v8123_v18, %v8496_v0  ;;  %v2749_v16 = vadd.f32 %v2733_v26, %v2712_v13  ;;  %v3546_v32 = vsel %vm3386_vm0, %v8122_v22, %v3545_v14  ;;  %v8504_v18 = vld [vmem:[#allocation125_spill] sm:$0xff] }
 0x1f0   : > { %8497 = vst [vmem:[#allocation75_spill] sm:$0xff] %v7139_v57  ;;  %v3439_v27 = vmul.f32 %v6425_v39, %v7131_v15  ;;  %v7146_v48 = vmul.f32 %v6833_v56, %v7131_v15  ;;  %v7156_v24 = vmul.f32 %v6833_v56, %v7139_v57  ;;  %v1740_v13 = vmul.f32 %v7161_v51, %v5671_v34 }
 0x1f1   : > { %v1741_v26 = vmul.f32 %v7161_v51, %v8485_v10  ;;  %v2856_v29 = vadd.f32 %v2840_v25, %v2748_v53  ;;  %v2857_v14 = vadd.f32 %v8499_v61, %v2749_v16  ;;  %v1779_v0 = vmul.f32 %v6851_v62, %v5773_v46  ;;  %v8507_v61 = vld [vmem:[#allocation99_spill] sm:$0xff]  ;;  %v8512_v10 = vld [vmem:[#allocation134_spill] sm:$0xff] }
 0x1f2   : > { %8498 = vst [vmem:[#allocation106_spill] sm:$0xff] %v7146_v48  ;;  %v7152_v36 = vadd.f32 %v3439_v27, %v3337_v1  ;;  %v1778_v1 = vmul.f32 %v6851_v62, %v5890_v3  ;;  %v7175_v27 = vld [vmem:[%s7959_s3 + $0x22] ss:$0 sm:$0xff]  ;;  %v8503_v22 = vrot.slane %v8502_v21, 6  ;;  %v8505_v25 = vrot.slane %v8504_v18, 6 }
 0x1f3   : > { %8500 = vst [vmem:[#allocation24_spill] sm:$0xff] %v7175_v27  ;;  %v7178_v63 = vmul.f32 %v7175_v27, %v3546_v32  ;;  %v8508_v48 = vrot.slane %v8507_v61, 6  ;;  %v2893_v41 = vadd.f32 %v2877_v4, %v2856_v29  ;;  %v8510_v32 = vld [vmem:[#allocation86_spill] sm:$0xff]  ;;  %v1795_v28 = vadd.f32 %v1779_v0, %v1741_v26  ;;  %v8516_v29 = vld [vmem:[#allocation120_spill] sm:$0xff] }
 0x1f4   : > { %v1877_v53 = vsel %vm1874_vm4, %v8505_v25, %v8503_v22  ;;  %v8506_v16 = vmov %v8505_v25  ;;  %v1794_v45 = vadd.f32 %v1778_v1, %v1740_v13  ;;  %v1917_v27 = vmul.f32 %v6476_v17, %v8511_v11  ;;  %v8513_v25 = vld [vmem:[#allocation133_spill] sm:$0xff]  ;;  %v7210_v11 = vld [vmem:[%s7959_s3 + $0x2] ss:$0 sm:$0xff] }
 0x1f5   : > { %8501 = vst [vmem:[#allocation138_spill] sm:$0xff] %v7178_v63  ;;  %v1878_v57 = vsel %vm1874_vm4, %v8508_v48, %v8506_v16  ;;  %v2894_v63 = vadd.f32 %v8510_v32, %v2857_v14  ;;  %v1953_v22 = vmul.f32 %v6895_v30, %v8512_v10  ;;  %v1954_v34 = vmul.f32 %v6895_v30, %v8513_v25  ;;  %v8514_v16 = vld [vmem:[#allocation112_spill] sm:$0xff]  ;;  %v8517_v10 = vld [vmem:[#allocation119_spill] sm:$0xff] }
 0x1f6   : > { %v1990_v9 = vmul.f32 %v6905_v58, %v1878_v57  ;;  %v2930_v48 = vadd.f32 %v2914_v49, %v2893_v41  ;;  %v1832_v4 = vadd.f32 %v8515_v33, %v1794_v45  ;;  %v1833_v14 = vadd.f32 %v8516_v29, %v1795_v28  ;;  %v8518_v57 = vld [vmem:[#allocation136_spill] sm:$0xff] }
 0x1f7   : > { %v2931_v46 = vadd.f32 %v8514_v16, %v2894_v63  ;;  %v1991_v13 = vmul.f32 %v6905_v58, %v1877_v53  ;;  %v2040_v26 = vrot.slane %v8504_v18, 2  ;;  %v2088_v1 = vmul.f32 %v7210_v11, %v8517_v10  ;;  %v7229_v16 = vld [vmem:[%s7959_s3 + $0x11] ss:$0 sm:$0xff]  ;;  %v8521_v29 = vld [vmem:[#allocation80_spill] sm:$0xff] }
 0x1f8   : > { %v2125_v41 = vmul.f32 %v8447_v38, %v8518_v57  ;;  %v2951_v63 = vadd.f32 %v6409_v40, %v2930_v48  ;;  %v1932_v28 = vadd.f32 %v1916_v2, %v1832_v4  ;;  %v1933_v49 = vadd.f32 %v1917_v27, %v1833_v14  ;;  %v8520_v48 = vld [vmem:[#allocation90_spill] sm:$0xff] }
 0x1f9   : > { %v2952_v45 = vadd.f32 %v6409_v40, %v2931_v46  ;;  %v8519_v0 = vrot.slane %v8502_v21, 2  ;;  %v2476_v32 = vmul.f32 %v6743_v6, %v5539_v47  ;;  %v2477_v25 = vmul.f32 %v6743_v6, %v5500_v5 }
 0x1fa   : > { %v2514_v46 = vmul.f32 %v7229_v16, %v8520_v48  ;;  %v2967_v40 = vmax.f32 %v2951_v63, 0.0  ;;  %v1969_v27 = vadd.f32 %v1953_v22, %v1932_v28  ;;  %v1970_v33 = vadd.f32 %v1954_v34, %v1933_v49  ;;  %v8526_v28 = vld [vmem:[#allocation129_spill] sm:$0xff] }
 0x1fb   : > { %v2050_v53 = vsel %vm2046_vm3, %v2040_v26, %v8519_v0  ;;  %v2968_v2 = vmax.f32 %v2952_v45, 0.0  ;;  %v2515_v14 = vmul.f32 %v7229_v16, %v8521_v29  ;;  %v8522_v10 = vrot.slane %v8502_v21, 5 }
 0x1fc   : > { %v2162_v4 = vmul.f32 %v6529_v50, %v2050_v53  ;;  %v2530_v26 = vadd.f32 %v2514_v46, %v2476_v32  ;;  %v8523_v57 = vrot.slane %v8504_v18, 5  ;;  %v2006_v47 = vadd.f32 %v1990_v9, %v1969_v27  ;;  %v8527_v53 = vld [vmem:[#allocation43_spill] sm:$0xff]  ;;  %v8528_v46 = vld [vmem:[#allocation36_spill] sm:$0xff]  ;;  %v8529_v9 = vld [vmem:[#allocation81_spill] sm:$0xff] }
 0x1fd   : > { %v2979_v5 = vpack.c.bf16 %v2968_v2, %v2967_v40  ;;  %v2007_v3 = vadd.f32 %v1991_v13, %v1970_v33  ;;  %v8525_v34 = vrot.slane %v8507_v61, 5  ;;  %v2531_v45 = vadd.f32 %v2515_v14, %v2477_v25  ;;  %v7257_v2 = vld [vmem:[%s7959_s3 + $0x10] ss:$0 sm:$0xff]  ;;  %v8530_v27 = vld [vmem:[#allocation140_spill] sm:$0xff]  ;;  %v8531_v33 = vld [vmem:[#allocation54_spill] sm:$0xff] }
 0x1fe   : > { %v2621_v0 = vsel %vm2616_vm2, %v8523_v57, %v8522_v10  ;;  %v8524_v63 = vmov %v8523_v57  ;;  %v2568_v49 = vadd.f32 %v8526_v28, %v2530_v26  ;;  %v2660_v32 = vmul.f32 %v6712_v54, %v8527_v53  ;;  %v8532_v26 = vld [vmem:[#allocation121_spill] sm:$0xff]  ;;  %v8534_v53 = vld [vmem:[#allocation143_spill] sm:$0xff] }
 0x1ff   : > { %v2622_v22 = vsel %vm2616_vm2, %v8525_v34, %v8524_v63  ;;  %v2661_v50 = vmul.f32 %v6712_v54, %v8528_v46  ;;  %4552 = vmatprep.mubr.bf16.mxu1 %v2979_v5  ;;  %v2104_v40 = vadd.f32 %v2088_v1, %v2006_v47  ;;  %v2105_v13 = vadd.f32 %v8529_v9, %v2007_v3  ;;  %v7267_v5 = vld [vmem:[%s7959_s3 + $0x14] ss:$0 sm:$0xff]  ;;  %v8533_v63 = vld [vmem:[#allocation102_spill] sm:$0xff] }
 0x200   : > { %v2697_v25 = vmul.f32 %v7257_v2, %v8530_v27  ;;  %v2698_v14 = vmul.f32 %v7257_v2, %v8531_v33  ;;  %v2569_v10 = vadd.f32 %v8532_v26, %v2531_v45  ;;  %v2676_v57 = vadd.f32 %v2660_v32, %v2568_v49  ;;  %v8535_v49 = vld [vmem:[#allocation142_spill] sm:$0xff]  ;;  %v8536_v27 = vld [vmem:[#allocation33_spill] sm:$0xff] }
 0x201   : > { %v2734_v47 = vmul.f32 %v7267_v5, %v2622_v22  ;;  %v2735_v3 = vmul.f32 %v7267_v5, %v2621_v0  ;;  %v2141_v1 = vadd.f32 %v2125_v41, %v2104_v40  ;;  %v2142_v34 = vadd.f32 %v8533_v63, %v2105_v13  ;;  %v8537_v22 = vld [vmem:[#allocation48_spill] sm:$0xff]  ;;  %v943_v40 = vpop.f32.mrf.mxu0 }
 0x202   : > { %v2789_v28 = vrot.slane %v8504_v18, 3  ;;  %v2842_v46 = vmul.f32 %v6603_v37, %v8534_v53  ;;  %v2677_v9 = vadd.f32 %v2661_v50, %v2569_v10  ;;  %v2713_v45 = vadd.f32 %v2697_v25, %v2676_v57 }
 0x203   : > { %v2879_v32 = vmul.f32 %v6359_v52, %v8535_v49  ;;  %v3236_v33 = vmul.f32 %v6384_v8, %v8536_v27  ;;  %v2178_v26 = vadd.f32 %v2162_v4, %v2141_v1  ;;  %v2179_v61 = vadd.f32 %v8537_v22, %v2142_v34  ;;  %v8539_v49 = vld [vmem:[#allocation66_spill] sm:$0xff] }
 0x204   : > { %v8538_v41 = vrot.slane %v8502_v21, 3  ;;  %v3244_v13 = vmul.f32 %v6384_v8, %v5607_v55  ;;  %v2714_v50 = vadd.f32 %v2698_v14, %v2677_v9  ;;  %v2750_v25 = vadd.f32 %v2734_v47, %v2713_v45 }
 0x205   : > { %v3274_v52 = vmul.f32 %v6379_v43, %v5607_v55  ;;  %v2199_v4 = vadd.f32 %v6981_v23, %v2178_v26  ;;  %v2200_v57 = vadd.f32 %v6981_v23, %v2179_v61  ;;  %v3282_v1 = vmul.f32 %v6379_v43, %v8423_v60 }
 0x206   : > { %v2804_v0 = vsel %vm2798_vm1, %v2789_v28, %v8538_v41  ;;  %v3312_v63 = vmul.f32 %v7114_v35, %v8423_v60  ;;  %v2751_v34 = vadd.f32 %v2735_v3, %v2714_v50  ;;  %v2858_v28 = vadd.f32 %v2842_v46, %v2750_v25 }
 0x207   : > { %v2916_v10 = vmul.f32 %v6617_v42, %v2804_v0  ;;  %v3290_v8 = vadd.f32 %v3274_v52, %v3236_v33  ;;  %v3320_v14 = vmul.f32 %v7114_v35, %v943_v40  ;;  %v2215_v47 = vmax.f32 %v2199_v4, 0.0  ;;  %v8546_v4 = vld [vmem:[#allocation62_spill] sm:$0xff] }
 0x208   : > { %v2216_v53 = vmax.f32 %v2200_v57, 0.0  ;;  %v3298_v9 = vadd.f32 %v3282_v1, %v3244_v13  ;;  %v3384_v45 = vrot.slane %v943_v40, 4  ;;  %v2859_v22 = vadd.f32 %v8539_v49, %v2751_v34  ;;  %v8544_v13 = vld [vmem:[#allocation95_spill] sm:$0xff] }
 0x209   : > { %v2895_v26 = vadd.f32 %v2879_v32, %v2858_v28  ;;  %v3328_v41 = vadd.f32 %v3312_v63, %v3290_v8  ;;  %v8540_v61 = vrot.slane %v8423_v60, 4  ;;  %v8541_v43 = vrot.slane %v8437_v7, 4  ;;  %v8549_v63 = vld [vmem:[#allocation28_spill] sm:$0xff] }
 0x20a   : > { %v2225_v3 = vpack.c.bf16 %v2216_v53, %v2215_v47  ;;  %v3336_v46 = vadd.f32 %v3320_v14, %v3298_v9  ;;  %v8542_v33 = vrot.slane %v7064_v59, 4  ;;  %v8543_v40 = vrot.slane %v7095_v44, 4  ;;  %v8551_v47 = vld [vmem:[#allocation124_spill] sm:$0xff]  ;;  %v7335_v9 = vld [vmem:[%s7960_s4 + $0x1] ss:$0 sm:$0xff] }
 0x20b   : > { %v3396_v0 = vsel %vm3386_vm0, %v8541_v43, %v8540_v61  ;;  %v2896_v25 = vadd.f32 %v8544_v13, %v2859_v22  ;;  %v2932_v52 = vadd.f32 %v2916_v10, %v2895_v26  ;;  %v8545_v7 = vrot.slane %v5607_v55, 4 }
 0x20c   : > { %v7307_v50 = vsel %vm3386_vm0, %v3384_v45, %v8542_v33  ;;  %v3388_v32 = vsel %vm3386_vm0, %v8543_v40, %v3384_v45  ;;  %v8547_v57 = vrot.slane %v8546_v4, 4  ;;  %v8548_v59 = vrot.slane %v8536_v27, 4  ;;  %4524 = vmatprep.mubr.bf16.mxu0 %v2225_v3  ;;  %v7347_v3 = vld [vmem:[%s7959_s3 + $0x1a] ss:$0 sm:$0xff] }
 0x20d   : > { %v8550_v34 = vrot.slane %v8549_v63, 4  ;;  %v3492_v28 = vadd.f32 %v7156_v24, %v7152_v36  ;;  %v2933_v53 = vadd.f32 %v8551_v47, %v2896_v25  ;;  %v2953_v45 = vadd.f32 %v7335_v9, %v2932_v52 }
 0x20e   : > { %v3404_v1 = vsel %vm3386_vm0, %v8547_v57, %v8545_v7  ;;  %v3475_v49 = vmul.f32 %v6833_v56, %v3396_v0  ;;  %v3504_v36 = vmul.f32 %v7069_v12, %v3396_v0  ;;  %v3512_v26 = vmul.f32 %v7069_v12, %v3388_v32  ;;  %v8552_v7 = vld [vmem:[#allocation6_spill] sm:$0xff] }
 0x20f   : > { %v3412_v44 = vsel %vm3386_vm0, %v8550_v34, %v8548_v59  ;;  %v3438_v8 = vmul.f32 %v6425_v39, %v3404_v1  ;;  %v3467_v14 = vmul.f32 %v6833_v56, %v3404_v1  ;;  %v2954_v61 = vadd.f32 %v7335_v9, %v2933_v53  ;;  %v8554_v57 = vld [vmem:[#allocation34_spill] sm:$0xff]  ;;  %v8560_v53 = vld [vmem:[#allocation64_spill] sm:$0xff] }
 0x210   : > { %v3430_v10 = vmul.f32 %v6425_v39, %v3412_v44  ;;  %v3513_v39 = vmul.f32 %v7069_v12, %v7307_v50  ;;  %v2969_v43 = vmax.f32 %v2953_v45, 0.0  ;;  %v3581_v33 = vmul.f32 %v7347_v3, %v7131_v15  ;;  %v8556_v44 = vld [vmem:[#allocation77_spill] sm:$0xff] }
 0x211   : > { %v3454_v22 = vadd.f32 %v3438_v8, %v3336_v46  ;;  %v1743_v32 = vmul.f32 %v7161_v51, %v8521_v29  ;;  %v2970_v13 = vmax.f32 %v2954_v61, 0.0  ;;  %v1780_v25 = vmul.f32 %v6851_v62, %v8423_v60 }
 0x212   : > { %v3446_v24 = vadd.f32 %v3430_v10, %v3328_v41  ;;  %v1742_v41 = vmul.f32 %v7161_v51, %v8520_v48  ;;  %v3529_v40 = vadd.f32 %v3513_v39, %v3492_v28  ;;  %v1781_v52 = vmul.f32 %v6851_v62, %v8416_v20  ;;  %v8558_v10 = vld [vmem:[#allocation94_spill] sm:$0xff]  ;;  %v8563_v39 = vld [vmem:[#allocation144_spill] sm:$0xff] }
 0x213   : > { %v3491_v46 = vadd.f32 %v3475_v49, %v3454_v22  ;;  %v8553_v4 = vrot.slane %v8552_v7, 6  ;;  %v8555_v1 = vrot.slane %v8554_v57, 6  ;;  %v8559_v60 = vrot.slane %v8558_v10, 6  ;;  %v8562_v22 = vld [vmem:[#allocation107_spill] sm:$0xff] }
 0x214   : > { %v3483_v0 = vadd.f32 %v3467_v14, %v3446_v24  ;;  %v7368_v28 = vadd.f32 %v8556_v44, %v3529_v40  ;;  %v2980_v8 = vpack.c.bf16 %v2970_v13, %v2969_v43  ;;  %v1796_v14 = vadd.f32 %v1780_v25, %v1742_v41  ;;  %v8565_v43 = vld [vmem:[#allocation132_spill] sm:$0xff]  ;;  %v8566_v13 = vld [vmem:[#allocation127_spill] sm:$0xff]  ;;  %v8567_v25 = vld [vmem:[#allocation145_spill] sm:$0xff] }
 0x215   : > { %v1875_v59 = vsel %vm1874_vm4, %v8555_v1, %v8553_v4  ;;  %v3528_v34 = vadd.f32 %v3512_v26, %v3491_v46  ;;  %v8557_v51 = vmov %v8555_v1  ;;  %v1797_v47 = vadd.f32 %v1781_v52, %v1743_v32  ;;  %v8568_v44 = vld [vmem:[#allocation101_spill] sm:$0xff] }
 0x216   : > { %v7365_v63 = vadd.f32 %v3504_v36, %v3483_v0  ;;  %v1876_v62 = vsel %vm1874_vm4, %v8559_v60, %v8557_v51  ;;  %v1918_v45 = vmul.f32 %v6476_v17, %v8560_v53  ;;  %v8561_v36 = vld [vmem:[#allocation84_spill] sm:$0xff]  ;;  %v1955_v26 = vmul.f32 %v6895_v30, %v8562_v22  ;;  %4553 = vmatmul.mubr.bf16.gmra.mxu1 %v2980_v8  ;;  %v8564_v0 = vld [vmem:[#allocation139_spill] sm:$0xff]  ;;  %v8576_v22 = vld [vmem:[#allocation130_spill] sm:$0xff] }
 0x217   : > { %v7378_v49 = vadd.f32 %v3581_v33, %v3528_v34  ;;  %v1919_v24 = vmul.f32 %v6476_v17, %v8561_v36  ;;  %v1956_v61 = vmul.f32 %v6895_v30, %v8563_v39  ;;  %v1834_v46 = vadd.f32 %v8564_v0, %v1796_v14  ;;  %v8577_v0 = vld [vmem:[#allocation73_spill] sm:$0xff] }
 0x218   : > { %v1835_v41 = vadd.f32 %v8565_v43, %v1797_v47  ;;  %v1992_v40 = vmul.f32 %v6905_v58, %v1876_v62  ;;  %v1993_v32 = vmul.f32 %v6905_v58, %v1875_v59  ;;  %v2043_v33 = vrot.slane %v8554_v57, 2  ;;  %v8578_v43 = vld [vmem:[#allocation118_spill] sm:$0xff] }
 0x219   : > { %v2090_v17 = vmul.f32 %v7210_v11, %v8566_v13  ;;  %v2127_v52 = vmul.f32 %v8447_v38, %v8567_v25  ;;  %v2478_v30 = vmul.f32 %v6743_v6, %v5607_v55  ;;  %v1934_v4 = vadd.f32 %v1918_v45, %v1834_v46  ;;  %v8570_v11 = vld [vmem:[#allocation93_spill] sm:$0xff]  ;;  %v8575_v45 = vld [vmem:[#allocation31_spill] sm:$0xff] }
 0x21a   : > { %v1935_v1 = vadd.f32 %v1919_v24, %v1835_v41  ;;  %v2479_v34 = vmul.f32 %v6743_v6, %v5557_v31  ;;  %v2516_v51 = vmul.f32 %v7229_v16, %v8568_v44  ;;  %v8569_v58 = vrot.slane %v8552_v7, 2  ;;  %v8579_v13 = vld [vmem:[#allocation29_spill] sm:$0xff] }
 0x21b   : > { %v2517_v60 = vmul.f32 %v7229_v16, %v8570_v11  ;;  %v8571_v38 = vrot.slane %v8552_v7, 5  ;;  %v8572_v55 = vrot.slane %v8554_v57, 5  ;;  %v8574_v8 = vrot.slane %v8558_v10, 5 }
 0x21c   : > { %v2048_v59 = vsel %vm2046_vm3, %v2043_v33, %v8569_v58  ;;  %v1971_v47 = vadd.f32 %v1955_v26, %v1934_v4  ;;  %v1972_v53 = vadd.f32 %v1956_v61, %v1935_v1  ;;  %v2532_v24 = vadd.f32 %v2516_v51, %v2478_v30  ;;  %v8580_v58 = vld [vmem:[#allocation110_spill] sm:$0xff]  ;;  %v8581_v61 = vld [vmem:[#allocation20_spill] sm:$0xff] }
 0x21d   : > { %v2619_v62 = vsel %vm2616_vm2, %v8572_v55, %v8571_v38  ;;  %v8573_v6 = vmov %v8572_v55  ;;  %v2164_v36 = vmul.f32 %v8575_v45, %v2048_v59  ;;  %v2533_v16 = vadd.f32 %v2517_v60, %v2479_v34  ;;  %v8583_v38 = vld [vmem:[#allocation19_spill] sm:$0xff] }
 0x21e   : > { %v2620_v14 = vsel %vm2616_vm2, %v8574_v8, %v8573_v6  ;;  %v2662_v39 = vmul.f32 %v6712_v54, %v8576_v22  ;;  %v2663_v46 = vmul.f32 %v6712_v54, %v8577_v0  ;;  %v2699_v41 = vmul.f32 %v7257_v2, %v8578_v43  ;;  %v8582_v54 = vld [vmem:[#allocation91_spill] sm:$0xff]  ;;  %v4789_v6 = vld [vmem:[%s7959_s3 + $0x12] ss:$0 sm:$0xff]  ;;  %v8590_v43 = vld [vmem:[#allocation78_spill] sm:$0xff] }
 0x21f   : > { %v2008_v33 = vadd.f32 %v1992_v40, %v1971_v47  ;;  %v2009_v10 = vadd.f32 %v1993_v32, %v1972_v53  ;;  %v2570_v25 = vadd.f32 %v8579_v13, %v2532_v24  ;;  %v2700_v26 = vmul.f32 %v7257_v2, %v8580_v58  ;;  %v8586_v8 = vld [vmem:[#allocation41_spill] sm:$0xff]  ;;  %v8587_v47 = vld [vmem:[#allocation56_spill] sm:$0xff] }
 0x220   : > { %v2571_v4 = vadd.f32 %v8581_v61, %v2533_v16  ;;  %v2736_v30 = vmul.f32 %v7267_v5, %v2620_v14  ;;  %v2737_v1 = vmul.f32 %v7267_v5, %v2619_v62  ;;  %v2792_v34 = vrot.slane %v8554_v57, 3  ;;  %v8585_v5 = vld [vmem:[#allocation11_spill] sm:$0xff]  ;;  %v8588_v22 = vld [vmem:[#allocation37_spill] sm:$0xff]  ;;  %v8591_v13 = vld [vmem:[#allocation76_spill] sm:$0xff] }
 0x221   : > { %v2106_v51 = vadd.f32 %v2090_v17, %v2008_v33  ;;  %v2107_v59 = vadd.f32 %v8582_v54, %v2009_v10  ;;  %v2678_v60 = vadd.f32 %v2662_v39, %v2570_v25  ;;  %v2844_v40 = vmul.f32 %v6603_v37, %v8583_v38  ;;  %v7447_v17 = vld [vmem:[%s7959_s3 + $0x1d] ss:$0 sm:$0xff]  ;;  %v8589_v0 = vld [vmem:[#allocation5_spill] sm:$0xff] }
 0x222   : > { %v2679_v32 = vadd.f32 %v2663_v46, %v2571_v4  ;;  %v8584_v55 = vrot.slane %v8552_v7, 3  ;;  %v2881_v62 = vmul.f32 %v4789_v6, %v8585_v5  ;;  %v3268_v37 = vmul.f32 %v7447_v17, %v8586_v8  ;;  %v8592_v61 = vld [vmem:[#allocation70_spill] sm:$0xff] }
 0x223   : > { %v2143_v14 = vadd.f32 %v2127_v52, %v2106_v51  ;;  %v2144_v53 = vadd.f32 %v8587_v47, %v2107_v59  ;;  %v2715_v45 = vadd.f32 %v2699_v41, %v2678_v60  ;;  %v3269_v39 = vmul.f32 %v7447_v17, %v8588_v22  ;;  %v8593_v41 = vld [vmem:[#allocation3_spill] sm:$0xff] }
 0x224   : > { %v2802_v2 = vsel %vm2798_vm1, %v2792_v34, %v8584_v55  ;;  %v2716_v16 = vadd.f32 %v2700_v26, %v2679_v32  ;;  %v3284_v46 = vadd.f32 %v3268_v37, %v8589_v0  ;;  %v3306_v33 = vmul.f32 %v7114_v35, %v8590_v43  ;;  %v8596_v55 = vld [vmem:[#allocation39_spill] sm:$0xff] }
 0x225   : > { %v2918_v24 = vmul.f32 %v6617_v42, %v2802_v2  ;;  %v2180_v10 = vadd.f32 %v2164_v36, %v2143_v14  ;;  %v2181_v25 = vadd.f32 %v8591_v13, %v2144_v53  ;;  %v2752_v58 = vadd.f32 %v2736_v30, %v2715_v45  ;;  %v8594_v36 = vld [vmem:[#allocation74_spill] sm:$0xff]  ;;  %v8599_v53 = vld [vmem:[#allocation105_spill] sm:$0xff] }
 0x226   : > { %v3307_v52 = vmul.f32 %v7114_v35, %v8592_v61  ;;  %v2753_v4 = vadd.f32 %v2737_v1, %v2716_v16  ;;  %v3285_v34 = vadd.f32 %v3269_v39, %v8593_v41  ;;  %v3322_v42 = vadd.f32 %v3306_v33, %v3284_v46  ;;  %v8600_v16 = vld [vmem:[#allocation71_spill] sm:$0xff] }
 0x227   : > { %v3351_v26 = vrot.slane %v8586_v8, 4  ;;  %v2201_v51 = vadd.f32 %v6981_v23, %v2180_v10  ;;  %v2202_v54 = vadd.f32 %v6981_v23, %v2181_v25  ;;  %v2860_v59 = vadd.f32 %v2844_v40, %v2752_v58  ;;  %v8602_v46 = vld [vmem:[#allocation7_spill] sm:$0xff]  ;;  %v8603_v10 = vld [vmem:[#allocation8_spill] sm:$0xff] }
 0x228   : > { %v3363_v60 = vrot.slane %v8590_v43, 4  ;;  %v2861_v38 = vadd.f32 %v8594_v36, %v2753_v4  ;;  %v3323_v32 = vadd.f32 %v3307_v52, %v3285_v34  ;;  %v8595_v30 = vrot.slane %v8588_v22, 4  ;;  %v8604_v4 = vld [vmem:[#allocation63_spill] sm:$0xff] }
 0x229   : > { %v8597_v2 = vrot.slane %v8596_v55, 4  ;;  %v2217_v37 = vmax.f32 %v2201_v51, 0.0  ;;  %v2218_v23 = vmax.f32 %v2202_v54, 0.0  ;;  %v2897_v40 = vadd.f32 %v2881_v62, %v2860_v59 }
 0x22a   : > { %v7471_v1 = vsel %vm3386_vm0, %v3351_v26, %v8595_v30  ;;  %v8598_v14 = vrot.slane %v8592_v61, 4  ;;  %v2898_v45 = vadd.f32 %v8599_v53, %v2861_v38  ;;  %v8601_v39 = vrot.slane %v8600_v16, 4  ;;  %v8607_v30 = vld [vmem:[#allocation55_spill] sm:$0xff] }
 0x22b   : > { %v7477_v5 = vsel %vm3386_vm0, %v8597_v2, %v3351_v26  ;;  %v3440_v33 = vadd.f32 %v8602_v46, %v3322_v42  ;;  %v3441_v13 = vadd.f32 %v8603_v10, %v3323_v32  ;;  %v2226_v25 = vpack.c.bf16 %v2218_v23, %v2217_v37  ;;  %v7506_v42 = vld [vmem:[%s7959_s3 + $0x1e] ss:$0 sm:$0xff]  ;;  %v8606_v32 = vld [vmem:[#allocation92_spill] sm:$0xff]  ;;  %v8609_v37 = vld [vmem:[#allocation97_spill] sm:$0xff] }
 0x22c   : > { %v7483_v47 = vsel %vm3386_vm0, %v3363_v60, %v8598_v14  ;;  %v7490_v0 = vsel %vm3386_vm0, %v8601_v39, %v3363_v60  ;;  %v2934_v62 = vadd.f32 %v2918_v24, %v2897_v40  ;;  %v3461_v58 = vmul.f32 %v6833_v56, %v7477_v5  ;;  %v8605_v60 = vld [vmem:[#allocation24_spill] sm:$0xff]  ;;  %v8608_v2 = vld [vmem:[#allocation42_spill] sm:$0xff]  ;;  %v8610_v40 = vld [vmem:[#allocation141_spill] sm:$0xff] }
 0x22d   : > { %v3462_v52 = vmul.f32 %v6833_v56, %v7471_v1  ;;  %v2935_v41 = vadd.f32 %v8604_v4, %v2898_v45  ;;  %v3498_v34 = vmul.f32 %v7069_v12, %v7490_v0  ;;  %v3499_v26 = vmul.f32 %v7069_v12, %v7483_v47  ;;  %4525 = vmatmul.mubr.bf16.gmra.mxu0 %v2226_v25  ;;  %v8612_v53 = vld [vmem:[#allocation135_spill] sm:$0xff]  ;;  %v4792_v10 = vld [vmem:[%s7959_s3 + $0xe] ss:$0 sm:$0xff]  ;;  %v8616_v4 = vld [vmem:[#allocation49_spill] sm:$0xff] }
 0x22e   : > { %v3604_v24 = vmul.f32 %v7506_v42, %v7471_v1  ;;  %v2955_v51 = vadd.f32 %v7335_v9, %v2934_v62  ;;  %v3477_v54 = vadd.f32 %v3461_v58, %v3440_v33  ;;  %v3641_v36 = vmul.f32 %v8605_v60, %v7483_v47  ;;  %v8615_v58 = vld [vmem:[#allocation85_spill] sm:$0xff] }
 0x22f   : > { %v3478_v59 = vadd.f32 %v3462_v52, %v3441_v13  ;;  %v2956_v38 = vadd.f32 %v7335_v9, %v2935_v41  ;;  %v2754_v55 = vadd.f32 %v8607_v30, %v8606_v32  ;;  %v2755_v23 = vadd.f32 %v8609_v37, %v8608_v2  ;;  %v8614_v13 = vld [vmem:[#allocation83_spill] sm:$0xff]  ;;  %v4793_v32 = vld [vmem:[%s7959_s3 + $0x16] ss:$0 sm:$0xff] }
 0x230   : > { %v8611_v14 = vrot.slane %v8610_v40, 3  ;;  %v8613_v45 = vrot.slane %v8612_v53, 3  ;;  %v2971_v39 = vmax.f32 %v2955_v51, 0.0  ;;  %v3514_v46 = vadd.f32 %v3498_v34, %v3477_v54  ;;  %v8617_v2 = vld [vmem:[#allocation9_spill] sm:$0xff]  ;;  %v8618_v34 = vld [vmem:[#allocation4_spill] sm:$0xff] }
 0x231   : > { %v3515_v33 = vadd.f32 %v3499_v26, %v3478_v59  ;;  %v2846_v25 = vmul.f32 %v4792_v10, %v8614_v13  ;;  %v2972_v62 = vmax.f32 %v2956_v38, 0.0  ;;  %v2863_v52 = vadd.f32 %v8615_v58, %v2755_v23  ;;  %v8619_v59 = vld [vmem:[#allocation47_spill] sm:$0xff]  ;;  %v8621_v10 = vld [vmem:[#allocation45_spill] sm:$0xff]  ;;  %v8622_v58 = vld [vmem:[#allocation52_spill] sm:$0xff] }
 0x232   : > { %v2800_v16 = vsel %vm2798_vm1, %v8613_v45, %v8611_v14  ;;  %v2883_v41 = vmul.f32 %v4789_v6, %v8616_v4  ;;  %v3583_v51 = vadd.f32 %v8617_v2, %v3514_v46  ;;  %v3270_v37 = vmul.f32 %v7447_v17, %v8619_v59  ;;  %v8620_v45 = vld [vmem:[#allocation111_spill] sm:$0xff] }
 0x233   : > { %v2920_v30 = vmul.f32 %v4793_v32, %v2800_v16  ;;  %v3584_v26 = vadd.f32 %v8618_v34, %v3515_v33  ;;  %v2862_v54 = vadd.f32 %v2846_v25, %v2754_v55  ;;  %v2981_v14 = vpack.c.bf16 %v2972_v62, %v2971_v39  ;;  %v8623_v46 = vld [vmem:[#allocation15_spill] sm:$0xff]  ;;  %v8624_v39 = vld [vmem:[#allocation96_spill] sm:$0xff]  ;;  %v8625_v25 = vld [vmem:[#allocation10_spill] sm:$0xff] }
 0x234   : > { %v2900_v38 = vadd.f32 %v8620_v45, %v2863_v52  ;;  %v3271_v23 = vmul.f32 %v7447_v17, %v8621_v10  ;;  %v3308_v6 = vmul.f32 %v7114_v35, %v8520_v48  ;;  %v3620_v13 = vadd.f32 %v3604_v24, %v3583_v51  ;;  %v7547_v55 = vld [vmem:[%s7960_s4 + $0x2] ss:$0 sm:$0xff]  ;;  %v8626_v51 = vld [vmem:[#allocation89_spill] sm:$0xff]  ;;  %v8628_v45 = vld [vmem:[#allocation82_spill] sm:$0xff] }
 0x235   : > { %v3621_v16 = vadd.f32 %v8622_v58, %v3584_v26  ;;  %v2899_v4 = vadd.f32 %v2883_v41, %v2862_v54  ;;  %v3286_v32 = vadd.f32 %v3270_v37, %v8623_v46  ;;  %4556 = vmatprep.mubr.bf16.mxu1 %v2981_v14  ;;  %v3309_v52 = vmul.f32 %v7114_v35, %v8521_v29  ;;  %v8633_v46 = vld [vmem:[#allocation13_spill] sm:$0xff] }
 0x236   : > { %v2937_v33 = vadd.f32 %v8624_v39, %v2900_v38  ;;  %v3287_v62 = vadd.f32 %v3271_v23, %v8625_v25  ;;  %v3366_v24 = vrot.slane %v8520_v48, 4  ;;  %v3657_v2 = vadd.f32 %v3641_v36, %v3620_v13  ;;  %v8630_v23 = vld [vmem:[#allocation21_spill] sm:$0xff] }
 0x237   : > { %v3658_v41 = vadd.f32 %v8626_v51, %v3621_v16  ;;  %v2936_v34 = vadd.f32 %v2920_v30, %v2899_v4  ;;  %v3324_v26 = vadd.f32 %v3308_v6, %v3286_v32  ;;  %v8627_v37 = vrot.slane %v8521_v29, 4  ;;  %v8631_v29 = vld [vmem:[#allocation22_spill] sm:$0xff]  ;;  %v8632_v16 = vld [vmem:[#allocation59_spill] sm:$0xff] }
 0x238   : > { %v2958_v54 = vadd.f32 %v7335_v9, %v2937_v33  ;;  %v3325_v59 = vadd.f32 %v3309_v52, %v3287_v62  ;;  %v8629_v38 = vrot.slane %v8628_v45, 4  ;;  %v3678_v48 = vadd.f32 %v7547_v55, %v3657_v2  ;;  %v8635_v45 = vld [vmem:[#allocation53_spill] sm:$0xff] }
 0x239   : > { %v7560_v14 = vsel %vm3386_vm0, %v3366_v24, %v8627_v37  ;;  %v3679_v36 = vadd.f32 %v7547_v55, %v3658_v41  ;;  %v2957_v30 = vadd.f32 %v7335_v9, %v2936_v34  ;;  %v3442_v6 = vadd.f32 %v8630_v23, %v3324_v26  ;;  %v8634_v26 = vld [vmem:[#allocation57_spill] sm:$0xff] }
 0x23a   : > { %v7566_v10 = vsel %vm3386_vm0, %v8629_v38, %v3366_v24  ;;  %v2974_v13 = vmax.f32 %v2958_v54, 0.0  ;;  %v3443_v58 = vadd.f32 %v8631_v29, %v3325_v59  ;;  %v3463_v4 = vmul.f32 %v6833_v56, %v8632_v16  ;;  %v8639_v29 = vld [vmem:[#allocation26_spill] sm:$0xff] }
 0x23b   : > { %v3464_v32 = vmul.f32 %v6833_v56, %v8633_v46  ;;  %v3694_v39 = vmax.f32 %v3678_v48, 0.0  ;;  %v3695_v33 = vmax.f32 %v3679_v36, 0.0  ;;  %v2973_v25 = vmax.f32 %v2957_v30, 0.0  ;;  %v8636_v36 = vld [vmem:[#allocation32_spill] sm:$0xff] }
 0x23c   : > { %v3500_v62 = vmul.f32 %v7069_v12, %v7566_v10  ;;  %v3479_v52 = vadd.f32 %v3463_v4, %v3442_v6  ;;  %v3501_v9 = vmul.f32 %v7069_v12, %v7560_v14  ;;  %v3606_v2 = vmul.f32 %v7506_v42, %v8633_v46  ;;  %v8637_v6 = vld [vmem:[#allocation12_spill] sm:$0xff] }
 0x23d   : > { %v3480_v24 = vadd.f32 %v3464_v32, %v3443_v58  ;;  %v3710_v51 = vpack.c.bf16 %v3695_v33, %v3694_v39  ;;  %v2982_v41 = vpack.c.bf16 %v2974_v13, %v2973_v25  ;;  %v3643_v34 = vmul.f32 %v8605_v60, %v7560_v14  ;;  %v8641_v32 = vld [vmem:[#allocation23_spill] sm:$0xff]  ;;  %v8642_v33 = vld [vmem:[#allocation14_spill] sm:$0xff]  ;;  %v8643_v25 = vld [vmem:[#allocation25_spill] sm:$0xff] }
 0x23e   : > { %v3272_v54 = vmul.f32 %v7447_v17, %v8634_v26  ;;  %v3516_v59 = vadd.f32 %v3500_v62, %v3479_v52  ;;  %v3273_v38 = vmul.f32 %v7447_v17, %v8635_v45  ;;  %v3310_v48 = vmul.f32 %v7114_v35, %v8568_v44  ;;  %v8648_v45 = vld [vmem:[#allocation61_spill] sm:$0xff] }
 0x23f   : > { %v3517_v37 = vadd.f32 %v3501_v9, %v3480_v24  ;;  %4576 = vmatprep.mubr.bf16.mxu0 %v3710_v51  ;;  %4557 = vmatmul.mubr.bf16.gmra.mxu1 %v2982_v41  ;;  %v3311_v23 = vmul.f32 %v7114_v35, %v8570_v11  ;;  %v8638_v13 = vrot.slane %v8637_v6, 4  ;;  %v8640_v58 = vrot.slane %v8639_v29, 4  ;;  %v8645_v24 = vld [vmem:[#allocation17_spill] sm:$0xff]  ;;  %v7613_v41 = vld [vmem:[%s7959_s3 + $0x18] ss:$0 sm:$0xff]  ;;  %v8649_v6 = vld [vmem:[#allocation72_spill] sm:$0xff] }
 0x240   : > { %v3288_v30 = vadd.f32 %v3272_v54, %v8636_v36  ;;  %v3375_v4 = vrot.slane %v8504_v18, 4  ;;  %v3585_v39 = vadd.f32 %v8641_v32, %v3516_v59  ;;  %v3289_v62 = vadd.f32 %v3273_v38, %v8643_v25  ;;  %v8647_v54 = vld [vmem:[#allocation40_spill] sm:$0xff] }
 0x241   : > { %v3413_v16 = vsel %vm3386_vm0, %v8640_v58, %v8638_v13  ;;  %v3586_v44 = vadd.f32 %v8642_v33, %v3517_v37  ;;  %v8644_v52 = vmov %v8640_v58  ;;  %v8646_v9 = vrot.slane %v8645_v24, 4  ;;  %v8651_v25 = vld [vmem:[#allocation100_spill] sm:$0xff] }
 0x242   : > { %v3326_v51 = vadd.f32 %v3310_v48, %v3288_v30  ;;  %v3429_v26 = vmul.f32 %v7613_v41, %v3413_v16  ;;  %v3466_v59 = vmul.f32 %v6833_v56, %v8647_v54  ;;  %v3622_v37 = vadd.f32 %v3606_v2, %v3585_v39  ;;  %v8650_v30 = vld [vmem:[#allocation117_spill] sm:$0xff] }
 0x243   : > { %v3414_v11 = vsel %vm3386_vm0, %v8646_v9, %v8644_v52  ;;  %v3623_v38 = vadd.f32 %v8648_v45, %v3586_v44  ;;  %v3327_v36 = vadd.f32 %v3311_v23, %v3289_v62  ;;  %v3502_v13 = vmul.f32 %v7069_v12, %v8649_v6  ;;  %v8652_v23 = vld [vmem:[#allocation131_spill] sm:$0xff]  ;;  %v4795_v44 = vld [vmem:[%s7959_s3 + $0x19] ss:$0 sm:$0xff] }
 0x244   : > { %v3428_v18 = vmul.f32 %v7613_v41, %v3414_v11  ;;  %v3503_v29 = vmul.f32 %v7069_v12, %v8650_v30  ;;  %v3571_v58 = vmul.f32 %v7347_v3, %v3413_v16  ;;  %v3608_v32 = vmul.f32 %v7506_v42, %v8647_v54  ;;  %v8654_v45 = vld [vmem:[#allocation99_spill] sm:$0xff] }
 0x245   : > { %v3659_v33 = vadd.f32 %v3643_v34, %v3622_v37  ;;  %v3660_v52 = vadd.f32 %v8651_v25, %v3623_v38  ;;  %v3445_v56 = vadd.f32 %v3429_v26, %v3327_v36  ;;  %v3645_v2 = vmul.f32 %v8605_v60, %v8650_v30 }
 0x246   : > { %v3444_v48 = vadd.f32 %v3428_v18, %v3326_v51  ;;  %v3238_v62 = vmul.f32 %v4795_v44, %v8586_v8  ;;  %v3239_v16 = vmul.f32 %v4795_v44, %v8588_v22  ;;  %v3276_v24 = vmul.f32 %v7447_v17, %v8590_v43 }
 0x247   : > { %v3680_v34 = vadd.f32 %v7547_v55, %v3659_v33  ;;  %v3681_v9 = vadd.f32 %v7547_v55, %v3660_v52  ;;  %v3482_v11 = vadd.f32 %v3466_v59, %v3445_v56  ;;  %v3277_v51 = vmul.f32 %v7447_v17, %v8592_v61  ;;  %v8656_v33 = vld [vmem:[#allocation18_spill] sm:$0xff] }
 0x248   : > { %v3481_v39 = vadd.f32 %v8652_v23, %v3444_v48  ;;  %v3292_v26 = vadd.f32 %v3276_v24, %v3238_v62  ;;  %v8653_v37 = vrot.slane %v8502_v21, 4  ;;  %v8655_v22 = vrot.slane %v8654_v45, 4  ;;  %v8657_v52 = vld [vmem:[#allocation30_spill] sm:$0xff]  ;;  %v8658_v23 = vld [vmem:[#allocation123_spill] sm:$0xff] }
 0x249   : > { %v3696_v38 = vmax.f32 %v3680_v34, 0.0  ;;  %v3697_v36 = vmax.f32 %v3681_v9, 0.0  ;;  %v3519_v6 = vadd.f32 %v3503_v29, %v3482_v11  ;;  %v3293_v48 = vadd.f32 %v3277_v51, %v3239_v16  ;;  %v8659_v16 = vld [vmem:[#allocation69_spill] sm:$0xff] }
 0x24a   : > { %v3518_v18 = vadd.f32 %v3502_v13, %v3481_v39  ;;  %v3393_v8 = vsel %vm3386_vm0, %v3375_v4, %v8653_v37  ;;  %v3394_v43 = vsel %vm3386_vm0, %v8655_v22, %v3375_v4  ;;  %v3330_v25 = vadd.f32 %v8656_v33, %v3292_v26  ;;  %v4796_v4 = vld [vmem:[%s7959_s3 + $0x1c] ss:$0 sm:$0xff]  ;;  %v8660_v26 = vld [vmem:[#allocation109_spill] sm:$0xff] }
 0x24b   : > { %v3432_v61 = vmul.f32 %v7613_v41, %v7477_v5  ;;  %v3433_v21 = vmul.f32 %v7613_v41, %v7471_v1  ;;  %v3711_v13 = vpack.c.bf16 %v3697_v36, %v3696_v38  ;;  %v3588_v56 = vadd.f32 %v8657_v52, %v3519_v6 }
 0x24c   : > { %v3587_v59 = vadd.f32 %v3571_v58, %v3518_v18  ;;  %v3331_v39 = vadd.f32 %v8658_v23, %v3293_v48  ;;  %v3469_v29 = vmul.f32 %v4796_v4, %v7490_v0  ;;  %v3470_v62 = vmul.f32 %v4796_v4, %v7483_v47 }
 0x24d   : > { %v3448_v44 = vadd.f32 %v3432_v61, %v3330_v25  ;;  %v3506_v5 = vmul.f32 %v7069_v12, %v3394_v43  ;;  %4577 = vmatmul.mubr.bf16.vlgmr.msra.gmra.mxu0 %v3711_v13  ;;  %v3625_v24 = vadd.f32 %v8659_v16, %v3588_v56  ;;  %v3507_v9 = vmul.f32 %v7069_v12, %v3393_v8  ;;  %v8666_v13 = vld [vmem:[#allocation51_spill] sm:$0xff] }
 0x24e   : > { %v3624_v58 = vadd.f32 %v3608_v32, %v3587_v59  ;;  %v3449_v34 = vadd.f32 %v3433_v21, %v3331_v39  ;;  %v3575_v11 = vmul.f32 %v7347_v3, %v7471_v1  ;;  %v3612_v0 = vmul.f32 %v7506_v42, %v7483_v47  ;;  %v8661_v1 = vld [vmem:[#allocation27_spill] sm:$0xff] }
 0x24f   : > { %v3485_v18 = vadd.f32 %v3469_v29, %v3448_v44  ;;  %v3649_v32 = vmul.f32 %v8605_v60, %v3393_v8  ;;  %v3662_v37 = vadd.f32 %v8660_v26, %v3625_v24  ;;  %v3275_v22 = vmul.f32 %v7447_v17, %v5557_v31  ;;  %v8664_v8 = vld [vmem:[#allocation75_spill] sm:$0xff]  ;;  %v8665_v31 = vld [vmem:[#allocation38_spill] sm:$0xff] }
 0x250   : > { %v3661_v51 = vadd.f32 %v3645_v2, %v3624_v58  ;;  %v3486_v45 = vadd.f32 %v3470_v62, %v3449_v34  ;;  %v3313_v43 = vmul.f32 %v7114_v35, %v8416_v20  ;;  %v8662_v2 = vrot.slane %v8661_v1, 4  ;;  %v8673_v26 = vld [vmem:[#allocation106_spill] sm:$0xff] }
 0x251   : > { %v3522_v36 = vadd.f32 %v3506_v5, %v3485_v18  ;;  %v8663_v6 = vrot.slane %v8536_v27, 4  ;;  %v3505_v48 = vmul.f32 %v7069_v12, %v8664_v8  ;;  %v3683_v59 = vadd.f32 %v7547_v55, %v3662_v37  ;;  %v8669_v5 = vld [vmem:[#allocation88_spill] sm:$0xff] }
 0x252   : > { %v3682_v38 = vadd.f32 %v7547_v55, %v3661_v51  ;;  %v3523_v33 = vadd.f32 %v3507_v9, %v3486_v45  ;;  %v3291_v17 = vadd.f32 %v3275_v22, %v8665_v31  ;;  %v3610_v27 = vmul.f32 %v7506_v42, %v7131_v15  ;;  %v8670_v51 = vld [vmem:[#allocation104_spill] sm:$0xff]  ;;  %v8674_v45 = vld [vmem:[#allocation50_spill] sm:$0xff] }
 0x253   : > { %v3411_v47 = vsel %vm3386_vm0, %v8663_v6, %v8662_v2  ;;  %v3591_v25 = vadd.f32 %v3575_v11, %v3522_v36  ;;  %v3699_v21 = vmax.f32 %v3683_v59, 0.0  ;;  %v3647_v23 = vmul.f32 %v8605_v60, %v8664_v8 }
 0x254   : > { %v3431_v20 = vmul.f32 %v7613_v41, %v3411_v47  ;;  %v3698_v35 = vmax.f32 %v3682_v38, 0.0  ;;  %v3573_v61 = vmul.f32 %v7347_v3, %v3411_v47  ;;  %v3592_v52 = vadd.f32 %v8666_v13, %v3523_v33 }
 0x255   : > { %v3329_v56 = vadd.f32 %v3313_v43, %v3291_v17  ;;  %v3628_v39 = vadd.f32 %v3612_v0, %v3591_v25  ;;  %v8667_v58 = vrot.slane %v8552_v7, 4  ;;  %v8668_v41 = vrot.slane %v8554_v57, 4  ;;  %v8672_v57 = vld [vmem:[#allocation126_spill] sm:$0xff]  ;;  %v8676_v25 = vld [vmem:[#allocation60_spill] sm:$0xff] }
 0x256   : > { %v3589_v29 = vadd.f32 %v3573_v61, %v7365_v63  ;;  %v3471_v62 = vmul.f32 %v4796_v4, %v7566_v10  ;;  %v3712_v15 = vpack.c.bf16 %v3699_v21, %v3698_v35  ;;  %v3629_v16 = vadd.f32 %v8669_v5, %v3592_v52  ;;  %v8671_v63 = vld [vmem:[#allocation87_spill] sm:$0xff]  ;;  %v8679_v52 = vld [vmem:[#allocation137_spill] sm:$0xff] }
 0x257   : > { %v3391_v44 = vsel %vm3386_vm0, %v8668_v41, %v8667_v58  ;;  %v3447_v24 = vadd.f32 %v3431_v20, %v3329_v56  ;;  %v3472_v34 = vmul.f32 %v4796_v4, %v7560_v14  ;;  %v3665_v9 = vadd.f32 %v3649_v32, %v3628_v39  ;;  %v8675_v20 = vld [vmem:[#allocation44_spill] sm:$0xff]  ;;  %v8681_v39 = vld [vmem:[#allocation79_spill] sm:$0xff]  ;;  %v8682_v58 = vld [vmem:[#allocation98_spill] sm:$0xff] }
 0x258   : > { %v3626_v11 = vadd.f32 %v3610_v27, %v3589_v29  ;;  %v3487_v18 = vadd.f32 %v3471_v62, %v8670_v51  ;;  %v3508_v7 = vmul.f32 %v7069_v12, %v8671_v63  ;;  %4580 = vmatprep.mubr.bf16.mxu0 %v3712_v15  ;;  %v3666_v0 = vadd.f32 %v8672_v57, %v3629_v16  ;;  %v8680_v56 = vld [vmem:[#allocation16_spill] sm:$0xff]  ;;  %v8685_v16 = vld [vmem:[#allocation103_spill] sm:$0xff] }
 0x259   : > { %v3484_v37 = vadd.f32 %v8673_v26, %v3447_v24  ;;  %v3488_v10 = vadd.f32 %v3472_v34, %v8674_v45  ;;  %v3509_v22 = vmul.f32 %v7069_v12, %v3391_v44  ;;  %v3686_v43 = vadd.f32 %v7547_v55, %v3665_v9  ;;  %v8686_v51 = vld [vmem:[#allocation68_spill] sm:$0xff]  ;;  %v8688_v26 = vld [vmem:[#allocation67_spill] sm:$0xff] }
 0x25a   : > { %v3663_v38 = vadd.f32 %v3647_v23, %v3626_v11  ;;  %v3524_v4 = vadd.f32 %v3508_v7, %v3487_v18  ;;  %v3577_v32 = vmul.f32 %v7347_v3, %v8633_v46  ;;  %v3655_v36 = vmul.f32 %v8605_v60, %v7307_v50  ;;  %v8687_v18 = vld [vmem:[#allocation65_spill] sm:$0xff] }
 0x25b   : > { %v3687_v1 = vadd.f32 %v7547_v55, %v3666_v0  ;;  %v3521_v2 = vadd.f32 %v3505_v48, %v3484_v37  ;;  %v3525_v6 = vadd.f32 %v3509_v22, %v3488_v10  ;;  %v3702_v47 = vmax.f32 %v3686_v43, 0.0  ;;  %v8690_v10 = vld [vmem:[#allocation138_spill] sm:$0xff] }
 0x25c   : > { %v3684_v59 = vadd.f32 %v7547_v55, %v3663_v38  ;;  %v3593_v33 = vadd.f32 %v3577_v32, %v3524_v4  ;;  %v3614_v31 = vmul.f32 %v7506_v42, %v7560_v14  ;;  %v8677_v46 = vrot.slane %v8610_v40, 4 }
 0x25d   : > { %v3703_v17 = vmax.f32 %v3687_v1, 0.0  ;;  %v3590_v35 = vadd.f32 %v8675_v20, %v3521_v2  ;;  %v3594_v61 = vadd.f32 %v8676_v25, %v3525_v6  ;;  %v8678_v50 = vrot.slane %v8612_v53, 4 }
 0x25e   : > { %v3630_v27 = vadd.f32 %v3614_v31, %v3593_v33  ;;  %v3651_v21 = vmul.f32 %v8605_v60, %v3391_v44  ;;  %v3526_v14 = vadd.f32 %v8680_v56, %v8679_v52  ;;  %v3579_v40 = vmul.f32 %v7347_v3, %v8647_v54 }
 0x25f   : > { %v3389_v48 = vsel %vm3386_vm0, %v8678_v50, %v8677_v46  ;;  %v3714_v23 = vpack.c.bf16 %v3703_v17, %v3702_v47  ;;  %v3627_v29 = vadd.f32 %v8681_v39, %v3590_v35  ;;  %v3631_v41 = vadd.f32 %v8682_v58, %v3594_v61 }
 0x260   : > { %v3511_v13 = vmul.f32 %v7069_v12, %v3389_v48  ;;  %v3700_v53 = vmax.f32 %v3684_v59, 0.0  ;;  %v3667_v62 = vadd.f32 %v3651_v21, %v3630_v27  ;;  %v3616_v44 = vmul.f32 %v7506_v42, %v8650_v30  ;;  %v8684_v12 = vld [vmem:[#allocation116_spill] sm:$0xff] }
 0x261   : > { %4584 = vmatprep.mubr.bf16.mxu1 %v3714_v23  ;;  %v3664_v5 = vadd.f32 %v8684_v12, %v3627_v29  ;;  %v3668_v24 = vadd.f32 %v8685_v16, %v3631_v41  ;;  %v3595_v34 = vadd.f32 %v3579_v40, %v3526_v14  ;;  %v3618_v9 = vmul.f32 %v7506_v42, %v8664_v8  ;;  %v8689_v8 = vld [vmem:[#allocation108_spill] sm:$0xff] }
 0x262   : > { %v3527_v15 = vadd.f32 %v3511_v13, %v8683_v19  ;;  %v3688_v11 = vadd.f32 %v7547_v55, %v3667_v62  ;;  %v3653_v54 = vmul.f32 %v8605_v60, %v3389_v48  ;;  %v3635_v63 = vadd.f32 %v8687_v18, %v7368_v28 }
 0x263   : > { %v3685_v30 = vadd.f32 %v7547_v55, %v3664_v5  ;;  %v3689_v7 = vadd.f32 %v7547_v55, %v3668_v24  ;;  %v3632_v57 = vadd.f32 %v3616_v44, %v3595_v34  ;;  %v3634_v0 = vadd.f32 %v3618_v9, %v7378_v49  ;;  %v4514_v24 = vpop.f32.mrf.mxu0 }
 0x264   : > { %v3596_v3 = vadd.f32 %v8686_v51, %v3527_v15  ;;  %v3654_v37 = vmul.f32 %v8605_v60, %v8688_v26  ;;  %v3704_v42 = vmax.f32 %v3688_v11, 0.0  ;;  %v3672_v22 = vadd.f32 %v8690_v10, %v3635_v63 }
 0x265   : > { %v3701_v43 = vmax.f32 %v3685_v30, 0.0  ;;  %v3705_v38 = vmax.f32 %v3689_v7, 0.0  ;;  %v3669_v4 = vadd.f32 %v3653_v54, %v3632_v57  ;;  %v3671_v32 = vadd.f32 %v3655_v36, %v3634_v0  ;;  %v4450_v36 = vpop.f32.mrf.mxu1  ;;  %v2325_v9 = vpop.f32.mrf.mxu0 }
 0x266   : > { %v3633_v45 = vadd.f32 %v8689_v8, %v3596_v3  ;;  %v3693_v1 = vadd.f32 %v7547_v55, %v3672_v22 }
 0x267   : > { %v3713_v2 = vpack.c.bf16 %v3701_v43, %v3700_v53  ;;  %v3715_v6 = vpack.c.bf16 %v3705_v38, %v3704_v42  ;;  %v3690_v47 = vadd.f32 %v7547_v55, %v3669_v4  ;;  %v3692_v49 = vadd.f32 %v7547_v55, %v3671_v32  ;;  %v7758_v25 = vpop.f32.mrf.mxu1  ;;  %v4515_v51 = vpop.f32.mrf.mxu0 }
 0x268   : > { %v3670_v28 = vadd.f32 %v3654_v37, %v3633_v45  ;;  %v3709_v31 = vmax.f32 %v3693_v1, 0.0 }
 0x269   : > { %4581 = vmatmul.mubr.bf16.gmra.mxu0 %v3713_v2  ;;  %4585 = vmatmul.mubr.bf16.vlgmr.msra.gmra.mxu1 %v3715_v6  ;;  %v3706_v59 = vmax.f32 %v3690_v47, 0.0  ;;  %v3708_v33 = vmax.f32 %v3692_v49, 0.0  ;;  %v7760_v61 = vpop.f32.mrf.mxu1  ;;  %v2328_v54 = vpop.f32.mrf.mxu0 }
 0x26a   : > { %v3691_v60 = vadd.f32 %v7547_v55, %v3670_v28 }
 0x26b   : > { %v3717_v20 = vpack.c.bf16 %v3709_v31, %v3708_v33  ;;  %v7762_v46 = vpop.f32.mrf.mxu1  ;;  %v7808_v18 = vpop.f32.mrf.mxu0 }
 0x26c   : > { %v3707_v17 = vmax.f32 %v3691_v60, 0.0 }
 0x26d   : > { %v7764_v50 = vpop.f32.mrf.mxu1  ;;  %v7812_v30 = vpop.f32.mrf.mxu0 }
 0x26e   : > { %v3716_v35 = vpack.c.bf16 %v3707_v17, %v3706_v59 }
 0x26f   : > { %v7766_v55 = vpop.f32.mrf.mxu1  ;;  %v7816_v57 = vpop.f32.mrf.mxu0 }
 0x270   : > { %4588 = vmatprep.mubr.bf16.mxu1 %v3716_v35 }
 0x271   : > { %4589 = vmatmul.mubr.bf16.gmra.mxu1 %v3717_v20  ;;  %v7768_v48 = vpop.f32.mrf.mxu1  ;;  %v7818_v26 = vpop.f32.mrf.mxu0 }
 0x273   : > { %v7770_v27 = vpop.f32.mrf.mxu1 }
 0x275   : > { %v7772_v21 = vpop.f32.mrf.mxu1 }
 0x277   : > { %v7774_v13 = vpop.f32.mrf.mxu1 }
 0x279   : > { %v7776_v52 = vpop.f32.mrf.mxu1 }
 0x27b   : > { %v7778_v56 = vpop.f32.mrf.mxu1 }
 0x27d   : > { %v7780_v14 = vpop.f32.mrf.mxu1 }
 0x27f   : > { %v7782_v23 = vpop.f32.mrf.mxu1 }
 0x281   : > { %v7784_v39 = vpop.f32.mrf.mxu1 }
 0x283   : > { %v7786_v29 = vpop.f32.mrf.mxu1 }
 0x284   : > { %8691 = vst [vmem:[#allocation46_spill] sm:$0xff] %v7786_v29 }
 0x285   : > { %v4482_v58 = vpop.f32.mrf.mxu1 }
 0x286   : > { %v1621_v47 = vadd.f32 %v4482_v58, %v4450_v36 }
 0x287   : > { %v1612_v41 = vpop.f32.mrf.mxu1 }
 0x288   : > { %v1613_v59 = vadd.f32 %v1612_v41, %v7758_v25  ;;  %v2390_v33 = vadd.f32 %v4514_v24, %v1621_v47 }
 0x289   : > { %v4483_v40 = vpop.f32.mrf.mxu1 }
 0x28a   : > { %v1624_v31 = vadd.f32 %v4483_v40, %v7760_v61  ;;  %v2388_v17 = vadd.f32 %v2325_v9, %v1613_v59 }
 0x28b   : > { %v1615_v53 = vpop.f32.mrf.mxu1 }
 0x28c   : > { %v1616_v36 = vadd.f32 %v1615_v53, %v7762_v46  ;;  %v2391_v58 = vadd.f32 %v4515_v51, %v1624_v31 }
 0x28d   : > { %v7788_v62 = vpop.f32.mrf.mxu1 }
 0x28e   : > { %v2389_v41 = vadd.f32 %v2328_v54, %v1616_v36 }
 0x28f   : > { %v7790_v19 = vpop.f32.mrf.mxu1 }
 0x291   : > { %v7792_v15 = vpop.f32.mrf.mxu1 }
 0x293   : > { %v7794_v44 = vpop.f32.mrf.mxu1 }
 0x295   : > { %v7796_v12 = vpop.f32.mrf.mxu1 }
 0x296   : > { %v1653_v36 = vadd.f32 %v7796_v12, %v7772_v21 }
 0x297   : > { %v7798_v5 = vpop.f32.mrf.mxu1 }
 0x299   : > { %v7800_v16 = vpop.f32.mrf.mxu1 }
 0x29a   : > { %v1656_v21 = vadd.f32 %v7800_v16, %v7776_v52 }
 0x29b   : > { %v7802_v34 = vpop.f32.mrf.mxu1 }
 0x29d   : > { %v7804_v11 = vpop.f32.mrf.mxu1 }
 0x29f   : > { %v7806_v3 = vpop.f32.mrf.mxu1  ;;  %v7820_v42 = vpop.f32.mrf.mxu0 }
 0x2a1   : > { %v7810_v63 = vpop.f32.mrf.mxu1  ;;  %v7822_v45 = vpop.f32.mrf.mxu0 }
 0x2a3   : > { %v7814_v7 = vpop.f32.mrf.mxu1  ;;  %v7824_v22 = vpop.f32.mrf.mxu0 }
 0x2a4   : > { %8692 = vst [vmem:[#allocation35_spill] sm:$0xff] %v7814_v7 }
 0x2a5   : > { %v4546_v0 = vpop.f32.mrf.mxu1  ;;  %v7828_v38 = vpop.f32.mrf.mxu0 }
 0x2a6   : > { %v3146_v20 = vadd.f32 %v4546_v0, %v2390_v33 }
 0x2a7   : > { %v3081_v37 = vpop.f32.mrf.mxu1 }
 0x2a8   : > { %v3144_v29 = vadd.f32 %v3081_v37, %v2388_v17 }
 0x2a9   : > { %v4547_v8 = vpop.f32.mrf.mxu1 }
 0x2aa   : > { %v3147_v24 = vadd.f32 %v4547_v8, %v2391_v58 }
 0x2ab   : > { %v3084_v10 = vpop.f32.mrf.mxu1 }
 0x2ac   : > { %v3145_v53 = vadd.f32 %v3084_v10, %v2389_v41  ;;  %v1645_v41 = vadd.f32 %v7798_v5, %v7774_v13  ;;  %v1669_v5 = vadd.f32 %v7804_v11, %v7780_v14 }
 0x2ad   : > { %v7826_v43 = vpop.f32.mrf.mxu1 }
 0x2af   : > { %v7830_v4 = vpop.f32.mrf.mxu1 }
 0x2b1   : > { %v7836_v28 = vpop.f32.mrf.mxu1 }
 0x2b3   : > { %v7841_v2 = vpop.f32.mrf.mxu1 }
 0x2d6   : > { %v4554_v49 = vpop.f32.mrf.mxu1 }
 0x2d8   : > { %v3113_v35 = vpop.f32.mrf.mxu1 }
 0x2da   : > { %v4555_v9 = vpop.f32.mrf.mxu1 }
 0x2dc   : > { %v3116_v47 = vpop.f32.mrf.mxu1 }
 0x2ed   : > { %v7832_v32 = vpop.f32.mrf.mxu0 }
 0x2ef   : > { %v7838_v1 = vpop.f32.mrf.mxu0 }
 0x2f1   : > { %v7843_v6 = vpop.f32.mrf.mxu0 }
 0x2f2   : > { %8693 = vst [vmem:[#allocation58_spill] sm:$0xff] %v7843_v6  ;;  %v7852_v6 = vld [vmem:[%s7963_s7] ss:$0 sm:$0xff] }
 0x2f3   : > { %v7845_v60 = vpop.f32.mrf.mxu0 }
 0x2f4   : > { %8694 = vst [vmem:[#allocation113_spill] sm:$0xff] %v7845_v60 }
 0x2ff   : > { %v4558_v33 = vpop.f32.mrf.mxu1 }
 0x301   : > { %v7868_v10 = vpop.f32.mrf.mxu1 }
 0x303   : > { %v7870_v17 = vpop.f32.mrf.mxu1 }
 0x305   : > { %v7876_v58 = vpop.f32.mrf.mxu1 }
 0x30d   : > { %v4578_v7 = vpop.f32.mrf.mxu0 }
 0x30e   : > { %v3881_v60 = vadd.f32 %v4578_v7, %v3146_v20  ;;  %v1637_v20 = vadd.f32 %v7788_v62, %v7764_v50  ;;  %v1632_v50 = vadd.f32 %v7794_v44, %v7770_v27  ;;  %v1648_v62 = vadd.f32 %v7802_v34, %v7778_v56 }
 0x30f   : > { %v3816_v25 = vpop.f32.mrf.mxu0  ;;  %v1672_v27 = vadd.f32 %v7810_v63, %v7784_v39 }
 0x310   : > { %v3904_v61 = vadd.f32 %v7852_v6, %v3881_v60  ;;  %v3879_v40 = vadd.f32 %v3816_v25, %v3144_v29  ;;  %v1629_v25 = vadd.f32 %v7790_v19, %v7766_v55  ;;  %v2396_v19 = vadd.f32 %v7822_v45, %v1645_v41 }
 0x311   : > { %v4579_v46 = vpop.f32.mrf.mxu0 }
 0x312   : > { %v3920_v51 = vmax.f32 %v3904_v61, 0.0  ;;  %v3902_v7 = vadd.f32 %v7852_v6, %v3879_v40  ;;  %v3882_v54 = vadd.f32 %v4579_v46, %v3147_v24  ;;  %v2394_v24 = vadd.f32 %v7808_v18, %v1637_v20 }
 0x313   : > { %v3819_v0 = vpop.f32.mrf.mxu0  ;;  %v2398_v61 = vadd.f32 %v7820_v42, %v1653_v36  ;;  %v1640_v40 = vadd.f32 %v7792_v15, %v7768_v48  ;;  %v2392_v55 = vadd.f32 %v7812_v30, %v1629_v25  ;;  %v1661_v48 = vadd.f32 %v7806_v3, %v7782_v23 }
 0x314   : > { %3936 = vst [vmem:[%s7859_s22 + $0x10] sm:$0xff] %v3920_v51  ;;  %v3918_v37 = vmax.f32 %v3902_v7, 0.0  ;;  %v3905_v29 = vadd.f32 %v7852_v6, %v3882_v54  ;;  %v3880_v8 = vadd.f32 %v3819_v0, %v3145_v53  ;;  %v3150_v13 = vadd.f32 %v7826_v43, %v2394_v24 }
 0x315   : > { %v3154_v12 = vadd.f32 %v4554_v49, %v2398_v61  ;;  %v2395_v52 = vadd.f32 %v7816_v57, %v1640_v40  ;;  %v3148_v44 = vadd.f32 %v7830_v4, %v2392_v55  ;;  %v3152_v16 = vadd.f32 %v3113_v35, %v2396_v19  ;;  %v8698_v40 = vld [vmem:[#allocation113_spill] sm:$0xff] }
 0x316   : > { %3934 = vst [vmem:[%s7859_s22] sm:$0xff] %v3918_v37  ;;  %v3921_v60 = vmax.f32 %v3905_v29, 0.0  ;;  %v3903_v59 = vadd.f32 %v7852_v6, %v3880_v8  ;;  %v2393_v30 = vadd.f32 %v7818_v26, %v1632_v50  ;;  %v2399_v42 = vadd.f32 %v7824_v22, %v1656_v21 }
 0x317   : > { %v3151_v14 = vadd.f32 %v7836_v28, %v2395_v52  ;;  %v2397_v23 = vadd.f32 %v7828_v38, %v1648_v62  ;;  %v2402_v22 = vadd.f32 %v7832_v32, %v1669_v5  ;;  %v2400_v51 = vadd.f32 %v7838_v1, %v1661_v48 }
 0x318   : > { %3937 = vst [vmem:[%s7859_s22 + $0x18] sm:$0xff] %v3921_v60  ;;  %v3919_v31 = vmax.f32 %v3903_v59, 0.0  ;;  %v3149_v43 = vadd.f32 %v7841_v2, %v2393_v30  ;;  %v3155_v4 = vadd.f32 %v4555_v9, %v2399_v42  ;;  %v8696_v60 = vld [vmem:[#allocation35_spill] sm:$0xff] }
 0x319   : > { %v3153_v26 = vadd.f32 %v3116_v47, %v2397_v23  ;;  %v3158_v7 = vadd.f32 %v4558_v33, %v2402_v22  ;;  %v8695_v47 = vld [vmem:[#allocation46_spill] sm:$0xff]  ;;  %v3156_v25 = vadd.f32 %v7868_v10, %v2400_v51 }
 0x31a   : > { %3935 = vst [vmem:[%s7859_s22 + $0x8] sm:$0xff] %v3919_v31  ;;  %v1664_v59 = vadd.f32 %v8696_v60, %v8695_v47  ;;  %v8697_v31 = vld [vmem:[#allocation58_spill] sm:$0xff] }
 0x31b   : > { %v2403_v20 = vadd.f32 %v8697_v31, %v1672_v27 }
 0x31c   : > { %v2401_v50 = vadd.f32 %v8698_v40, %v1664_v59 }
 0x31d   : > { %v3159_v21 = vadd.f32 %v7870_v17, %v2403_v20 }
 0x31e   : > { %v3157_v27 = vadd.f32 %v7876_v58, %v2401_v50 }
 0x329   : > { %v4582_v15 = vpop.f32.mrf.mxu0  ;;  %v4586_v56 = vpop.f32.mrf.mxu1 }
 0x32a   : > { %v3885_v34 = vadd.f32 %v4582_v15, %v3150_v13  ;;  %v3889_v18 = vadd.f32 %v4586_v56, %v3154_v12 }
 0x32b   : > { %v3832_v11 = vpop.f32.mrf.mxu0  ;;  %v3848_v3 = vpop.f32.mrf.mxu1 }
 0x32c   : > { %v3908_v39 = vadd.f32 %v7852_v6, %v3885_v34  ;;  %v3912_v63 = vadd.f32 %v7852_v6, %v3889_v18  ;;  %v3883_v57 = vadd.f32 %v3832_v11, %v3148_v44  ;;  %v3887_v45 = vadd.f32 %v3848_v3, %v3152_v16 }
 0x32d   : > { %v4583_v49 = vpop.f32.mrf.mxu0  ;;  %v4587_v28 = vpop.f32.mrf.mxu1 }
 0x32e   : > { %v3924_v35 = vmax.f32 %v3908_v39, 0.0  ;;  %v3928_v38 = vmax.f32 %v3912_v63, 0.0  ;;  %v3906_v46 = vadd.f32 %v7852_v6, %v3883_v57  ;;  %v3910_v53 = vadd.f32 %v7852_v6, %v3887_v45 }
 0x32f   : > { %v3886_v54 = vadd.f32 %v4583_v49, %v3151_v14  ;;  %v3890_v2 = vadd.f32 %v4587_v28, %v3155_v4  ;;  %v3835_v9 = vpop.f32.mrf.mxu0  ;;  %v3851_v0 = vpop.f32.mrf.mxu1 }
 0x330   : > { %3940 = vst [vmem:[%s7859_s22 + $0x30] sm:$0xff] %v3924_v35  ;;  %3944 = vst [vmem:[%s7859_s22 + $0x50] sm:$0xff] %v3928_v38  ;;  %v3922_v32 = vmax.f32 %v3906_v46, 0.0  ;;  %v3926_v37 = vmax.f32 %v3910_v53, 0.0  ;;  %v3884_v29 = vadd.f32 %v3835_v9, %v3149_v43  ;;  %v3888_v8 = vadd.f32 %v3851_v0, %v3153_v26 }
 0x331   : > { %v3909_v1 = vadd.f32 %v7852_v6, %v3886_v54  ;;  %v3913_v33 = vadd.f32 %v7852_v6, %v3890_v2  ;;  %v4590_v36 = vpop.f32.mrf.mxu1 }
 0x332   : > { %3938 = vst [vmem:[%s7859_s22 + $0x20] sm:$0xff] %v3922_v32  ;;  %3942 = vst [vmem:[%s7859_s22 + $0x40] sm:$0xff] %v3926_v37  ;;  %v3907_v41 = vadd.f32 %v7852_v6, %v3884_v29  ;;  %v3911_v24 = vadd.f32 %v7852_v6, %v3888_v8  ;;  %v3893_v61 = vadd.f32 %v4590_v36, %v3158_v7 }
 0x333   : > { %v3925_v62 = vmax.f32 %v3909_v1, 0.0  ;;  %v3929_v55 = vmax.f32 %v3913_v33, 0.0  ;;  %v3864_v13 = vpop.f32.mrf.mxu1 }
 0x334   : > { %v3923_v19 = vmax.f32 %v3907_v41, 0.0  ;;  %v3927_v10 = vmax.f32 %v3911_v24, 0.0  ;;  %v3916_v12 = vadd.f32 %v7852_v6, %v3893_v61  ;;  %v3891_v5 = vadd.f32 %v3864_v13, %v3156_v25 }
 0x335   : > { %3941 = vst [vmem:[%s7859_s22 + $0x38] sm:$0xff] %v3925_v62  ;;  %3945 = vst [vmem:[%s7859_s22 + $0x58] sm:$0xff] %v3929_v55  ;;  %v4591_v48 = vpop.f32.mrf.mxu1 }
 0x336   : > { %3939 = vst [vmem:[%s7859_s22 + $0x28] sm:$0xff] %v3923_v19  ;;  %3943 = vst [vmem:[%s7859_s22 + $0x48] sm:$0xff] %v3927_v10  ;;  %v3932_v17 = vmax.f32 %v3916_v12, 0.0  ;;  %v3914_v52 = vadd.f32 %v7852_v6, %v3891_v5  ;;  %v3894_v15 = vadd.f32 %v4591_v48, %v3159_v21 }
 0x337   : > { %v3867_v56 = vpop.f32.mrf.mxu1 }
 0x338   : > { %3948 = vst [vmem:[%s7859_s22 + $0x70] sm:$0xff] %v3932_v17  ;;  %v3930_v44 = vmax.f32 %v3914_v52, 0.0  ;;  %v3917_v16 = vadd.f32 %v7852_v6, %v3894_v15  ;;  %v3892_v34 = vadd.f32 %v3867_v56, %v3157_v27 }
 0x33a   : > { %3946 = vst [vmem:[%s7859_s22 + $0x60] sm:$0xff] %v3930_v44  ;;  %v3933_v18 = vmax.f32 %v3917_v16, 0.0  ;;  %v3915_v30 = vadd.f32 %v7852_v6, %v3892_v34 }
 0x33c   : > { %3949 = vst [vmem:[%s7859_s22 + $0x78] sm:$0xff] %v3933_v18  ;;  %v3931_v42 = vmax.f32 %v3915_v30, 0.0 }
 0x33e   : > { %3947 = vst [vmem:[%s7859_s22 + $0x68] sm:$0xff] %v3931_v42 }
 0x33f PF: > { %s18_s9 = sadd.s32 1, %s4835_s9   ;;  %s8699_s27 = smov %s4827_s29 }
 0x340   : > { %p15_p8 = scmp.ge.s32.totalorder %s18_s9, 6   ;;  %s8700_s28 = smov %s4831_s30 }
 0x341   : > { %s8701_s29 = smov %s8704_s10  ;;  %s8702_s30 = smov %s8708_s11 }
 0x342   :  { %17 = sbr.rel (!%p15_p8) target bundleno = 3 (0x3), region = 91 }

</bundles_post_ra>
